<compile_context>
chip_gen: v5e
topology: v5e:2x2
jax: 0.10.0
libtpu: 0.0.40
codegen_flags: <defaults>
</compile_context>

<pallas_src>
import math
from functools import partial

import jax
import jax.numpy as jnp
from jax import lax
from jax.experimental import pallas as pl
from jax.experimental.pallas import tpu as pltpu

DTYPE = jnp.float32  # flip to jnp.bfloat16 for bandwidth-bound production runs


def _detect_vmem_limit():
    """Per-chip scoped VMEM limit: ~half of physical, clamped to [32, 96] MiB."""
    cap = 128 * 1024 * 1024
    try:
        info = pltpu.get_tpu_info()
        cap = int(getattr(info, "vmem_capacity_bytes", cap) or cap)
    except Exception:
        pass
    return int(min(max(cap // 2, 32 * 1024 * 1024), 96 * 1024 * 1024))


VMEM_LIMIT = _detect_vmem_limit()


# ----------------------------- tiling helpers -----------------------------

def _pick_tile(dim, cap):
    """Largest divisor of `dim` that is <= cap, preferring multiples of 128,
    then multiples of 8.  Never returns a block bigger than the array except
    when no usable divisor exists."""
    if dim <= cap:
        return dim
    best8 = best_any = None
    for t in range(cap, 0, -1):
        if dim % t:
            continue
        if t % 128 == 0:
            return t
        if best8 is None and t % 8 == 0:
            best8 = t
        if best_any is None:
            best_any = t
    if best8 is not None:
        return best8
    # TODO(synk): pad + mask edge tiles instead of degenerate divisor / full block.
    return best_any if (best_any is not None and best_any >= 8) else dim


# ------------------------- fused linear (matmul) --------------------------

def _linear_kernel(*refs, relu, has_add, has_ln):
    idx = 0
    x_ref = refs[idx]; idx += 1
    w_ref = refs[idx]; idx += 1
    b_ref = refs[idx]; idx += 1
    add_ref = None
    if has_add:
        add_ref = refs[idx]; idx += 1
    g_ref = beta_ref = None
    if has_ln:
        g_ref = refs[idx]; idx += 1
        beta_ref = refs[idx]; idx += 1
    o_ref = refs[idx]; idx += 1
    acc_ref = refs[idx]

    k = pl.program_id(2)

    @pl.when(k == 0)
    def _init():
        acc_ref[...] = jnp.zeros_like(acc_ref)

    # native-dtype MXU inputs, f32 accumulation (fast bf16 path)
    acc_ref[...] += jnp.dot(x_ref[...], w_ref[...],
                            preferred_element_type=jnp.float32)

    @pl.when(k == pl.num_programs(2) - 1)
    def _finalize():
        y = acc_ref[...] + b_ref[...].astype(jnp.float32)
        if relu:
            y = jnp.maximum(y, 0.0)
        if has_add:
            y = y + add_ref[...].astype(jnp.float32)
        if has_ln:
            # LayerNorm over the full feature dim (block spans all of N), eps=1e-5
            mean = jnp.mean(y, axis=-1, keepdims=True)
            c = y - mean
            var = jnp.mean(c * c, axis=-1, keepdims=True)
            y = c * lax.rsqrt(var + 1e-5)
            y = y * g_ref[...].astype(jnp.float32) + beta_ref[...].astype(jnp.float32)
        o_ref[...] = y.astype(o_ref.dtype)


def fused_linear(x2d, w, b, *, relu=False, add=None, ln=None,
                 tm_cap=256, tn_cap=512, tk_cap=512):
    """y = act(x @ w + b) [+ add] [-> LayerNorm(gamma, beta)], tiled on (M,N,K).

    `add` may have shape (M, N) (residual) or (P, N) with P | M (row-periodic
    broadcast, e.g. a positional-encoding table) -- the latter is fed through
    its own index_map, never materialized at (M, N) in HBM.
    """
    M, K = x2d.shape
    N = w.shape[1]
    has_add = add is not None
    has_ln = ln is not None

    # row period for broadcast-style `add`
    P_rows = M
    if has_add and add.shape[0] != M:
        assert M % add.shape[0] == 0, "broadcast add rows must divide M"
        P_rows = add.shape[0]

    tm = _pick_tile(P_rows, tm_cap)
    tn = N if has_ln else _pick_tile(N, tn_cap)  # LN needs the whole feature row
    tk = _pick_tile(K, tk_cap)

    # keep the double-buffered working set under the scoped VMEM limit
    dsize = x2d.dtype.itemsize
    budget = int(0.7 * VMEM_LIMIT)

    def _bytes(tm_, tk_):
        bb = 2 * (tm_ * tk_ + tk_ * tn + tn) * dsize   # x, w, bias (double-buffered)
        bb += 2 * tm_ * tn * dsize                      # output
        bb += tm_ * tn * 4                              # f32 accumulator
        if has_add:
            bb += 2 * tm_ * tn * dsize
        if has_ln:
            bb += 4 * tn * dsize
        return bb

    while _bytes(tm, tk) > budget:
        if tk > 128:
            nt = _pick_tile(K, max(128, tk // 2))
            if nt < tk:
                tk = nt
                continue
        if tm > 8:
            nm = _pick_tile(P_rows, max(8, tm // 2))
            if nm < tm:
                tm = nm
                continue
        break

    grid = (M // tm, N // tn, K // tk)

    in_specs = [pl.BlockSpec((tm, tk), lambda i, j, k: (i, k)),
                pl.BlockSpec((tk, tn), lambda i, j, k: (k, j)),
                pl.BlockSpec((1, tn), lambda i, j, k: (0, j))]
    args = [x2d, w, b.reshape(1, N)]
    if has_add:
        if add.shape[0] == M:
            in_specs.append(pl.BlockSpec((tm, tn), lambda i, j, k: (i, j)))
        else:
            pb = add.shape[0] // tm
            in_specs.append(
                pl.BlockSpec((tm, tn), lambda i, j, k, _pb=pb: (i % _pb, j)))
        args.append(add)
    if has_ln:
        gamma, beta = ln
        in_specs.append(pl.BlockSpec((1, tn), lambda i, j, k: (0, j)))
        in_specs.append(pl.BlockSpec((1, tn), lambda i, j, k: (0, j)))
        args.append(gamma.reshape(1, N))
        args.append(beta.reshape(1, N))

    return pl.pallas_call(
        partial(_linear_kernel, relu=relu, has_add=has_add, has_ln=has_ln),
        out_shape=jax.ShapeDtypeStruct((M, N), x2d.dtype),
        grid=grid,
        in_specs=in_specs,
        out_specs=pl.BlockSpec((tm, tn), lambda i, j, k: (i, j)),
        scratch_shapes=[pltpu.VMEM((tm, tn), jnp.float32)],
        compiler_params=pltpu.CompilerParams(
            dimension_semantics=("parallel", "parallel", "arbitrary"),
            vmem_limit_bytes=VMEM_LIMIT),
    )(*args)


# --------------------------- flash attention core ---------------------------

def _flash_attn_kernel(q_ref, kv_ref, o_ref, m_sc, l_sc, acc_sc, *,
                       num_heads, head_dim, q_off, k_off, v_off):
    kv_i = pl.program_id(2)

    @pl.when(kv_i == 0)
    def _init():
        m_sc[...] = jnp.full_like(m_sc, -jnp.inf)
        l_sc[...] = jnp.zeros_like(l_sc)
        acc_sc[...] = jnp.zeros_like(acc_sc)

    D = num_heads * head_dim
    tq = q_ref.shape[1]
    tk = kv_ref.shape[1]

    # native dtype for both MXU matmuls; only softmax math / accumulators are f32.
    q = q_ref[0, :, q_off:q_off + D].reshape(tq, num_heads, head_dim)
    k = kv_ref[0, :, k_off:k_off + D].reshape(tk, num_heads, head_dim)
    v = kv_ref[0, :, v_off:v_off + D].reshape(tk, num_heads, head_dim)

    # one batched contraction over heads: (H, tq, tk) scores
    s = jnp.einsum("qhd,khd->hqk", q, k, preferred_element_type=jnp.float32)

    m_prev = m_sc[...]
    m_new = jnp.maximum(m_prev, s.max(axis=-1, keepdims=True))
    alpha = jnp.exp(m_prev - m_new)
    p = jnp.exp(s - m_new)
    l_sc[...] = alpha * l_sc[...] + p.sum(axis=-1, keepdims=True)
    acc_sc[...] = alpha * acc_sc[...] + jnp.einsum(
        "hqk,khd->hqd", p.astype(v.dtype), v, preferred_element_type=jnp.float32)
    m_sc[...] = m_new

    @pl.when(kv_i == pl.num_programs(2) - 1)
    def _finalize():
        out = acc_sc[...] * pl.reciprocal(l_sc[...], approx=True)   # (H, tq, dh)
        o_ref[0] = jnp.transpose(out, (1, 0, 2)).reshape(tq, D).astype(o_ref.dtype)


def flash_attention(q_arr, kv_arr, *, num_heads, head_dim, q_off, k_off, v_off,
                    tq_cap=128, tk_cap=256):
    """q_arr: (B, Sq, Fq) containing Q at columns [q_off, q_off+D);
    kv_arr: (B, Sk, Fkv) containing K at [k_off, k_off+D) and V at [v_off, v_off+D).
    The two may alias the same packed QKV array.  No masks (matches
    nn.Transformer with all masks None).  Online softmax keeps per-step VMEM
    constant, so it scales to long sequences and fits v7x's 64 MiB VMEM."""
    B, Sq, Fq = q_arr.shape
    _, Sk, Fkv = kv_arr.shape
    D = num_heads * head_dim

    tq = _pick_tile(Sq, tq_cap)
    tk = _pick_tile(Sk, tk_cap)
    grid = (B, Sq // tq, Sk // tk)

    return pl.pallas_call(
        partial(_flash_attn_kernel, num_heads=num_heads, head_dim=head_dim,
                q_off=q_off, k_off=k_off, v_off=v_off),
        out_shape=jax.ShapeDtypeStruct((B, Sq, D), q_arr.dtype),
        grid=grid,
        in_specs=[pl.BlockSpec((1, tq, Fq), lambda b, qi, ki: (b, qi, 0)),
                  pl.BlockSpec((1, tk, Fkv), lambda b, qi, ki: (b, ki, 0))],
        out_specs=pl.BlockSpec((1, tq, D), lambda b, qi, ki: (b, qi, 0)),
        scratch_shapes=[pltpu.VMEM((num_heads, tq, 1), jnp.float32),
                        pltpu.VMEM((num_heads, tq, 1), jnp.float32),
                        pltpu.VMEM((num_heads, tq, head_dim), jnp.float32)],
        compiler_params=pltpu.CompilerParams(
            dimension_semantics=("parallel", "parallel", "arbitrary"),
            vmem_limit_bytes=VMEM_LIMIT),
    )(q_arr, kv_arr)


# --------------------------- model building blocks ---------------------------

def encoder_layer_fwd(x, p, num_heads):
    # post-norm (norm_first=False), ReLU activation (PyTorch defaults)
    B, S, D = x.shape
    M = B * S
    dh = D // num_heads
    x2d = x.reshape(M, D)

    sa = p["self_attn"]
    qkv = fused_linear(x2d, sa["w_qkv"], sa["b_qkv"]).reshape(B, S, 3 * D)
    attn = flash_attention(qkv, qkv, num_heads=num_heads, head_dim=dh,
                           q_off=0, k_off=D, v_off=2 * D)
    h = fused_linear(attn.reshape(M, D), sa["wo"], sa["bo"],
                     add=x2d, ln=(p["norm1_g"], p["norm1_b"]))            # proj+res+LN

    ff = fused_linear(h, p["w1"], p["b1"], relu=True)
    out = fused_linear(ff, p["w2"], p["b2"],
                       add=h, ln=(p["norm2_g"], p["norm2_b"]))            # FFN2+res+LN
    return out.reshape(B, S, D)


def decoder_layer_fwd(x, memory, p, num_heads):
    B, St, D = x.shape
    Sk = memory.shape[1]
    M = B * St
    dh = D // num_heads
    x2d = x.reshape(M, D)

    sa = p["self_attn"]
    qkv = fused_linear(x2d, sa["w_qkv"], sa["b_qkv"]).reshape(B, St, 3 * D)
    attn = flash_attention(qkv, qkv, num_heads=num_heads, head_dim=dh,
                           q_off=0, k_off=D, v_off=2 * D)
    h1 = fused_linear(attn.reshape(M, D), sa["wo"], sa["bo"],
                      add=x2d, ln=(p["norm1_g"], p["norm1_b"]))

    ca = p["cross_attn"]
    q = fused_linear(h1, ca["wq"], ca["bq"]).reshape(B, St, D)
    kv = fused_linear(memory.reshape(B * Sk, D),
                      ca["w_kv"], ca["b_kv"]).reshape(B, Sk, 2 * D)
    cattn = flash_attention(q, kv, num_heads=num_heads, head_dim=dh,
                            q_off=0, k_off=0, v_off=D)
    h2 = fused_linear(cattn.reshape(M, D), ca["wo"], ca["bo"],
                      add=h1, ln=(p["norm2_g"], p["norm2_b"]))

    ff = fused_linear(h2, p["w1"], p["b1"], relu=True)
    out = fused_linear(ff, p["w2"], p["b2"],
                       add=h2, ln=(p["norm3_g"], p["norm3_b"]))
    return out.reshape(B, St, D)


def transformer_forward(params, src, tgt, *, num_heads):
    # TODO(synk): nn.Dropout layers are identity in eval/inference mode and are omitted.
    # TODO(synk): no causal / padding masks -- matches nn.Transformer with all masks None.
    B, Ss, F = src.shape
    St = tgt.shape[1]
    D = params["in_w"].shape[1]
    pe = params["pe"]

    def embed(x, S):
        # PE add fused into the input-projection epilogue via a row-periodic
        # (S, D) BlockSpec -- no (B*S, D) broadcast materialized in HBM.
        h = fused_linear(x.reshape(B * S, F), params["in_w"], params["in_b"],
                         add=pe[:S])
        return h.reshape(B, S, D)

    mem = embed(src, Ss)
    for lp in params["enc_layers"]:
        mem = encoder_layer_fwd(mem, lp, num_heads)

    y = embed(tgt, St)
    for lp in params["dec_layers"]:
        y = decoder_layer_fwd(y, mem, lp, num_heads)

    out = fused_linear(y.reshape(B * St, D), params["out_w"], params["out_b"])
    return out.reshape(B, St, F)


# --------------------------- parameter construction ---------------------------

def make_pe_table(max_len, d_model):
    position = jnp.arange(max_len, dtype=jnp.float32)[:, None]
    div_term = jnp.exp(jnp.arange(0, d_model, 2, dtype=jnp.float32)
                       * (-math.log(10000.0) / d_model))
    pe = jnp.zeros((max_len, d_model), jnp.float32)
    pe = pe.at[:, 0::2].set(jnp.sin(position * div_term))
    pe = pe.at[:, 1::2].set(jnp.cos(position * div_term))
    return pe.astype(DTYPE)


def init_params(key, input_dim, hidden_dim, num_layers, num_heads,
                dim_ff=2048, max_len=5000):
    keys = iter(jax.random.split(key, 4096))
    dh = hidden_dim // num_heads
    scale = 1.0 / math.sqrt(dh)   # folded into the Q projection (zero runtime cost)

    def dense(fan_in, fan_out):
        w = (jax.random.normal(next(keys), (fan_in, fan_out), DTYPE)
             / math.sqrt(fan_in))
        b = jax.random.normal(next(keys), (fan_out,), DTYPE) * 0.01
        return w, b

    def mha_self(D):
        wq, bq = dense(D, D)
        wk, bk = dense(D, D)
        wv, bv = dense(D, D)
        wo, bo = dense(D, D)
        return dict(w_qkv=jnp.concatenate([wq * scale, wk, wv], axis=1),
                    b_qkv=jnp.concatenate([bq * scale, bk, bv]),
                    wo=wo, bo=bo)

    def mha_cross(D):
        wq, bq = dense(D, D)
        wk, bk = dense(D, D)
        wv, bv = dense(D, D)
        wo, bo = dense(D, D)
        return dict(wq=wq * scale, bq=bq * scale,
                    w_kv=jnp.concatenate([wk, wv], axis=1),
                    b_kv=jnp.concatenate([bk, bv]),
                    wo=wo, bo=bo)

    def ln(D):
        return jnp.ones((D,), DTYPE), jnp.zeros((D,), DTYPE)

    def enc_layer(D):
        w1, b1 = dense(D, dim_ff)
        w2, b2 = dense(dim_ff, D)
        n1g, n1b = ln(D)
        n2g, n2b = ln(D)
        return dict(self_attn=mha_self(D), w1=w1, b1=b1, w2=w2, b2=b2,
                    norm1_g=n1g, norm1_b=n1b, norm2_g=n2g, norm2_b=n2b)

    def dec_layer(D):
        w1, b1 = dense(D, dim_ff)
        w2, b2 = dense(dim_ff, D)
        n1g, n1b = ln(D)
        n2g, n2b = ln(D)
        n3g, n3b = ln(D)
        return dict(self_attn=mha_self(D), cross_attn=mha_cross(D),
                    w1=w1, b1=b1, w2=w2, b2=b2,
                    norm1_g=n1g, norm1_b=n1b, norm2_g=n2g, norm2_b=n2b,
                    norm3_g=n3g, norm3_b=n3b)

    in_w, in_b = dense(input_dim, hidden_dim)
    out_w, out_b = dense(hidden_dim, input_dim)
    return dict(
        in_w=in_w, in_b=in_b, out_w=out_w, out_b=out_b,
        pe=make_pe_table(max_len, hidden_dim),
        enc_layers=[enc_layer(hidden_dim) for _ in range(num_layers)],
        dec_layers=[dec_layer(hidden_dim) for _ in range(num_layers)],
    )


# ----------------------------------- main -----------------------------------

if __name__ == "__main__":
    input_dim = 6
    hidden_dim = 32
    num_layers = 2
    num_heads = 4
    t_past = 8     # src sequence length
    t_future = 8   # tgt sequence length
    batch = 2

    key = jax.random.PRNGKey(0)
    k_par, k_src, k_tgt = jax.random.split(key, 3)

    params = init_params(k_par, input_dim, hidden_dim, num_layers, num_heads)
    src = jax.random.normal(k_src, (batch, t_past, input_dim), DTYPE)
    tgt = jax.random.normal(k_tgt, (batch, t_future, input_dim), DTYPE)

    fwd = jax.jit(partial(transformer_forward, num_heads=num_heads))
    out = fwd(params, src, tgt)
    out = jax.block_until_ready(out)

    assert out.shape == (batch, t_future, input_dim)
    assert bool(jnp.all(jnp.isfinite(out)))
    print("KERNEL_OK")
</pallas_src>

<mosaic_0001>
module attributes {stable_mosaic.version = 11 : i64} {
  func.func @_linear_kernel(%arg0: i32, %arg1: i32, %arg2: i32, %arg3: memref<16x32xf32, #tpu.memory_space<vmem>>, %arg4: memref<32x96xf32, #tpu.memory_space<vmem>>, %arg5: memref<1x96xf32, #tpu.memory_space<vmem>>, %arg6: memref<16x96xf32, #tpu.memory_space<vmem>>, %arg7: memref<16x96xf32, #tpu.memory_space<vmem>>) attributes {dimension_semantics = [#tpu.dimension_semantics<parallel>, #tpu.dimension_semantics<parallel>, #tpu.dimension_semantics<arbitrary>], iteration_bounds = array<i64: 1, 1, 1>, scalar_prefetch = 0 : i64, scratch_operands = 1 : i64, tpu.core_type = #tpu.core_type<tc>, window_params = [{transform_indices = @transform_0, window_bounds = array<i64: 16, 32>}, {transform_indices = @transform_1, window_bounds = array<i64: 32, 96>}, {transform_indices = @transform_2, window_bounds = array<i64: 1, 96>}, {transform_indices = @transform_3, window_bounds = array<i64: 16, 96>}]} {
    %c0_i32 = arith.constant 0 : i32
    %0 = arith.cmpi eq, %arg2, %c0_i32 : i32
    %1 = arith.extui %0 : i1 to i32
    %c0_i32_0 = arith.constant 0 : i32
    %2 = arith.cmpi ne, %1, %c0_i32_0 : i32
    scf.if %2 {
      %cst_10 = arith.constant 0.000000e+00 : f32
      %12 = vector.broadcast %cst_10 : f32 to vector<16x96xf32>
      %c0_11 = arith.constant 0 : index
      %c0_12 = arith.constant 0 : index
      %13 = vector.load %arg7[%c0_11, %c0_12] : memref<16x96xf32, #tpu.memory_space<vmem>>, vector<16x96xf32>
      tpu.vector_store %arg7[%c0_11, %c0_12], %12 {strides = array<i32>} : memref<16x96xf32, #tpu.memory_space<vmem>>, vector<16x96xf32>,
    } else {
    }
    %c0 = arith.constant 0 : index
    %c0_1 = arith.constant 0 : index
    %3 = vector.load %arg7[%c0, %c0_1] : memref<16x96xf32, #tpu.memory_space<vmem>>, vector<16x96xf32>
    %c0_2 = arith.constant 0 : index
    %c0_3 = arith.constant 0 : index
    %4 = vector.load %arg3[%c0_2, %c0_3] : memref<16x32xf32, #tpu.memory_space<vmem>>, vector<16x32xf32>
    %c0_4 = arith.constant 0 : index
    %c0_5 = arith.constant 0 : index
    %5 = vector.load %arg4[%c0_4, %c0_5] : memref<32x96xf32, #tpu.memory_space<vmem>>, vector<32x96xf32>
    %cst = arith.constant dense<0.000000e+00> : vector<16x96xf32>
    %6 = tpu.matmul %4, %5, %cst {dimension_numbers = #tpu.dot_dimension_numbers<[1], [0], [0], [1], [0, 0, 1, 1], [], []>} : vector<16x32xf32>, vector<32x96xf32>, vector<16x96xf32> -> vector<16x96xf32>
    %7 = arith.addf %3, %6 : vector<16x96xf32>
    %c0_6 = arith.constant 0 : index
    %c0_7 = arith.constant 0 : index
    %8 = vector.load %arg7[%c0_6, %c0_7] : memref<16x96xf32, #tpu.memory_space<vmem>>, vector<16x96xf32>
    tpu.vector_store %arg7[%c0_6, %c0_7], %7 {strides = array<i32>} : memref<16x96xf32, #tpu.memory_space<vmem>>, vector<16x96xf32>,
    %c0_i32_8 = arith.constant 0 : i32
    %9 = arith.cmpi eq, %arg2, %c0_i32_8 : i32
    %10 = arith.extui %9 : i1 to i32
    %c0_i32_9 = arith.constant 0 : i32
    %11 = arith.cmpi ne, %10, %c0_i32_9 : i32
    scf.if %11 {
      %c0_10 = arith.constant 0 : index
      %c0_11 = arith.constant 0 : index
      %12 = vector.load %arg7[%c0_10, %c0_11] : memref<16x96xf32, #tpu.memory_space<vmem>>, vector<16x96xf32>
      %c0_12 = arith.constant 0 : index
      %c0_13 = arith.constant 0 : index
      %13 = vector.load %arg5[%c0_12, %c0_13] : memref<1x96xf32, #tpu.memory_space<vmem>>, vector<1x96xf32>
      %14 = vector.broadcast %13 : vector<1x96xf32> to vector<16x96xf32>
      %15 = arith.addf %12, %14 : vector<16x96xf32>
      %c0_14 = arith.constant 0 : index
      %c0_15 = arith.constant 0 : index
      %16 = vector.load %arg6[%c0_14, %c0_15] : memref<16x96xf32, #tpu.memory_space<vmem>>, vector<16x96xf32>
      tpu.vector_store %arg6[%c0_14, %c0_15], %15 {strides = array<i32>} : memref<16x96xf32, #tpu.memory_space<vmem>>, vector<16x96xf32>,
    } else {
    }
    return
  }
  func.func @transform_0(%arg0: i32, %arg1: i32, %arg2: i32) -> (i32, i32) {
    %c0_i32 = arith.constant 0 : i32
    return %arg0, %arg2 : i32, i32
  }
  func.func @transform_1(%arg0: i32, %arg1: i32, %arg2: i32) -> (i32, i32) {
    %c0_i32 = arith.constant 0 : i32
    return %arg2, %arg1 : i32, i32
  }
  func.func @transform_2(%arg0: i32, %arg1: i32, %arg2: i32) -> (i32, i32) {
    %c0_i32 = arith.constant 0 : i32
    %c0_i32_0 = arith.constant 0 : i32
    return %c0_i32, %arg1 : i32, i32
  }
  func.func @transform_3(%arg0: i32, %arg1: i32, %arg2: i32) -> (i32, i32) {
    %c0_i32 = arith.constant 0 : i32
    return %arg0, %arg1 : i32, i32
  }
}

module attributes {stable_mosaic.version = 11 : i64} {
  func.func @_linear_kernel(%arg0: i32, %arg1: i32, %arg2: i32, %arg3: memref<8x6xf32, #tpu.memory_space<vmem>>, %arg4: memref<6x32xf32, #tpu.memory_space<vmem>>, %arg5: memref<1x32xf32, #tpu.memory_space<vmem>>, %arg6: memref<8x32xf32, #tpu.memory_space<vmem>>, %arg7: memref<8x32xf32, #tpu.memory_space<vmem>>, %arg8: memref<8x32xf32, #tpu.memory_space<vmem>>) attributes {dimension_semantics = [#tpu.dimension_semantics<parallel>, #tpu.dimension_semantics<parallel>, #tpu.dimension_semantics<arbitrary>], iteration_bounds = array<i64: 2, 1, 1>, scalar_prefetch = 0 : i64, scratch_operands = 1 : i64, tpu.core_type = #tpu.core_type<tc>, window_params = [{transform_indices = @transform_0, window_bounds = array<i64: 8, 6>}, {transform_indices = @transform_1, window_bounds = array<i64: 6, 32>}, {transform_indices = @transform_2, window_bounds = array<i64: 1, 32>}, {transform_indices = @transform_3, window_bounds = array<i64: 8, 32>}, {transform_indices = @transform_4, window_bounds = array<i64: 8, 32>}]} {
    %c0_i32 = arith.constant 0 : i32
    %0 = arith.cmpi eq, %arg2, %c0_i32 : i32
    %1 = arith.extui %0 : i1 to i32
    %c0_i32_0 = arith.constant 0 : i32
    %2 = arith.cmpi ne, %1, %c0_i32_0 : i32
    scf.if %2 {
      %cst_10 = arith.constant 0.000000e+00 : f32
      %12 = vector.broadcast %cst_10 : f32 to vector<8x32xf32>
      %c0_11 = arith.constant 0 : index
      %c0_12 = arith.constant 0 : index
      %13 = vector.load %arg8[%c0_11, %c0_12] : memref<8x32xf32, #tpu.memory_space<vmem>>, vector<8x32xf32>
      tpu.vector_store %arg8[%c0_11, %c0_12], %12 {strides = array<i32>} : memref<8x32xf32, #tpu.memory_space<vmem>>, vector<8x32xf32>,
    } else {
    }
    %c0 = arith.constant 0 : index
    %c0_1 = arith.constant 0 : index
    %3 = vector.load %arg8[%c0, %c0_1] : memref<8x32xf32, #tpu.memory_space<vmem>>, vector<8x32xf32>
    %c0_2 = arith.constant 0 : index
    %c0_3 = arith.constant 0 : index
    %4 = vector.load %arg3[%c0_2, %c0_3] : memref<8x6xf32, #tpu.memory_space<vmem>>, vector<8x6xf32>
    %c0_4 = arith.constant 0 : index
    %c0_5 = arith.constant 0 : index
    %5 = vector.load %arg4[%c0_4, %c0_5] : memref<6x32xf32, #tpu.memory_space<vmem>>, vector<6x32xf32>
    %cst = arith.constant dense<0.000000e+00> : vector<8x32xf32>
    %6 = tpu.matmul %4, %5, %cst {dimension_numbers = #tpu.dot_dimension_numbers<[1], [0], [0], [1], [0, 0, 1, 1], [], []>} : vector<8x6xf32>, vector<6x32xf32>, vector<8x32xf32> -> vector<8x32xf32>
    %7 = arith.addf %3, %6 : vector<8x32xf32>
    %c0_6 = arith.constant 0 : index
    %c0_7 = arith.constant 0 : index
    %8 = vector.load %arg8[%c0_6, %c0_7] : memref<8x32xf32, #tpu.memory_space<vmem>>, vector<8x32xf32>
    tpu.vector_store %arg8[%c0_6, %c0_7], %7 {strides = array<i32>} : memref<8x32xf32, #tpu.memory_space<vmem>>, vector<8x32xf32>,
    %c0_i32_8 = arith.constant 0 : i32
    %9 = arith.cmpi eq, %arg2, %c0_i32_8 : i32
    %10 = arith.extui %9 : i1 to i32
    %c0_i32_9 = arith.constant 0 : i32
    %11 = arith.cmpi ne, %10, %c0_i32_9 : i32
    scf.if %11 {
      %c0_10 = arith.constant 0 : index
      %c0_11 = arith.constant 0 : index
      %12 = vector.load %arg8[%c0_10, %c0_11] : memref<8x32xf32, #tpu.memory_space<vmem>>, vector<8x32xf32>
      %c0_12 = arith.constant 0 : index
      %c0_13 = arith.constant 0 : index
      %13 = vector.load %arg5[%c0_12, %c0_13] : memref<1x32xf32, #tpu.memory_space<vmem>>, vector<1x32xf32>
      %14 = vector.broadcast %13 : vector<1x32xf32> to vector<8x32xf32>
      %15 = arith.addf %12, %14 : vector<8x32xf32>
      %c0_14 = arith.constant 0 : index
      %c0_15 = arith.constant 0 : index
      %16 = vector.load %arg6[%c0_14, %c0_15] : memref<8x32xf32, #tpu.memory_space<vmem>>, vector<8x32xf32>
      %17 = arith.addf %15, %16 : vector<8x32xf32>
      %c0_16 = arith.constant 0 : index
      %c0_17 = arith.constant 0 : index
      %18 = vector.load %arg7[%c0_16, %c0_17] : memref<8x32xf32, #tpu.memory_space<vmem>>, vector<8x32xf32>
      tpu.vector_store %arg7[%c0_16, %c0_17], %17 {strides = array<i32>} : memref<8x32xf32, #tpu.memory_space<vmem>>, vector<8x32xf32>,
    } else {
    }
    return
  }
  func.func @transform_0(%arg0: i32, %arg1: i32, %arg2: i32) -> (i32, i32) {
    %c0_i32 = arith.constant 0 : i32
    return %arg0, %arg2 : i32, i32
  }
  func.func @transform_1(%arg0: i32, %arg1: i32, %arg2: i32) -> (i32, i32) {
    %c0_i32 = arith.constant 0 : i32
    return %arg2, %arg1 : i32, i32
  }
  func.func @transform_2(%arg0: i32, %arg1: i32, %arg2: i32) -> (i32, i32) {
    %c0_i32 = arith.constant 0 : i32
    %c0_i32_0 = arith.constant 0 : i32
    return %c0_i32, %arg1 : i32, i32
  }
  func.func @transform_3(%arg0: i32, %arg1: i32, %arg2: i32) -> (i32, i32) {
    %c1_i32 = arith.constant 1 : i32
    %c0_i32 = arith.constant 0 : i32
    %0 = arith.cmpi eq, %c1_i32, %c0_i32 : i32
    %c1_i32_0 = arith.constant 1 : i32
    %1 = arith.select %0, %c1_i32_0, %c1_i32 : i32
    %2 = arith.remsi %arg0, %1 : i32
    %c0_i32_1 = arith.constant 0 : i32
    %3 = arith.cmpi ne, %2, %c0_i32_1 : i32
    %c0_i32_2 = arith.constant 0 : i32
    %4 = arith.cmpi slt, %2, %c0_i32_2 : i32
    %c0_i32_3 = arith.constant 0 : i32
    %5 = arith.cmpi slt, %1, %c0_i32_3 : i32
    %6 = arith.xori %4, %5 : i1
    %7 = arith.andi %6, %3 : i1
    %8 = arith.addi %2, %1 : i32
    %9 = arith.select %7, %8, %2 : i32
    %c0_i32_4 = arith.constant 0 : i32
    return %9, %arg1 : i32, i32
  }
  func.func @transform_4(%arg0: i32, %arg1: i32, %arg2: i32) -> (i32, i32) {
    %c0_i32 = arith.constant 0 : i32
    return %arg0, %arg1 : i32, i32
  }
}

module attributes {stable_mosaic.version = 11 : i64} {
  func.func @_flash_attn_kernel(%arg0: i32, %arg1: i32, %arg2: i32, %arg3: memref<1x8x96xf32, #tpu.memory_space<vmem>>, %arg4: memref<1x8x96xf32, #tpu.memory_space<vmem>>, %arg5: memref<1x8x32xf32, #tpu.memory_space<vmem>>, %arg6: memref<4x8x1xf32, #tpu.memory_space<vmem>>, %arg7: memref<4x8x1xf32, #tpu.memory_space<vmem>>, %arg8: memref<4x8x8xf32, #tpu.memory_space<vmem>>) attributes {dimension_semantics = [#tpu.dimension_semantics<parallel>, #tpu.dimension_semantics<parallel>, #tpu.dimension_semantics<arbitrary>], iteration_bounds = array<i64: 2, 1, 1>, scalar_prefetch = 0 : i64, scratch_operands = 3 : i64, tpu.core_type = #tpu.core_type<tc>, window_params = [{transform_indices = @transform_0, window_bounds = array<i64: 1, 8, 96>}, {transform_indices = @transform_1, window_bounds = array<i64: 1, 8, 96>}, {transform_indices = @transform_2, window_bounds = array<i64: 1, 8, 32>}]} {
    %c0_i32 = arith.constant 0 : i32
    %0 = arith.cmpi eq, %arg2, %c0_i32 : i32
    %1 = arith.extui %0 : i1 to i32
    %c0_i32_0 = arith.constant 0 : i32
    %2 = arith.cmpi ne, %1, %c0_i32_0 : i32
    scf.if %2 {
      %cst_30 = arith.constant 0xFF800000 : f32
      %38 = vector.broadcast %cst_30 : f32 to vector<4x8x1xf32>
      %c0_31 = arith.constant 0 : index
      %c0_32 = arith.constant 0 : index
      %c0_33 = arith.constant 0 : index
      %39 = vector.load %arg6[%c0_31, %c0_32, %c0_33] : memref<4x8x1xf32, #tpu.memory_space<vmem>>, vector<4x8x1xf32>
      tpu.vector_store %arg6[%c0_31, %c0_32, %c0_33], %38 {strides = array<i32>} : memref<4x8x1xf32, #tpu.memory_space<vmem>>, vector<4x8x1xf32>,
      %cst_34 = arith.constant 0.000000e+00 : f32
      %40 = vector.broadcast %cst_34 : f32 to vector<4x8x1xf32>
      %c0_35 = arith.constant 0 : index
      %c0_36 = arith.constant 0 : index
      %c0_37 = arith.constant 0 : index
      %41 = vector.load %arg7[%c0_35, %c0_36, %c0_37] : memref<4x8x1xf32, #tpu.memory_space<vmem>>, vector<4x8x1xf32>
      tpu.vector_store %arg7[%c0_35, %c0_36, %c0_37], %40 {strides = array<i32>} : memref<4x8x1xf32, #tpu.memory_space<vmem>>, vector<4x8x1xf32>,
      %cst_38 = arith.constant 0.000000e+00 : f32
      %42 = vector.broadcast %cst_38 : f32 to vector<4x8x8xf32>
      %c0_39 = arith.constant 0 : index
      %c0_40 = arith.constant 0 : index
      %c0_41 = arith.constant 0 : index
      %43 = vector.load %arg8[%c0_39, %c0_40, %c0_41] : memref<4x8x8xf32, #tpu.memory_space<vmem>>, vector<4x8x8xf32>
      tpu.vector_store %arg8[%c0_39, %c0_40, %c0_41], %42 {strides = array<i32>} : memref<4x8x8xf32, #tpu.memory_space<vmem>>, vector<4x8x8xf32>,
    } else {
    }
    %c0 = arith.constant 0 : index
    %c0_1 = arith.constant 0 : index
    %c0_2 = arith.constant 0 : index
    %3 = vector.load %arg3[%c0, %c0_1, %c0_2] : memref<1x8x96xf32, #tpu.memory_space<vmem>>, vector<1x8x32xf32>
    %4 = vector.shape_cast %3 : vector<1x8x32xf32> to vector<8x32xf32>
    %5 = vector.shape_cast %4 : vector<8x32xf32> to vector<8x4x8xf32>
    %c0_3 = arith.constant 0 : index
    %c0_4 = arith.constant 0 : index
    %c32 = arith.constant 32 : index
    %6 = vector.load %arg4[%c0_3, %c0_4, %c32] : memref<1x8x96xf32, #tpu.memory_space<vmem>>, vector<1x8x32xf32>
    %7 = vector.shape_cast %6 : vector<1x8x32xf32> to vector<8x32xf32>
    %8 = vector.shape_cast %7 : vector<8x32xf32> to vector<8x4x8xf32>
    %c0_5 = arith.constant 0 : index
    %c0_6 = arith.constant 0 : index
    %c64 = arith.constant 64 : index
    %9 = vector.load %arg4[%c0_5, %c0_6, %c64] : memref<1x8x96xf32, #tpu.memory_space<vmem>>, vector<1x8x32xf32>
    %10 = vector.shape_cast %9 : vector<1x8x32xf32> to vector<8x32xf32>
    %11 = vector.shape_cast %10 : vector<8x32xf32> to vector<8x4x8xf32>
    "tpu.trace_start"() <{level = 10 : i32, message = "qhd,khd->hqk"}> : () -> ()
    %cst = arith.constant dense<0.000000e+00> : vector<4x8x8xf32>
    %12 = tpu.matmul %5, %8, %cst {dimension_numbers = #tpu.dot_dimension_numbers<[2], [2], [0], [0], [0, 1, 0, 0, 1, 0], [1], [1]>} : vector<8x4x8xf32>, vector<8x4x8xf32>, vector<4x8x8xf32> -> vector<4x8x8xf32>
    "tpu.trace_stop"() : () -> ()
    %c0_7 = arith.constant 0 : index
    %c0_8 = arith.constant 0 : index
    %c0_9 = arith.constant 0 : index
    %13 = vector.load %arg6[%c0_7, %c0_8, %c0_9] : memref<4x8x1xf32, #tpu.memory_space<vmem>>, vector<4x8x1xf32>
    %cst_10 = arith.constant dense<0xFF800000> : vector<4x8xf32>
    %14 = vector.multi_reduction <maximumf>, %12, %cst_10 [2] : vector<4x8x8xf32> to vector<4x8xf32>
    %15 = vector.shape_cast %14 : vector<4x8xf32> to vector<4x8x1xf32>
    %16 = arith.maximumf %13, %15 : vector<4x8x1xf32>
    %17 = arith.subf %13, %16 : vector<4x8x1xf32>
    %18 = math.exp %17 : vector<4x8x1xf32>
    %19 = vector.broadcast %16 : vector<4x8x1xf32> to vector<4x8x8xf32>
    %20 = arith.subf %12, %19 : vector<4x8x8xf32>
    %21 = math.exp %20 : vector<4x8x8xf32>
    %c0_11 = arith.constant 0 : index
    %c0_12 = arith.constant 0 : index
    %c0_13 = arith.constant 0 : index
    %22 = vector.load %arg7[%c0_11, %c0_12, %c0_13] : memref<4x8x1xf32, #tpu.memory_space<vmem>>, vector<4x8x1xf32>
    %23 = arith.mulf %18, %22 : vector<4x8x1xf32>
    %cst_14 = arith.constant dense<0.000000e+00> : vector<4x8xf32>
    %24 = vector.multi_reduction <add>, %21, %cst_14 [2] : vector<4x8x8xf32> to vector<4x8xf32>
    %25 = vector.shape_cast %24 : vector<4x8xf32> to vector<4x8x1xf32>
    %26 = arith.addf %23, %25 : vector<4x8x1xf32>
    %c0_15 = arith.constant 0 : index
    %c0_16 = arith.constant 0 : index
    %c0_17 = arith.constant 0 : index
    %27 = vector.load %arg7[%c0_15, %c0_16, %c0_17] : memref<4x8x1xf32, #tpu.memory_space<vmem>>, vector<4x8x1xf32>
    tpu.vector_store %arg7[%c0_15, %c0_16, %c0_17], %26 {strides = array<i32>} : memref<4x8x1xf32, #tpu.memory_space<vmem>>, vector<4x8x1xf32>,
    %c0_18 = arith.constant 0 : index
    %c0_19 = arith.constant 0 : index
    %c0_20 = arith.constant 0 : index
    %28 = vector.load %arg8[%c0_18, %c0_19, %c0_20] : memref<4x8x8xf32, #tpu.memory_space<vmem>>, vector<4x8x8xf32>
    %29 = vector.broadcast %18 : vector<4x8x1xf32> to vector<4x8x8xf32>
    %30 = arith.mulf %29, %28 : vector<4x8x8xf32>
    "tpu.trace_start"() <{level = 10 : i32, message = "hqk,khd->hqd"}> : () -> ()
    %cst_21 = arith.constant dense<0.000000e+00> : vector<4x8x8xf32>
    %31 = tpu.matmul %21, %11, %cst_21 {dimension_numbers = #tpu.dot_dimension_numbers<[2], [0], [1], [2], [0, 0, 0, 1, 1, 2], [0], [1]>} : vector<4x8x8xf32>, vector<8x4x8xf32>, vector<4x8x8xf32> -> vector<4x8x8xf32>
    "tpu.trace_stop"() : () -> ()
    %32 = arith.addf %30, %31 : vector<4x8x8xf32>
    %c0_22 = arith.constant 0 : index
    %c0_23 = arith.constant 0 : index
    %c0_24 = arith.constant 0 : index
    %33 = vector.load %arg8[%c0_22, %c0_23, %c0_24] : memref<4x8x8xf32, #tpu.memory_space<vmem>>, vector<4x8x8xf32>
    tpu.vector_store %arg8[%c0_22, %c0_23, %c0_24], %32 {strides = array<i32>} : memref<4x8x8xf32, #tpu.memory_space<vmem>>, vector<4x8x8xf32>,
    %c0_25 = arith.constant 0 : index
    %c0_26 = arith.constant 0 : index
    %c0_27 = arith.constant 0 : index
    %34 = vector.load %arg6[%c0_25, %c0_26, %c0_27] : memref<4x8x1xf32, #tpu.memory_space<vmem>>, vector<4x8x1xf32>
    tpu.vector_store %arg6[%c0_25, %c0_26, %c0_27], %16 {strides = array<i32>} : memref<4x8x1xf32, #tpu.memory_space<vmem>>, vector<4x8x1xf32>,
    %c0_i32_28 = arith.constant 0 : i32
    %35 = arith.cmpi eq, %arg2, %c0_i32_28 : i32
    %36 = arith.extui %35 : i1 to i32
    %c0_i32_29 = arith.constant 0 : i32
    %37 = arith.cmpi ne, %36, %c0_i32_29 : i32
    scf.if %37 {
      %c0_30 = arith.constant 0 : index
      %c0_31 = arith.constant 0 : index
      %c0_32 = arith.constant 0 : index
      %38 = vector.load %arg8[%c0_30, %c0_31, %c0_32] : memref<4x8x8xf32, #tpu.memory_space<vmem>>, vector<4x8x8xf32>
      %c0_33 = arith.constant 0 : index
      %c0_34 = arith.constant 0 : index
      %c0_35 = arith.constant 0 : index
      %39 = vector.load %arg7[%c0_33, %c0_34, %c0_35] : memref<4x8x1xf32, #tpu.memory_space<vmem>>, vector<4x8x1xf32>
      %40 = tpu.reciprocal %39 {approx = true} : vector<4x8x1xf32> -> vector<4x8x1xf32>
      %41 = vector.broadcast %40 : vector<4x8x1xf32> to vector<4x8x8xf32>
      %42 = arith.mulf %38, %41 : vector<4x8x8xf32>
      %43 = tpu.transpose %42, [1, 0, 2] : vector<4x8x8xf32> -> vector<8x4x8xf32>
      %44 = vector.shape_cast %43 : vector<8x4x8xf32> to vector<8x32xf32>
      %c0_36 = arith.constant 0 : index
      %c0_37 = arith.constant 0 : index
      %c0_38 = arith.constant 0 : index
      %45 = vector.load %arg5[%c0_36, %c0_37, %c0_38] : memref<1x8x32xf32, #tpu.memory_space<vmem>>, vector<1x8x32xf32>
      %46 = vector.shape_cast %45 : vector<1x8x32xf32> to vector<8x32xf32>
      %47 = vector.shape_cast %44 : vector<8x32xf32> to vector<1x8x32xf32>
      tpu.vector_store %arg5[%c0_36, %c0_37, %c0_38], %47 {strides = array<i32>} : memref<1x8x32xf32, #tpu.memory_space<vmem>>, vector<1x8x32xf32>,
    } else {
    }
    return
  }
  func.func @transform_0(%arg0: i32, %arg1: i32, %arg2: i32) -> (i32, i32, i32) {
    %c0_i32 = arith.constant 0 : i32
    %c0_i32_0 = arith.constant 0 : i32
    return %arg0, %arg1, %c0_i32 : i32, i32, i32
  }
  func.func @transform_1(%arg0: i32, %arg1: i32, %arg2: i32) -> (i32, i32, i32) {
    %c0_i32 = arith.constant 0 : i32
    %c0_i32_0 = arith.constant 0 : i32
    return %arg0, %arg2, %c0_i32 : i32, i32, i32
  }
  func.func @transform_2(%arg0: i32, %arg1: i32, %arg2: i32) -> (i32, i32, i32) {
    %c0_i32 = arith.constant 0 : i32
    %c0_i32_0 = arith.constant 0 : i32
    return %arg0, %arg1, %c0_i32 : i32, i32, i32
  }
}

module attributes {stable_mosaic.version = 11 : i64} {
  func.func @_linear_kernel(%arg0: i32, %arg1: i32, %arg2: i32, %arg3: memref<16x32xf32, #tpu.memory_space<vmem>>, %arg4: memref<32x32xf32, #tpu.memory_space<vmem>>, %arg5: memref<1x32xf32, #tpu.memory_space<vmem>>, %arg6: memref<16x32xf32, #tpu.memory_space<vmem>>, %arg7: memref<1x32xf32, #tpu.memory_space<vmem>>, %arg8: memref<1x32xf32, #tpu.memory_space<vmem>>, %arg9: memref<16x32xf32, #tpu.memory_space<vmem>>, %arg10: memref<16x32xf32, #tpu.memory_space<vmem>>) attributes {dimension_semantics = [#tpu.dimension_semantics<parallel>, #tpu.dimension_semantics<parallel>, #tpu.dimension_semantics<arbitrary>], iteration_bounds = array<i64: 1, 1, 1>, scalar_prefetch = 0 : i64, scratch_operands = 1 : i64, tpu.core_type = #tpu.core_type<tc>, window_params = [{transform_indices = @transform_0, window_bounds = array<i64: 16, 32>}, {transform_indices = @transform_1, window_bounds = array<i64: 32, 32>}, {transform_indices = @transform_2, window_bounds = array<i64: 1, 32>}, {transform_indices = @transform_3, window_bounds = array<i64: 16, 32>}, {transform_indices = @transform_4, window_bounds = array<i64: 1, 32>}, {transform_indices = @transform_5, window_bounds = array<i64: 1, 32>}, {transform_indices = @transform_6, window_bounds = array<i64: 16, 32>}]} {
    %c0_i32 = arith.constant 0 : i32
    %0 = arith.cmpi eq, %arg2, %c0_i32 : i32
    %1 = arith.extui %0 : i1 to i32
    %c0_i32_0 = arith.constant 0 : i32
    %2 = arith.cmpi ne, %1, %c0_i32_0 : i32
    scf.if %2 {
      %cst_10 = arith.constant 0.000000e+00 : f32
      %12 = vector.broadcast %cst_10 : f32 to vector<16x32xf32>
      %c0_11 = arith.constant 0 : index
      %c0_12 = arith.constant 0 : index
      %13 = vector.load %arg10[%c0_11, %c0_12] : memref<16x32xf32, #tpu.memory_space<vmem>>, vector<16x32xf32>
      tpu.vector_store %arg10[%c0_11, %c0_12], %12 {strides = array<i32>} : memref<16x32xf32, #tpu.memory_space<vmem>>, vector<16x32xf32>,
    } else {
    }
    %c0 = arith.constant 0 : index
    %c0_1 = arith.constant 0 : index
    %3 = vector.load %arg10[%c0, %c0_1] : memref<16x32xf32, #tpu.memory_space<vmem>>, vector<16x32xf32>
    %c0_2 = arith.constant 0 : index
    %c0_3 = arith.constant 0 : index
    %4 = vector.load %arg3[%c0_2, %c0_3] : memref<16x32xf32, #tpu.memory_space<vmem>>, vector<16x32xf32>
    %c0_4 = arith.constant 0 : index
    %c0_5 = arith.constant 0 : index
    %5 = vector.load %arg4[%c0_4, %c0_5] : memref<32x32xf32, #tpu.memory_space<vmem>>, vector<32x32xf32>
    %cst = arith.constant dense<0.000000e+00> : vector<16x32xf32>
    %6 = tpu.matmul %4, %5, %cst {dimension_numbers = #tpu.dot_dimension_numbers<[1], [0], [0], [1], [0, 0, 1, 1], [], []>} : vector<16x32xf32>, vector<32x32xf32>, vector<16x32xf32> -> vector<16x32xf32>
    %7 = arith.addf %3, %6 : vector<16x32xf32>
    %c0_6 = arith.constant 0 : index
    %c0_7 = arith.constant 0 : index
    %8 = vector.load %arg10[%c0_6, %c0_7] : memref<16x32xf32, #tpu.memory_space<vmem>>, vector<16x32xf32>
    tpu.vector_store %arg10[%c0_6, %c0_7], %7 {strides = array<i32>} : memref<16x32xf32, #tpu.memory_space<vmem>>, vector<16x32xf32>,
    %c0_i32_8 = arith.constant 0 : i32
    %9 = arith.cmpi eq, %arg2, %c0_i32_8 : i32
    %10 = arith.extui %9 : i1 to i32
    %c0_i32_9 = arith.constant 0 : i32
    %11 = arith.cmpi ne, %10, %c0_i32_9 : i32
    scf.if %11 {
      %c0_10 = arith.constant 0 : index
      %c0_11 = arith.constant 0 : index
      %12 = vector.load %arg10[%c0_10, %c0_11] : memref<16x32xf32, #tpu.memory_space<vmem>>, vector<16x32xf32>
      %c0_12 = arith.constant 0 : index
      %c0_13 = arith.constant 0 : index
      %13 = vector.load %arg5[%c0_12, %c0_13] : memref<1x32xf32, #tpu.memory_space<vmem>>, vector<1x32xf32>
      %14 = vector.broadcast %13 : vector<1x32xf32> to vector<16x32xf32>
      %15 = arith.addf %12, %14 : vector<16x32xf32>
      %c0_14 = arith.constant 0 : index
      %c0_15 = arith.constant 0 : index
      %16 = vector.load %arg6[%c0_14, %c0_15] : memref<16x32xf32, #tpu.memory_space<vmem>>, vector<16x32xf32>
      %17 = arith.addf %15, %16 : vector<16x32xf32>
      %cst_16 = arith.constant dense<0.000000e+00> : vector<16xf32>
      %18 = vector.multi_reduction <add>, %17, %cst_16 [1] : vector<16x32xf32> to vector<16xf32>
      %19 = vector.shape_cast %18 : vector<16xf32> to vector<16x1xf32>
      %cst_17 = arith.constant 3.200000e+01 : f32
      %20 = vector.broadcast %cst_17 : f32 to vector<16x1xf32>
      %21 = arith.divf %19, %20 : vector<16x1xf32>
      %22 = vector.broadcast %21 : vector<16x1xf32> to vector<16x32xf32>
      %23 = arith.subf %17, %22 : vector<16x32xf32>
      %24 = arith.mulf %23, %23 : vector<16x32xf32>
      %cst_18 = arith.constant dense<0.000000e+00> : vector<16xf32>
      %25 = vector.multi_reduction <add>, %24, %cst_18 [1] : vector<16x32xf32> to vector<16xf32>
      %26 = vector.shape_cast %25 : vector<16xf32> to vector<16x1xf32>
      %cst_19 = arith.constant 3.200000e+01 : f32
      %27 = vector.broadcast %cst_19 : f32 to vector<16x1xf32>
      %28 = arith.divf %26, %27 : vector<16x1xf32>
      %cst_20 = arith.constant 9.99999974E-6 : f32
      %29 = vector.broadcast %cst_20 : f32 to vector<16x1xf32>
      %30 = arith.addf %28, %29 : vector<16x1xf32>
      %31 = math.rsqrt %30 : vector<16x1xf32>
      %32 = vector.broadcast %31 : vector<16x1xf32> to vector<16x32xf32>
      %33 = arith.mulf %23, %32 : vector<16x32xf32>
      %c0_21 = arith.constant 0 : index
      %c0_22 = arith.constant 0 : index
      %34 = vector.load %arg7[%c0_21, %c0_22] : memref<1x32xf32, #tpu.memory_space<vmem>>, vector<1x32xf32>
      %35 = vector.broadcast %34 : vector<1x32xf32> to vector<16x32xf32>
      %36 = arith.mulf %33, %35 : vector<16x32xf32>
      %c0_23 = arith.constant 0 : index
      %c0_24 = arith.constant 0 : index
      %37 = vector.load %arg8[%c0_23, %c0_24] : memref<1x32xf32, #tpu.memory_space<vmem>>, vector<1x32xf32>
      %38 = vector.broadcast %37 : vector<1x32xf32> to vector<16x32xf32>
      %39 = arith.addf %36, %38 : vector<16x32xf32>
      %c0_25 = arith.constant 0 : index
      %c0_26 = arith.constant 0 : index
      %40 = vector.load %arg9[%c0_25, %c0_26] : memref<16x32xf32, #tpu.memory_space<vmem>>, vector<16x32xf32>
      tpu.vector_store %arg9[%c0_25, %c0_26], %39 {strides = array<i32>} : memref<16x32xf32, #tpu.memory_space<vmem>>, vector<16x32xf32>,
    } else {
    }
    return
  }
  func.func @transform_0(%arg0: i32, %arg1: i32, %arg2: i32) -> (i32, i32) {
    %c0_i32 = arith.constant 0 : i32
    return %arg0, %arg2 : i32, i32
  }
  func.func @transform_1(%arg0: i32, %arg1: i32, %arg2: i32) -> (i32, i32) {
    %c0_i32 = arith.constant 0 : i32
    return %arg2, %arg1 : i32, i32
  }
  func.func @transform_2(%arg0: i32, %arg1: i32, %arg2: i32) -> (i32, i32) {
    %c0_i32 = arith.constant 0 : i32
    %c0_i32_0 = arith.constant 0 : i32
    return %c0_i32, %arg1 : i32, i32
  }
  func.func @transform_3(%arg0: i32, %arg1: i32, %arg2: i32) -> (i32, i32) {
    %c0_i32 = arith.constant 0 : i32
    return %arg0, %arg1 : i32, i32
  }
  func.func @transform_4(%arg0: i32, %arg1: i32, %arg2: i32) -> (i32, i32) {
    %c0_i32 = arith.constant 0 : i32
    %c0_i32_0 = arith.constant 0 : i32
    return %c0_i32, %arg1 : i32, i32
  }
  func.func @transform_5(%arg0: i32, %arg1: i32, %arg2: i32) -> (i32, i32) {
    %c0_i32 = arith.constant 0 : i32
    %c0_i32_0 = arith.constant 0 : i32
    return %c0_i32, %arg1 : i32, i32
  }
  func.func @transform_6(%arg0: i32, %arg1: i32, %arg2: i32) -> (i32, i32) {
    %c0_i32 = arith.constant 0 : i32
    return %arg0, %arg1 : i32, i32
  }
}

module attributes {stable_mosaic.version = 11 : i64} {
  func.func @_linear_kernel(%arg0: i32, %arg1: i32, %arg2: i32, %arg3: memref<16x32xf32, #tpu.memory_space<vmem>>, %arg4: memref<32x512xf32, #tpu.memory_space<vmem>>, %arg5: memref<1x512xf32, #tpu.memory_space<vmem>>, %arg6: memref<16x512xf32, #tpu.memory_space<vmem>>, %arg7: memref<16x512xf32, #tpu.memory_space<vmem>>) attributes {dimension_semantics = [#tpu.dimension_semantics<parallel>, #tpu.dimension_semantics<parallel>, #tpu.dimension_semantics<arbitrary>], iteration_bounds = array<i64: 1, 4, 1>, scalar_prefetch = 0 : i64, scratch_operands = 1 : i64, tpu.core_type = #tpu.core_type<tc>, window_params = [{transform_indices = @transform_0, window_bounds = array<i64: 16, 32>}, {transform_indices = @transform_1, window_bounds = array<i64: 32, 512>}, {transform_indices = @transform_2, window_bounds = array<i64: 1, 512>}, {transform_indices = @transform_3, window_bounds = array<i64: 16, 512>}]} {
    %c0_i32 = arith.constant 0 : i32
    %0 = arith.cmpi eq, %arg2, %c0_i32 : i32
    %1 = arith.extui %0 : i1 to i32
    %c0_i32_0 = arith.constant 0 : i32
    %2 = arith.cmpi ne, %1, %c0_i32_0 : i32
    scf.if %2 {
      %cst_10 = arith.constant 0.000000e+00 : f32
      %12 = vector.broadcast %cst_10 : f32 to vector<16x512xf32>
      %c0_11 = arith.constant 0 : index
      %c0_12 = arith.constant 0 : index
      %13 = vector.load %arg7[%c0_11, %c0_12] : memref<16x512xf32, #tpu.memory_space<vmem>>, vector<16x512xf32>
      tpu.vector_store %arg7[%c0_11, %c0_12], %12 {strides = array<i32>} : memref<16x512xf32, #tpu.memory_space<vmem>>, vector<16x512xf32>,
    } else {
    }
    %c0 = arith.constant 0 : index
    %c0_1 = arith.constant 0 : index
    %3 = vector.load %arg7[%c0, %c0_1] : memref<16x512xf32, #tpu.memory_space<vmem>>, vector<16x512xf32>
    %c0_2 = arith.constant 0 : index
    %c0_3 = arith.constant 0 : index
    %4 = vector.load %arg3[%c0_2, %c0_3] : memref<16x32xf32, #tpu.memory_space<vmem>>, vector<16x32xf32>
    %c0_4 = arith.constant 0 : index
    %c0_5 = arith.constant 0 : index
    %5 = vector.load %arg4[%c0_4, %c0_5] : memref<32x512xf32, #tpu.memory_space<vmem>>, vector<32x512xf32>
    %cst = arith.constant dense<0.000000e+00> : vector<16x512xf32>
    %6 = tpu.matmul %4, %5, %cst {dimension_numbers = #tpu.dot_dimension_numbers<[1], [0], [0], [1], [0, 0, 1, 1], [], []>} : vector<16x32xf32>, vector<32x512xf32>, vector<16x512xf32> -> vector<16x512xf32>
    %7 = arith.addf %3, %6 : vector<16x512xf32>
    %c0_6 = arith.constant 0 : index
    %c0_7 = arith.constant 0 : index
    %8 = vector.load %arg7[%c0_6, %c0_7] : memref<16x512xf32, #tpu.memory_space<vmem>>, vector<16x512xf32>
    tpu.vector_store %arg7[%c0_6, %c0_7], %7 {strides = array<i32>} : memref<16x512xf32, #tpu.memory_space<vmem>>, vector<16x512xf32>,
    %c0_i32_8 = arith.constant 0 : i32
    %9 = arith.cmpi eq, %arg2, %c0_i32_8 : i32
    %10 = arith.extui %9 : i1 to i32
    %c0_i32_9 = arith.constant 0 : i32
    %11 = arith.cmpi ne, %10, %c0_i32_9 : i32
    scf.if %11 {
      %c0_10 = arith.constant 0 : index
      %c0_11 = arith.constant 0 : index
      %12 = vector.load %arg7[%c0_10, %c0_11] : memref<16x512xf32, #tpu.memory_space<vmem>>, vector<16x512xf32>
      %c0_12 = arith.constant 0 : index
      %c0_13 = arith.constant 0 : index
      %13 = vector.load %arg5[%c0_12, %c0_13] : memref<1x512xf32, #tpu.memory_space<vmem>>, vector<1x512xf32>
      %14 = vector.broadcast %13 : vector<1x512xf32> to vector<16x512xf32>
      %15 = arith.addf %12, %14 : vector<16x512xf32>
      %cst_14 = arith.constant 0.000000e+00 : f32
      %16 = vector.broadcast %cst_14 : f32 to vector<16x512xf32>
      %17 = arith.maximumf %15, %16 : vector<16x512xf32>
      %c0_15 = arith.constant 0 : index
      %c0_16 = arith.constant 0 : index
      %18 = vector.load %arg6[%c0_15, %c0_16] : memref<16x512xf32, #tpu.memory_space<vmem>>, vector<16x512xf32>
      tpu.vector_store %arg6[%c0_15, %c0_16], %17 {strides = array<i32>} : memref<16x512xf32, #tpu.memory_space<vmem>>, vector<16x512xf32>,
    } else {
    }
    return
  }
  func.func @transform_0(%arg0: i32, %arg1: i32, %arg2: i32) -> (i32, i32) {
    %c0_i32 = arith.constant 0 : i32
    return %arg0, %arg2 : i32, i32
  }
  func.func @transform_1(%arg0: i32, %arg1: i32, %arg2: i32) -> (i32, i32) {
    %c0_i32 = arith.constant 0 : i32
    return %arg2, %arg1 : i32, i32
  }
  func.func @transform_2(%arg0: i32, %arg1: i32, %arg2: i32) -> (i32, i32) {
    %c0_i32 = arith.constant 0 : i32
    %c0_i32_0 = arith.constant 0 : i32
    return %c0_i32, %arg1 : i32, i32
  }
  func.func @transform_3(%arg0: i32, %arg1: i32, %arg2: i32) -> (i32, i32) {
    %c0_i32 = arith.constant 0 : i32
    return %arg0, %arg1 : i32, i32
  }
}

module attributes {stable_mosaic.version = 11 : i64} {
  func.func @_linear_kernel(%arg0: i32, %arg1: i32, %arg2: i32, %arg3: memref<16x512xf32, #tpu.memory_space<vmem>>, %arg4: memref<512x32xf32, #tpu.memory_space<vmem>>, %arg5: memref<1x32xf32, #tpu.memory_space<vmem>>, %arg6: memref<16x32xf32, #tpu.memory_space<vmem>>, %arg7: memref<1x32xf32, #tpu.memory_space<vmem>>, %arg8: memref<1x32xf32, #tpu.memory_space<vmem>>, %arg9: memref<16x32xf32, #tpu.memory_space<vmem>>, %arg10: memref<16x32xf32, #tpu.memory_space<vmem>>) attributes {dimension_semantics = [#tpu.dimension_semantics<parallel>, #tpu.dimension_semantics<parallel>, #tpu.dimension_semantics<arbitrary>], iteration_bounds = array<i64: 1, 1, 4>, scalar_prefetch = 0 : i64, scratch_operands = 1 : i64, tpu.core_type = #tpu.core_type<tc>, window_params = [{transform_indices = @transform_0, window_bounds = array<i64: 16, 512>}, {transform_indices = @transform_1, window_bounds = array<i64: 512, 32>}, {transform_indices = @transform_2, window_bounds = array<i64: 1, 32>}, {transform_indices = @transform_3, window_bounds = array<i64: 16, 32>}, {transform_indices = @transform_4, window_bounds = array<i64: 1, 32>}, {transform_indices = @transform_5, window_bounds = array<i64: 1, 32>}, {transform_indices = @transform_6, window_bounds = array<i64: 16, 32>}]} {
    %c0_i32 = arith.constant 0 : i32
    %0 = arith.cmpi eq, %arg2, %c0_i32 : i32
    %1 = arith.extui %0 : i1 to i32
    %c0_i32_0 = arith.constant 0 : i32
    %2 = arith.cmpi ne, %1, %c0_i32_0 : i32
    scf.if %2 {
      %cst_9 = arith.constant 0.000000e+00 : f32
      %12 = vector.broadcast %cst_9 : f32 to vector<16x32xf32>
      %c0_10 = arith.constant 0 : index
      %c0_11 = arith.constant 0 : index
      %13 = vector.load %arg10[%c0_10, %c0_11] : memref<16x32xf32, #tpu.memory_space<vmem>>, vector<16x32xf32>
      tpu.vector_store %arg10[%c0_10, %c0_11], %12 {strides = array<i32>} : memref<16x32xf32, #tpu.memory_space<vmem>>, vector<16x32xf32>,
    } else {
    }
    %c0 = arith.constant 0 : index
    %c0_1 = arith.constant 0 : index
    %3 = vector.load %arg10[%c0, %c0_1] : memref<16x32xf32, #tpu.memory_space<vmem>>, vector<16x32xf32>
    %c0_2 = arith.constant 0 : index
    %c0_3 = arith.constant 0 : index
    %4 = vector.load %arg3[%c0_2, %c0_3] : memref<16x512xf32, #tpu.memory_space<vmem>>, vector<16x512xf32>
    %c0_4 = arith.constant 0 : index
    %c0_5 = arith.constant 0 : index
    %5 = vector.load %arg4[%c0_4, %c0_5] : memref<512x32xf32, #tpu.memory_space<vmem>>, vector<512x32xf32>
    %cst = arith.constant dense<0.000000e+00> : vector<16x32xf32>
    %6 = tpu.matmul %4, %5, %cst {dimension_numbers = #tpu.dot_dimension_numbers<[1], [0], [0], [1], [0, 0, 1, 1], [], []>} : vector<16x512xf32>, vector<512x32xf32>, vector<16x32xf32> -> vector<16x32xf32>
    %7 = arith.addf %3, %6 : vector<16x32xf32>
    %c0_6 = arith.constant 0 : index
    %c0_7 = arith.constant 0 : index
    %8 = vector.load %arg10[%c0_6, %c0_7] : memref<16x32xf32, #tpu.memory_space<vmem>>, vector<16x32xf32>
    tpu.vector_store %arg10[%c0_6, %c0_7], %7 {strides = array<i32>} : memref<16x32xf32, #tpu.memory_space<vmem>>, vector<16x32xf32>,
    %c3_i32 = arith.constant 3 : i32
    %9 = arith.cmpi eq, %arg2, %c3_i32 : i32
    %10 = arith.extui %9 : i1 to i32
    %c0_i32_8 = arith.constant 0 : i32
    %11 = arith.cmpi ne, %10, %c0_i32_8 : i32
    scf.if %11 {
      %c0_9 = arith.constant 0 : index
      %c0_10 = arith.constant 0 : index
      %12 = vector.load %arg10[%c0_9, %c0_10] : memref<16x32xf32, #tpu.memory_space<vmem>>, vector<16x32xf32>
      %c0_11 = arith.constant 0 : index
      %c0_12 = arith.constant 0 : index
      %13 = vector.load %arg5[%c0_11, %c0_12] : memref<1x32xf32, #tpu.memory_space<vmem>>, vector<1x32xf32>
      %14 = vector.broadcast %13 : vector<1x32xf32> to vector<16x32xf32>
      %15 = arith.addf %12, %14 : vector<16x32xf32>
      %c0_13 = arith.constant 0 : index
      %c0_14 = arith.constant 0 : index
      %16 = vector.load %arg6[%c0_13, %c0_14] : memref<16x32xf32, #tpu.memory_space<vmem>>, vector<16x32xf32>
      %17 = arith.addf %15, %16 : vector<16x32xf32>
      %cst_15 = arith.constant dense<0.000000e+00> : vector<16xf32>
      %18 = vector.multi_reduction <add>, %17, %cst_15 [1] : vector<16x32xf32> to vector<16xf32>
      %19 = vector.shape_cast %18 : vector<16xf32> to vector<16x1xf32>
      %cst_16 = arith.constant 3.200000e+01 : f32
      %20 = vector.broadcast %cst_16 : f32 to vector<16x1xf32>
      %21 = arith.divf %19, %20 : vector<16x1xf32>
      %22 = vector.broadcast %21 : vector<16x1xf32> to vector<16x32xf32>
      %23 = arith.subf %17, %22 : vector<16x32xf32>
      %24 = arith.mulf %23, %23 : vector<16x32xf32>
      %cst_17 = arith.constant dense<0.000000e+00> : vector<16xf32>
      %25 = vector.multi_reduction <add>, %24, %cst_17 [1] : vector<16x32xf32> to vector<16xf32>
      %26 = vector.shape_cast %25 : vector<16xf32> to vector<16x1xf32>
      %cst_18 = arith.constant 3.200000e+01 : f32
      %27 = vector.broadcast %cst_18 : f32 to vector<16x1xf32>
      %28 = arith.divf %26, %27 : vector<16x1xf32>
      %cst_19 = arith.constant 9.99999974E-6 : f32
      %29 = vector.broadcast %cst_19 : f32 to vector<16x1xf32>
      %30 = arith.addf %28, %29 : vector<16x1xf32>
      %31 = math.rsqrt %30 : vector<16x1xf32>
      %32 = vector.broadcast %31 : vector<16x1xf32> to vector<16x32xf32>
      %33 = arith.mulf %23, %32 : vector<16x32xf32>
      %c0_20 = arith.constant 0 : index
      %c0_21 = arith.constant 0 : index
      %34 = vector.load %arg7[%c0_20, %c0_21] : memref<1x32xf32, #tpu.memory_space<vmem>>, vector<1x32xf32>
      %35 = vector.broadcast %34 : vector<1x32xf32> to vector<16x32xf32>
      %36 = arith.mulf %33, %35 : vector<16x32xf32>
      %c0_22 = arith.constant 0 : index
      %c0_23 = arith.constant 0 : index
      %37 = vector.load %arg8[%c0_22, %c0_23] : memref<1x32xf32, #tpu.memory_space<vmem>>, vector<1x32xf32>
      %38 = vector.broadcast %37 : vector<1x32xf32> to vector<16x32xf32>
      %39 = arith.addf %36, %38 : vector<16x32xf32>
      %c0_24 = arith.constant 0 : index
      %c0_25 = arith.constant 0 : index
      %40 = vector.load %arg9[%c0_24, %c0_25] : memref<16x32xf32, #tpu.memory_space<vmem>>, vector<16x32xf32>
      tpu.vector_store %arg9[%c0_24, %c0_25], %39 {strides = array<i32>} : memref<16x32xf32, #tpu.memory_space<vmem>>, vector<16x32xf32>,
    } else {
    }
    return
  }
  func.func @transform_0(%arg0: i32, %arg1: i32, %arg2: i32) -> (i32, i32) {
    %c0_i32 = arith.constant 0 : i32
    return %arg0, %arg2 : i32, i32
  }
  func.func @transform_1(%arg0: i32, %arg1: i32, %arg2: i32) -> (i32, i32) {
    %c0_i32 = arith.constant 0 : i32
    return %arg2, %arg1 : i32, i32
  }
  func.func @transform_2(%arg0: i32, %arg1: i32, %arg2: i32) -> (i32, i32) {
    %c0_i32 = arith.constant 0 : i32
    %c0_i32_0 = arith.constant 0 : i32
    return %c0_i32, %arg1 : i32, i32
  }
  func.func @transform_3(%arg0: i32, %arg1: i32, %arg2: i32) -> (i32, i32) {
    %c0_i32 = arith.constant 0 : i32
    return %arg0, %arg1 : i32, i32
  }
  func.func @transform_4(%arg0: i32, %arg1: i32, %arg2: i32) -> (i32, i32) {
    %c0_i32 = arith.constant 0 : i32
    %c0_i32_0 = arith.constant 0 : i32
    return %c0_i32, %arg1 : i32, i32
  }
  func.func @transform_5(%arg0: i32, %arg1: i32, %arg2: i32) -> (i32, i32) {
    %c0_i32 = arith.constant 0 : i32
    %c0_i32_0 = arith.constant 0 : i32
    return %c0_i32, %arg1 : i32, i32
  }
  func.func @transform_6(%arg0: i32, %arg1: i32, %arg2: i32) -> (i32, i32) {
    %c0_i32 = arith.constant 0 : i32
    return %arg0, %arg1 : i32, i32
  }
}

module attributes {stable_mosaic.version = 11 : i64} {
  func.func @_linear_kernel(%arg0: i32, %arg1: i32, %arg2: i32, %arg3: memref<16x32xf32, #tpu.memory_space<vmem>>, %arg4: memref<32x512xf32, #tpu.memory_space<vmem>>, %arg5: memref<1x512xf32, #tpu.memory_space<vmem>>, %arg6: memref<16x512xf32, #tpu.memory_space<vmem>>, %arg7: memref<16x512xf32, #tpu.memory_space<vmem>>) attributes {dimension_semantics = [#tpu.dimension_semantics<parallel>, #tpu.dimension_semantics<parallel>, #tpu.dimension_semantics<arbitrary>], iteration_bounds = array<i64: 1, 4, 1>, scalar_prefetch = 0 : i64, scratch_operands = 1 : i64, tpu.core_type = #tpu.core_type<tc>, window_params = [{transform_indices = @transform_0, window_bounds = array<i64: 16, 32>}, {transform_indices = @transform_1, window_bounds = array<i64: 32, 512>}, {transform_indices = @transform_2, window_bounds = array<i64: 1, 512>}, {transform_indices = @transform_3, window_bounds = array<i64: 16, 512>}]} {
    %c0_i32 = arith.constant 0 : i32
    %0 = arith.cmpi eq, %arg2, %c0_i32 : i32
    %1 = arith.extui %0 : i1 to i32
    %c0_i32_0 = arith.constant 0 : i32
    %2 = arith.cmpi ne, %1, %c0_i32_0 : i32
    scf.if %2 {
      %cst_10 = arith.constant 0.000000e+00 : f32
      %12 = vector.broadcast %cst_10 : f32 to vector<16x512xf32>
      %c0_11 = arith.constant 0 : index
      %c0_12 = arith.constant 0 : index
      %13 = vector.load %arg7[%c0_11, %c0_12] : memref<16x512xf32, #tpu.memory_space<vmem>>, vector<16x512xf32>
      tpu.vector_store %arg7[%c0_11, %c0_12], %12 {strides = array<i32>} : memref<16x512xf32, #tpu.memory_space<vmem>>, vector<16x512xf32>,
    } else {
    }
    %c0 = arith.constant 0 : index
    %c0_1 = arith.constant 0 : index
    %3 = vector.load %arg7[%c0, %c0_1] : memref<16x512xf32, #tpu.memory_space<vmem>>, vector<16x512xf32>
    %c0_2 = arith.constant 0 : index
    %c0_3 = arith.constant 0 : index
    %4 = vector.load %arg3[%c0_2, %c0_3] : memref<16x32xf32, #tpu.memory_space<vmem>>, vector<16x32xf32>
    %c0_4 = arith.constant 0 : index
    %c0_5 = arith.constant 0 : index
    %5 = vector.load %arg4[%c0_4, %c0_5] : memref<32x512xf32, #tpu.memory_space<vmem>>, vector<32x512xf32>
    %cst = arith.constant dense<0.000000e+00> : vector<16x512xf32>
    %6 = tpu.matmul %4, %5, %cst {dimension_numbers = #tpu.dot_dimension_numbers<[1], [0], [0], [1], [0, 0, 1, 1], [], []>} : vector<16x32xf32>, vector<32x512xf32>, vector<16x512xf32> -> vector<16x512xf32>
    %7 = arith.addf %3, %6 : vector<16x512xf32>
    %c0_6 = arith.constant 0 : index
    %c0_7 = arith.constant 0 : index
    %8 = vector.load %arg7[%c0_6, %c0_7] : memref<16x512xf32, #tpu.memory_space<vmem>>, vector<16x512xf32>
    tpu.vector_store %arg7[%c0_6, %c0_7], %7 {strides = array<i32>} : memref<16x512xf32, #tpu.memory_space<vmem>>, vector<16x512xf32>,
    %c0_i32_8 = arith.constant 0 : i32
    %9 = arith.cmpi eq, %arg2, %c0_i32_8 : i32
    %10 = arith.extui %9 : i1 to i32
    %c0_i32_9 = arith.constant 0 : i32
    %11 = arith.cmpi ne, %10, %c0_i32_9 : i32
    scf.if %11 {
      %c0_10 = arith.constant 0 : index
      %c0_11 = arith.constant 0 : index
      %12 = vector.load %arg7[%c0_10, %c0_11] : memref<16x512xf32, #tpu.memory_space<vmem>>, vector<16x512xf32>
      %c0_12 = arith.constant 0 : index
      %c0_13 = arith.constant 0 : index
      %13 = vector.load %arg5[%c0_12, %c0_13] : memref<1x512xf32, #tpu.memory_space<vmem>>, vector<1x512xf32>
      %14 = vector.broadcast %13 : vector<1x512xf32> to vector<16x512xf32>
      %15 = arith.addf %12, %14 : vector<16x512xf32>
      %cst_14 = arith.constant 0.000000e+00 : f32
      %16 = vector.broadcast %cst_14 : f32 to vector<16x512xf32>
      %17 = arith.maximumf %15, %16 : vector<16x512xf32>
      %c0_15 = arith.constant 0 : index
      %c0_16 = arith.constant 0 : index
      %18 = vector.load %arg6[%c0_15, %c0_16] : memref<16x512xf32, #tpu.memory_space<vmem>>, vector<16x512xf32>
      tpu.vector_store %arg6[%c0_15, %c0_16], %17 {strides = array<i32>} : memref<16x512xf32, #tpu.memory_space<vmem>>, vector<16x512xf32>,
    } else {
    }
    return
  }
  func.func @transform_0(%arg0: i32, %arg1: i32, %arg2: i32) -> (i32, i32) {
    %c0_i32 = arith.constant 0 : i32
    return %arg0, %arg2 : i32, i32
  }
  func.func @transform_1(%arg0: i32, %arg1: i32, %arg2: i32) -> (i32, i32) {
    %c0_i32 = arith.constant 0 : i32
    return %arg2, %arg1 : i32, i32
  }
  func.func @transform_2(%arg0: i32, %arg1: i32, %arg2: i32) -> (i32, i32) {
    %c0_i32 = arith.constant 0 : i32
    %c0_i32_0 = arith.constant 0 : i32
    return %c0_i32, %arg1 : i32, i32
  }
  func.func @transform_3(%arg0: i32, %arg1: i32, %arg2: i32) -> (i32, i32) {
    %c0_i32 = arith.constant 0 : i32
    return %arg0, %arg1 : i32, i32
  }
}

module attributes {stable_mosaic.version = 11 : i64} {
  func.func @_linear_kernel(%arg0: i32, %arg1: i32, %arg2: i32, %arg3: memref<16x32xf32, #tpu.memory_space<vmem>>, %arg4: memref<32x64xf32, #tpu.memory_space<vmem>>, %arg5: memref<1x64xf32, #tpu.memory_space<vmem>>, %arg6: memref<16x64xf32, #tpu.memory_space<vmem>>, %arg7: memref<16x64xf32, #tpu.memory_space<vmem>>) attributes {dimension_semantics = [#tpu.dimension_semantics<parallel>, #tpu.dimension_semantics<parallel>, #tpu.dimension_semantics<arbitrary>], iteration_bounds = array<i64: 1, 1, 1>, scalar_prefetch = 0 : i64, scratch_operands = 1 : i64, tpu.core_type = #tpu.core_type<tc>, window_params = [{transform_indices = @transform_0, window_bounds = array<i64: 16, 32>}, {transform_indices = @transform_1, window_bounds = array<i64: 32, 64>}, {transform_indices = @transform_2, window_bounds = array<i64: 1, 64>}, {transform_indices = @transform_3, window_bounds = array<i64: 16, 64>}]} {
    %c0_i32 = arith.constant 0 : i32
    %0 = arith.cmpi eq, %arg2, %c0_i32 : i32
    %1 = arith.extui %0 : i1 to i32
    %c0_i32_0 = arith.constant 0 : i32
    %2 = arith.cmpi ne, %1, %c0_i32_0 : i32
    scf.if %2 {
      %cst_10 = arith.constant 0.000000e+00 : f32
      %12 = vector.broadcast %cst_10 : f32 to vector<16x64xf32>
      %c0_11 = arith.constant 0 : index
      %c0_12 = arith.constant 0 : index
      %13 = vector.load %arg7[%c0_11, %c0_12] : memref<16x64xf32, #tpu.memory_space<vmem>>, vector<16x64xf32>
      tpu.vector_store %arg7[%c0_11, %c0_12], %12 {strides = array<i32>} : memref<16x64xf32, #tpu.memory_space<vmem>>, vector<16x64xf32>,
    } else {
    }
    %c0 = arith.constant 0 : index
    %c0_1 = arith.constant 0 : index
    %3 = vector.load %arg7[%c0, %c0_1] : memref<16x64xf32, #tpu.memory_space<vmem>>, vector<16x64xf32>
    %c0_2 = arith.constant 0 : index
    %c0_3 = arith.constant 0 : index
    %4 = vector.load %arg3[%c0_2, %c0_3] : memref<16x32xf32, #tpu.memory_space<vmem>>, vector<16x32xf32>
    %c0_4 = arith.constant 0 : index
    %c0_5 = arith.constant 0 : index
    %5 = vector.load %arg4[%c0_4, %c0_5] : memref<32x64xf32, #tpu.memory_space<vmem>>, vector<32x64xf32>
    %cst = arith.constant dense<0.000000e+00> : vector<16x64xf32>
    %6 = tpu.matmul %4, %5, %cst {dimension_numbers = #tpu.dot_dimension_numbers<[1], [0], [0], [1], [0, 0, 1, 1], [], []>} : vector<16x32xf32>, vector<32x64xf32>, vector<16x64xf32> -> vector<16x64xf32>
    %7 = arith.addf %3, %6 : vector<16x64xf32>
    %c0_6 = arith.constant 0 : index
    %c0_7 = arith.constant 0 : index
    %8 = vector.load %arg7[%c0_6, %c0_7] : memref<16x64xf32, #tpu.memory_space<vmem>>, vector<16x64xf32>
    tpu.vector_store %arg7[%c0_6, %c0_7], %7 {strides = array<i32>} : memref<16x64xf32, #tpu.memory_space<vmem>>, vector<16x64xf32>,
    %c0_i32_8 = arith.constant 0 : i32
    %9 = arith.cmpi eq, %arg2, %c0_i32_8 : i32
    %10 = arith.extui %9 : i1 to i32
    %c0_i32_9 = arith.constant 0 : i32
    %11 = arith.cmpi ne, %10, %c0_i32_9 : i32
    scf.if %11 {
      %c0_10 = arith.constant 0 : index
      %c0_11 = arith.constant 0 : index
      %12 = vector.load %arg7[%c0_10, %c0_11] : memref<16x64xf32, #tpu.memory_space<vmem>>, vector<16x64xf32>
      %c0_12 = arith.constant 0 : index
      %c0_13 = arith.constant 0 : index
      %13 = vector.load %arg5[%c0_12, %c0_13] : memref<1x64xf32, #tpu.memory_space<vmem>>, vector<1x64xf32>
      %14 = vector.broadcast %13 : vector<1x64xf32> to vector<16x64xf32>
      %15 = arith.addf %12, %14 : vector<16x64xf32>
      %c0_14 = arith.constant 0 : index
      %c0_15 = arith.constant 0 : index
      %16 = vector.load %arg6[%c0_14, %c0_15] : memref<16x64xf32, #tpu.memory_space<vmem>>, vector<16x64xf32>
      tpu.vector_store %arg6[%c0_14, %c0_15], %15 {strides = array<i32>} : memref<16x64xf32, #tpu.memory_space<vmem>>, vector<16x64xf32>,
    } else {
    }
    return
  }
  func.func @transform_0(%arg0: i32, %arg1: i32, %arg2: i32) -> (i32, i32) {
    %c0_i32 = arith.constant 0 : i32
    return %arg0, %arg2 : i32, i32
  }
  func.func @transform_1(%arg0: i32, %arg1: i32, %arg2: i32) -> (i32, i32) {
    %c0_i32 = arith.constant 0 : i32
    return %arg2, %arg1 : i32, i32
  }
  func.func @transform_2(%arg0: i32, %arg1: i32, %arg2: i32) -> (i32, i32) {
    %c0_i32 = arith.constant 0 : i32
    %c0_i32_0 = arith.constant 0 : i32
    return %c0_i32, %arg1 : i32, i32
  }
  func.func @transform_3(%arg0: i32, %arg1: i32, %arg2: i32) -> (i32, i32) {
    %c0_i32 = arith.constant 0 : i32
    return %arg0, %arg1 : i32, i32
  }
}

module attributes {stable_mosaic.version = 11 : i64} {
  func.func @_linear_kernel(%arg0: i32, %arg1: i32, %arg2: i32, %arg3: memref<16x32xf32, #tpu.memory_space<vmem>>, %arg4: memref<32x32xf32, #tpu.memory_space<vmem>>, %arg5: memref<1x32xf32, #tpu.memory_space<vmem>>, %arg6: memref<16x32xf32, #tpu.memory_space<vmem>>, %arg7: memref<16x32xf32, #tpu.memory_space<vmem>>) attributes {dimension_semantics = [#tpu.dimension_semantics<parallel>, #tpu.dimension_semantics<parallel>, #tpu.dimension_semantics<arbitrary>], iteration_bounds = array<i64: 1, 1, 1>, scalar_prefetch = 0 : i64, scratch_operands = 1 : i64, tpu.core_type = #tpu.core_type<tc>, window_params = [{transform_indices = @transform_0, window_bounds = array<i64: 16, 32>}, {transform_indices = @transform_1, window_bounds = array<i64: 32, 32>}, {transform_indices = @transform_2, window_bounds = array<i64: 1, 32>}, {transform_indices = @transform_3, window_bounds = array<i64: 16, 32>}]} {
    %c0_i32 = arith.constant 0 : i32
    %0 = arith.cmpi eq, %arg2, %c0_i32 : i32
    %1 = arith.extui %0 : i1 to i32
    %c0_i32_0 = arith.constant 0 : i32
    %2 = arith.cmpi ne, %1, %c0_i32_0 : i32
    scf.if %2 {
      %cst_10 = arith.constant 0.000000e+00 : f32
      %12 = vector.broadcast %cst_10 : f32 to vector<16x32xf32>
      %c0_11 = arith.constant 0 : index
      %c0_12 = arith.constant 0 : index
      %13 = vector.load %arg7[%c0_11, %c0_12] : memref<16x32xf32, #tpu.memory_space<vmem>>, vector<16x32xf32>
      tpu.vector_store %arg7[%c0_11, %c0_12], %12 {strides = array<i32>} : memref<16x32xf32, #tpu.memory_space<vmem>>, vector<16x32xf32>,
    } else {
    }
    %c0 = arith.constant 0 : index
    %c0_1 = arith.constant 0 : index
    %3 = vector.load %arg7[%c0, %c0_1] : memref<16x32xf32, #tpu.memory_space<vmem>>, vector<16x32xf32>
    %c0_2 = arith.constant 0 : index
    %c0_3 = arith.constant 0 : index
    %4 = vector.load %arg3[%c0_2, %c0_3] : memref<16x32xf32, #tpu.memory_space<vmem>>, vector<16x32xf32>
    %c0_4 = arith.constant 0 : index
    %c0_5 = arith.constant 0 : index
    %5 = vector.load %arg4[%c0_4, %c0_5] : memref<32x32xf32, #tpu.memory_space<vmem>>, vector<32x32xf32>
    %cst = arith.constant dense<0.000000e+00> : vector<16x32xf32>
    %6 = tpu.matmul %4, %5, %cst {dimension_numbers = #tpu.dot_dimension_numbers<[1], [0], [0], [1], [0, 0, 1, 1], [], []>} : vector<16x32xf32>, vector<32x32xf32>, vector<16x32xf32> -> vector<16x32xf32>
    %7 = arith.addf %3, %6 : vector<16x32xf32>
    %c0_6 = arith.constant 0 : index
    %c0_7 = arith.constant 0 : index
    %8 = vector.load %arg7[%c0_6, %c0_7] : memref<16x32xf32, #tpu.memory_space<vmem>>, vector<16x32xf32>
    tpu.vector_store %arg7[%c0_6, %c0_7], %7 {strides = array<i32>} : memref<16x32xf32, #tpu.memory_space<vmem>>, vector<16x32xf32>,
    %c0_i32_8 = arith.constant 0 : i32
    %9 = arith.cmpi eq, %arg2, %c0_i32_8 : i32
    %10 = arith.extui %9 : i1 to i32
    %c0_i32_9 = arith.constant 0 : i32
    %11 = arith.cmpi ne, %10, %c0_i32_9 : i32
    scf.if %11 {
      %c0_10 = arith.constant 0 : index
      %c0_11 = arith.constant 0 : index
      %12 = vector.load %arg7[%c0_10, %c0_11] : memref<16x32xf32, #tpu.memory_space<vmem>>, vector<16x32xf32>
      %c0_12 = arith.constant 0 : index
      %c0_13 = arith.constant 0 : index
      %13 = vector.load %arg5[%c0_12, %c0_13] : memref<1x32xf32, #tpu.memory_space<vmem>>, vector<1x32xf32>
      %14 = vector.broadcast %13 : vector<1x32xf32> to vector<16x32xf32>
      %15 = arith.addf %12, %14 : vector<16x32xf32>
      %c0_14 = arith.constant 0 : index
      %c0_15 = arith.constant 0 : index
      %16 = vector.load %arg6[%c0_14, %c0_15] : memref<16x32xf32, #tpu.memory_space<vmem>>, vector<16x32xf32>
      tpu.vector_store %arg6[%c0_14, %c0_15], %15 {strides = array<i32>} : memref<16x32xf32, #tpu.memory_space<vmem>>, vector<16x32xf32>,
    } else {
    }
    return
  }
  func.func @transform_0(%arg0: i32, %arg1: i32, %arg2: i32) -> (i32, i32) {
    %c0_i32 = arith.constant 0 : i32
    return %arg0, %arg2 : i32, i32
  }
  func.func @transform_1(%arg0: i32, %arg1: i32, %arg2: i32) -> (i32, i32) {
    %c0_i32 = arith.constant 0 : i32
    return %arg2, %arg1 : i32, i32
  }
  func.func @transform_2(%arg0: i32, %arg1: i32, %arg2: i32) -> (i32, i32) {
    %c0_i32 = arith.constant 0 : i32
    %c0_i32_0 = arith.constant 0 : i32
    return %c0_i32, %arg1 : i32, i32
  }
  func.func @transform_3(%arg0: i32, %arg1: i32, %arg2: i32) -> (i32, i32) {
    %c0_i32 = arith.constant 0 : i32
    return %arg0, %arg1 : i32, i32
  }
}

module attributes {stable_mosaic.version = 11 : i64} {
  func.func @_flash_attn_kernel(%arg0: i32, %arg1: i32, %arg2: i32, %arg3: memref<1x8x32xf32, #tpu.memory_space<vmem>>, %arg4: memref<1x8x64xf32, #tpu.memory_space<vmem>>, %arg5: memref<1x8x32xf32, #tpu.memory_space<vmem>>, %arg6: memref<4x8x1xf32, #tpu.memory_space<vmem>>, %arg7: memref<4x8x1xf32, #tpu.memory_space<vmem>>, %arg8: memref<4x8x8xf32, #tpu.memory_space<vmem>>) attributes {dimension_semantics = [#tpu.dimension_semantics<parallel>, #tpu.dimension_semantics<parallel>, #tpu.dimension_semantics<arbitrary>], iteration_bounds = array<i64: 2, 1, 1>, scalar_prefetch = 0 : i64, scratch_operands = 3 : i64, tpu.core_type = #tpu.core_type<tc>, window_params = [{transform_indices = @transform_0, window_bounds = array<i64: 1, 8, 32>}, {transform_indices = @transform_1, window_bounds = array<i64: 1, 8, 64>}, {transform_indices = @transform_2, window_bounds = array<i64: 1, 8, 32>}]} {
    %c0_i32 = arith.constant 0 : i32
    %0 = arith.cmpi eq, %arg2, %c0_i32 : i32
    %1 = arith.extui %0 : i1 to i32
    %c0_i32_0 = arith.constant 0 : i32
    %2 = arith.cmpi ne, %1, %c0_i32_0 : i32
    scf.if %2 {
      %cst_31 = arith.constant 0xFF800000 : f32
      %38 = vector.broadcast %cst_31 : f32 to vector<4x8x1xf32>
      %c0_32 = arith.constant 0 : index
      %c0_33 = arith.constant 0 : index
      %c0_34 = arith.constant 0 : index
      %39 = vector.load %arg6[%c0_32, %c0_33, %c0_34] : memref<4x8x1xf32, #tpu.memory_space<vmem>>, vector<4x8x1xf32>
      tpu.vector_store %arg6[%c0_32, %c0_33, %c0_34], %38 {strides = array<i32>} : memref<4x8x1xf32, #tpu.memory_space<vmem>>, vector<4x8x1xf32>,
      %cst_35 = arith.constant 0.000000e+00 : f32
      %40 = vector.broadcast %cst_35 : f32 to vector<4x8x1xf32>
      %c0_36 = arith.constant 0 : index
      %c0_37 = arith.constant 0 : index
      %c0_38 = arith.constant 0 : index
      %41 = vector.load %arg7[%c0_36, %c0_37, %c0_38] : memref<4x8x1xf32, #tpu.memory_space<vmem>>, vector<4x8x1xf32>
      tpu.vector_store %arg7[%c0_36, %c0_37, %c0_38], %40 {strides = array<i32>} : memref<4x8x1xf32, #tpu.memory_space<vmem>>, vector<4x8x1xf32>,
      %cst_39 = arith.constant 0.000000e+00 : f32
      %42 = vector.broadcast %cst_39 : f32 to vector<4x8x8xf32>
      %c0_40 = arith.constant 0 : index
      %c0_41 = arith.constant 0 : index
      %c0_42 = arith.constant 0 : index
      %43 = vector.load %arg8[%c0_40, %c0_41, %c0_42] : memref<4x8x8xf32, #tpu.memory_space<vmem>>, vector<4x8x8xf32>
      tpu.vector_store %arg8[%c0_40, %c0_41, %c0_42], %42 {strides = array<i32>} : memref<4x8x8xf32, #tpu.memory_space<vmem>>, vector<4x8x8xf32>,
    } else {
    }
    %c0 = arith.constant 0 : index
    %c0_1 = arith.constant 0 : index
    %c0_2 = arith.constant 0 : index
    %3 = vector.load %arg3[%c0, %c0_1, %c0_2] : memref<1x8x32xf32, #tpu.memory_space<vmem>>, vector<1x8x32xf32>
    %4 = vector.shape_cast %3 : vector<1x8x32xf32> to vector<8x32xf32>
    %5 = vector.shape_cast %4 : vector<8x32xf32> to vector<8x4x8xf32>
    %c0_3 = arith.constant 0 : index
    %c0_4 = arith.constant 0 : index
    %c0_5 = arith.constant 0 : index
    %6 = vector.load %arg4[%c0_3, %c0_4, %c0_5] : memref<1x8x64xf32, #tpu.memory_space<vmem>>, vector<1x8x32xf32>
    %7 = vector.shape_cast %6 : vector<1x8x32xf32> to vector<8x32xf32>
    %8 = vector.shape_cast %7 : vector<8x32xf32> to vector<8x4x8xf32>
    %c0_6 = arith.constant 0 : index
    %c0_7 = arith.constant 0 : index
    %c32 = arith.constant 32 : index
    %9 = vector.load %arg4[%c0_6, %c0_7, %c32] : memref<1x8x64xf32, #tpu.memory_space<vmem>>, vector<1x8x32xf32>
    %10 = vector.shape_cast %9 : vector<1x8x32xf32> to vector<8x32xf32>
    %11 = vector.shape_cast %10 : vector<8x32xf32> to vector<8x4x8xf32>
    "tpu.trace_start"() <{level = 10 : i32, message = "qhd,khd->hqk"}> : () -> ()
    %cst = arith.constant dense<0.000000e+00> : vector<4x8x8xf32>
    %12 = tpu.matmul %5, %8, %cst {dimension_numbers = #tpu.dot_dimension_numbers<[2], [2], [0], [0], [0, 1, 0, 0, 1, 0], [1], [1]>} : vector<8x4x8xf32>, vector<8x4x8xf32>, vector<4x8x8xf32> -> vector<4x8x8xf32>
    "tpu.trace_stop"() : () -> ()
    %c0_8 = arith.constant 0 : index
    %c0_9 = arith.constant 0 : index
    %c0_10 = arith.constant 0 : index
    %13 = vector.load %arg6[%c0_8, %c0_9, %c0_10] : memref<4x8x1xf32, #tpu.memory_space<vmem>>, vector<4x8x1xf32>
    %cst_11 = arith.constant dense<0xFF800000> : vector<4x8xf32>
    %14 = vector.multi_reduction <maximumf>, %12, %cst_11 [2] : vector<4x8x8xf32> to vector<4x8xf32>
    %15 = vector.shape_cast %14 : vector<4x8xf32> to vector<4x8x1xf32>
    %16 = arith.maximumf %13, %15 : vector<4x8x1xf32>
    %17 = arith.subf %13, %16 : vector<4x8x1xf32>
    %18 = math.exp %17 : vector<4x8x1xf32>
    %19 = vector.broadcast %16 : vector<4x8x1xf32> to vector<4x8x8xf32>
    %20 = arith.subf %12, %19 : vector<4x8x8xf32>
    %21 = math.exp %20 : vector<4x8x8xf32>
    %c0_12 = arith.constant 0 : index
    %c0_13 = arith.constant 0 : index
    %c0_14 = arith.constant 0 : index
    %22 = vector.load %arg7[%c0_12, %c0_13, %c0_14] : memref<4x8x1xf32, #tpu.memory_space<vmem>>, vector<4x8x1xf32>
    %23 = arith.mulf %18, %22 : vector<4x8x1xf32>
    %cst_15 = arith.constant dense<0.000000e+00> : vector<4x8xf32>
    %24 = vector.multi_reduction <add>, %21, %cst_15 [2] : vector<4x8x8xf32> to vector<4x8xf32>
    %25 = vector.shape_cast %24 : vector<4x8xf32> to vector<4x8x1xf32>
    %26 = arith.addf %23, %25 : vector<4x8x1xf32>
    %c0_16 = arith.constant 0 : index
    %c0_17 = arith.constant 0 : index
    %c0_18 = arith.constant 0 : index
    %27 = vector.load %arg7[%c0_16, %c0_17, %c0_18] : memref<4x8x1xf32, #tpu.memory_space<vmem>>, vector<4x8x1xf32>
    tpu.vector_store %arg7[%c0_16, %c0_17, %c0_18], %26 {strides = array<i32>} : memref<4x8x1xf32, #tpu.memory_space<vmem>>, vector<4x8x1xf32>,
    %c0_19 = arith.constant 0 : index
    %c0_20 = arith.constant 0 : index
    %c0_21 = arith.constant 0 : index
    %28 = vector.load %arg8[%c0_19, %c0_20, %c0_21] : memref<4x8x8xf32, #tpu.memory_space<vmem>>, vector<4x8x8xf32>
    %29 = vector.broadcast %18 : vector<4x8x1xf32> to vector<4x8x8xf32>
    %30 = arith.mulf %29, %28 : vector<4x8x8xf32>
    "tpu.trace_start"() <{level = 10 : i32, message = "hqk,khd->hqd"}> : () -> ()
    %cst_22 = arith.constant dense<0.000000e+00> : vector<4x8x8xf32>
    %31 = tpu.matmul %21, %11, %cst_22 {dimension_numbers = #tpu.dot_dimension_numbers<[2], [0], [1], [2], [0, 0, 0, 1, 1, 2], [0], [1]>} : vector<4x8x8xf32>, vector<8x4x8xf32>, vector<4x8x8xf32> -> vector<4x8x8xf32>
    "tpu.trace_stop"() : () -> ()
    %32 = arith.addf %30, %31 : vector<4x8x8xf32>
    %c0_23 = arith.constant 0 : index
    %c0_24 = arith.constant 0 : index
    %c0_25 = arith.constant 0 : index
    %33 = vector.load %arg8[%c0_23, %c0_24, %c0_25] : memref<4x8x8xf32, #tpu.memory_space<vmem>>, vector<4x8x8xf32>
    tpu.vector_store %arg8[%c0_23, %c0_24, %c0_25], %32 {strides = array<i32>} : memref<4x8x8xf32, #tpu.memory_space<vmem>>, vector<4x8x8xf32>,
    %c0_26 = arith.constant 0 : index
    %c0_27 = arith.constant 0 : index
    %c0_28 = arith.constant 0 : index
    %34 = vector.load %arg6[%c0_26, %c0_27, %c0_28] : memref<4x8x1xf32, #tpu.memory_space<vmem>>, vector<4x8x1xf32>
    tpu.vector_store %arg6[%c0_26, %c0_27, %c0_28], %16 {strides = array<i32>} : memref<4x8x1xf32, #tpu.memory_space<vmem>>, vector<4x8x1xf32>,
    %c0_i32_29 = arith.constant 0 : i32
    %35 = arith.cmpi eq, %arg2, %c0_i32_29 : i32
    %36 = arith.extui %35 : i1 to i32
    %c0_i32_30 = arith.constant 0 : i32
    %37 = arith.cmpi ne, %36, %c0_i32_30 : i32
    scf.if %37 {
      %c0_31 = arith.constant 0 : index
      %c0_32 = arith.constant 0 : index
      %c0_33 = arith.constant 0 : index
      %38 = vector.load %arg8[%c0_31, %c0_32, %c0_33] : memref<4x8x8xf32, #tpu.memory_space<vmem>>, vector<4x8x8xf32>
      %c0_34 = arith.constant 0 : index
      %c0_35 = arith.constant 0 : index
      %c0_36 = arith.constant 0 : index
      %39 = vector.load %arg7[%c0_34, %c0_35, %c0_36] : memref<4x8x1xf32, #tpu.memory_space<vmem>>, vector<4x8x1xf32>
      %40 = tpu.reciprocal %39 {approx = true} : vector<4x8x1xf32> -> vector<4x8x1xf32>
      %41 = vector.broadcast %40 : vector<4x8x1xf32> to vector<4x8x8xf32>
      %42 = arith.mulf %38, %41 : vector<4x8x8xf32>
      %43 = tpu.transpose %42, [1, 0, 2] : vector<4x8x8xf32> -> vector<8x4x8xf32>
      %44 = vector.shape_cast %43 : vector<8x4x8xf32> to vector<8x32xf32>
      %c0_37 = arith.constant 0 : index
      %c0_38 = arith.constant 0 : index
      %c0_39 = arith.constant 0 : index
      %45 = vector.load %arg5[%c0_37, %c0_38, %c0_39] : memref<1x8x32xf32, #tpu.memory_space<vmem>>, vector<1x8x32xf32>
      %46 = vector.shape_cast %45 : vector<1x8x32xf32> to vector<8x32xf32>
      %47 = vector.shape_cast %44 : vector<8x32xf32> to vector<1x8x32xf32>
      tpu.vector_store %arg5[%c0_37, %c0_38, %c0_39], %47 {strides = array<i32>} : memref<1x8x32xf32, #tpu.memory_space<vmem>>, vector<1x8x32xf32>,
    } else {
    }
    return
  }
  func.func @transform_0(%arg0: i32, %arg1: i32, %arg2: i32) -> (i32, i32, i32) {
    %c0_i32 = arith.constant 0 : i32
    %c0_i32_0 = arith.constant 0 : i32
    return %arg0, %arg1, %c0_i32 : i32, i32, i32
  }
  func.func @transform_1(%arg0: i32, %arg1: i32, %arg2: i32) -> (i32, i32, i32) {
    %c0_i32 = arith.constant 0 : i32
    %c0_i32_0 = arith.constant 0 : i32
    return %arg0, %arg2, %c0_i32 : i32, i32, i32
  }
  func.func @transform_2(%arg0: i32, %arg1: i32, %arg2: i32) -> (i32, i32, i32) {
    %c0_i32 = arith.constant 0 : i32
    %c0_i32_0 = arith.constant 0 : i32
    return %arg0, %arg1, %c0_i32 : i32, i32, i32
  }
}

module attributes {stable_mosaic.version = 11 : i64} {
  func.func @_linear_kernel(%arg0: i32, %arg1: i32, %arg2: i32, %arg3: memref<16x32xf32, #tpu.memory_space<vmem>>, %arg4: memref<32x6xf32, #tpu.memory_space<vmem>>, %arg5: memref<1x6xf32, #tpu.memory_space<vmem>>, %arg6: memref<16x6xf32, #tpu.memory_space<vmem>>, %arg7: memref<16x6xf32, #tpu.memory_space<vmem>>) attributes {dimension_semantics = [#tpu.dimension_semantics<parallel>, #tpu.dimension_semantics<parallel>, #tpu.dimension_semantics<arbitrary>], iteration_bounds = array<i64: 1, 1, 1>, scalar_prefetch = 0 : i64, scratch_operands = 1 : i64, tpu.core_type = #tpu.core_type<tc>, window_params = [{transform_indices = @transform_0, window_bounds = array<i64: 16, 32>}, {transform_indices = @transform_1, window_bounds = array<i64: 32, 6>}, {transform_indices = @transform_2, window_bounds = array<i64: 1, 6>}, {transform_indices = @transform_3, window_bounds = array<i64: 16, 6>}]} {
    %c0_i32 = arith.constant 0 : i32
    %0 = arith.cmpi eq, %arg2, %c0_i32 : i32
    %1 = arith.extui %0 : i1 to i32
    %c0_i32_0 = arith.constant 0 : i32
    %2 = arith.cmpi ne, %1, %c0_i32_0 : i32
    scf.if %2 {
      %cst_10 = arith.constant 0.000000e+00 : f32
      %12 = vector.broadcast %cst_10 : f32 to vector<16x6xf32>
      %c0_11 = arith.constant 0 : index
      %c0_12 = arith.constant 0 : index
      %13 = vector.load %arg7[%c0_11, %c0_12] : memref<16x6xf32, #tpu.memory_space<vmem>>, vector<16x6xf32>
      tpu.vector_store %arg7[%c0_11, %c0_12], %12 {strides = array<i32>} : memref<16x6xf32, #tpu.memory_space<vmem>>, vector<16x6xf32>,
    } else {
    }
    %c0 = arith.constant 0 : index
    %c0_1 = arith.constant 0 : index
    %3 = vector.load %arg7[%c0, %c0_1] : memref<16x6xf32, #tpu.memory_space<vmem>>, vector<16x6xf32>
    %c0_2 = arith.constant 0 : index
    %c0_3 = arith.constant 0 : index
    %4 = vector.load %arg3[%c0_2, %c0_3] : memref<16x32xf32, #tpu.memory_space<vmem>>, vector<16x32xf32>
    %c0_4 = arith.constant 0 : index
    %c0_5 = arith.constant 0 : index
    %5 = vector.load %arg4[%c0_4, %c0_5] : memref<32x6xf32, #tpu.memory_space<vmem>>, vector<32x6xf32>
    %cst = arith.constant dense<0.000000e+00> : vector<16x6xf32>
    %6 = tpu.matmul %4, %5, %cst {dimension_numbers = #tpu.dot_dimension_numbers<[1], [0], [0], [1], [0, 0, 1, 1], [], []>} : vector<16x32xf32>, vector<32x6xf32>, vector<16x6xf32> -> vector<16x6xf32>
    %7 = arith.addf %3, %6 : vector<16x6xf32>
    %c0_6 = arith.constant 0 : index
    %c0_7 = arith.constant 0 : index
    %8 = vector.load %arg7[%c0_6, %c0_7] : memref<16x6xf32, #tpu.memory_space<vmem>>, vector<16x6xf32>
    tpu.vector_store %arg7[%c0_6, %c0_7], %7 {strides = array<i32>} : memref<16x6xf32, #tpu.memory_space<vmem>>, vector<16x6xf32>,
    %c0_i32_8 = arith.constant 0 : i32
    %9 = arith.cmpi eq, %arg2, %c0_i32_8 : i32
    %10 = arith.extui %9 : i1 to i32
    %c0_i32_9 = arith.constant 0 : i32
    %11 = arith.cmpi ne, %10, %c0_i32_9 : i32
    scf.if %11 {
      %c0_10 = arith.constant 0 : index
      %c0_11 = arith.constant 0 : index
      %12 = vector.load %arg7[%c0_10, %c0_11] : memref<16x6xf32, #tpu.memory_space<vmem>>, vector<16x6xf32>
      %c0_12 = arith.constant 0 : index
      %c0_13 = arith.constant 0 : index
      %13 = vector.load %arg5[%c0_12, %c0_13] : memref<1x6xf32, #tpu.memory_space<vmem>>, vector<1x6xf32>
      %14 = vector.broadcast %13 : vector<1x6xf32> to vector<16x6xf32>
      %15 = arith.addf %12, %14 : vector<16x6xf32>
      %c0_14 = arith.constant 0 : index
      %c0_15 = arith.constant 0 : index
      %16 = vector.load %arg6[%c0_14, %c0_15] : memref<16x6xf32, #tpu.memory_space<vmem>>, vector<16x6xf32>
      tpu.vector_store %arg6[%c0_14, %c0_15], %15 {strides = array<i32>} : memref<16x6xf32, #tpu.memory_space<vmem>>, vector<16x6xf32>,
    } else {
    }
    return
  }
  func.func @transform_0(%arg0: i32, %arg1: i32, %arg2: i32) -> (i32, i32) {
    %c0_i32 = arith.constant 0 : i32
    return %arg0, %arg2 : i32, i32
  }
  func.func @transform_1(%arg0: i32, %arg1: i32, %arg2: i32) -> (i32, i32) {
    %c0_i32 = arith.constant 0 : i32
    return %arg2, %arg1 : i32, i32
  }
  func.func @transform_2(%arg0: i32, %arg1: i32, %arg2: i32) -> (i32, i32) {
    %c0_i32 = arith.constant 0 : i32
    %c0_i32_0 = arith.constant 0 : i32
    return %c0_i32, %arg1 : i32, i32
  }
  func.func @transform_3(%arg0: i32, %arg1: i32, %arg2: i32) -> (i32, i32) {
    %c0_i32 = arith.constant 0 : i32
    return %arg0, %arg1 : i32, i32
  }
}

</mosaic_0001>

<bundles_post_ra>
// kernel: transformer_forward.31
= control target key start
LH: loop header
LB: loop body
LE: loop exit
PB: predicated region body
PF: predicated region fallthrough
CT: control target
= control target key end

     0   :  { %s555_s15 = smov 0   ;;  %s557_s16 = smov 0   ;;  %s600_s0 = inlined_call_operand.vmem [shape: f32[16,6], index: 0, kind: input, shape index: {}]   ;;  %s601_s1 = inlined_call_operand.vmem [shape: f32[6,32], index: 1, kind: input, shape index: {}]   ;;  %s602_s2 = inlined_call_operand.vmem [shape: f32[1,32], index: 2, kind: input, shape index: {}]   ;;  %s603_s3 = inlined_call_operand.vmem [shape: f32[8,32], index: 3, kind: input, shape index: {}]   ;;  %s604_s4 = inlined_call_operand.vmem [shape: f32[16,32], index: 4, kind: output, shape index: {}]  }
   0x1   :  { %s559_s17 = smov 0  }
   0x2 LB: > { %s33_s18 = sadd.s32 1, %s523_s16  ;;  %p472_p0 = scmp.ge.s32.totalorder %s527_s17, 1  ;;  %s527_s17 = sphi %s559_s17, %s14_s17   ;;  %s523_s16 = sphi %s557_s16, %s606_s16   ;;  %s519_s15 = sphi %s555_s15, %s605_s15  }
   0x3   : > { %p35_p1 = scmp.ge.s32.totalorder %s33_s18, 2  ;;  %p218_p2 = scmp.lt.s32.totalorder %s527_s17, 3 }
   0x5   : > { %s608_s18 = smov (%p35_p1, %s33_s18), 0  ;;  %p219_p3 = pnand %p472_p0, %p218_p2 }
   0x6   : > { %p262_p4 = scmp.lt.s32.totalorder (!%p219_p3), %s519_s15, 1 }
   0x7   : > { %222 = sbr.rel (%p219_p3) target bundleno = 157 (0x9d), region = 36 }
   0xc   : > { %v298_v0 = vld [vmem:[%s601_s1] sm:$0x3f]  ;;  %vm303_vm0 = vcmask 1045504   ;;  %vm294_vm1 = vcmask 261120   ;;  %s610_s15 = smov (!%p262_p4, %s519_s15), 1  ;;  %v529_v1 = vmov 0.0  }
   0xd   : > { %475 = vmatpush.msk.msra.mxu0 %vm303_vm0, %v298_v0  ;;  %295 = vst.msk [vmem:[#allocation2] sm:$0xff] %vm294_vm1, %v529_v1  ;;  %s473_s21 = sshll.u32 %s610_s15, 3  ;;  %vm299_vm2 = vcmask 48128   ;;  %v504_v6 = vld [vmem:[%s602_s2] ss:$0 sm:$0xff] }
   0xe   : > { %s268_s24 = scalar_lea.vmem %s600_s0, %s473_s21  ;;  %v339_v8 = vld [vmem:[%s603_s3] sm:$0xff]  ;;  %s289_s5 = scalar_lea.vmem %s604_s4, %s473_s21 }
   0xf   : > { %v297_v2 = vld [vmem:[%s268_s24] sm:$0xff] }
  0x10   : > { %476 = vmatmul.msk.f32.vlgmr.msra.gmra.mxu0 %vm299_vm2, %v297_v2 }
  0x14   : > { %v296_v3 = vld [vmem:[#allocation2] sm:$0xff] }
  0x8d   : > { %v324_v4 = vpop.f32.mrf.mxu0 }
  0x8e   : > { %v327_v5 = vadd.f32 %v324_v4, %v296_v3 }
  0x90   : > { %329 = vst.msk [vmem:[#allocation2] sm:$0xff] %vm294_vm1, %v327_v5 }
  0x97   : > { %v333_v7 = vld [vmem:[#allocation2] sm:$0xff] }
  0x98   : > { %v338_v9 = vadd.f32 %v504_v6, %v333_v7 }
  0x9a   : > { %v340_v10 = vadd.f32 %v339_v8, %v338_v9 }
  0x9c   : > { %341 = vst.msk [vmem:[%s289_s5] sm:$0xff] %vm294_vm1, %v340_v10 }
  0x9d PF: > { %s14_s17 = sadd.s32 1, %s527_s17   ;;  %s605_s15 = smov %s523_s16 }
  0x9e   : > { %p11_p5 = scmp.ge.s32.totalorder %s14_s17, 4   ;;  %s606_s16 = smov %s608_s18 }
  0xa0   :  { %13 = sbr.rel (!%p11_p5) target bundleno = 2 (0x2), region = 83 }

// kernel: transformer_forward.32
= control target key start
LH: loop header
LB: loop body
LE: loop exit
PB: predicated region body
PF: predicated region fallthrough
CT: control target
= control target key end

     0   :  { %vm18_vm0 = vcmask 785408   ;;  %v89_v2 = vmov 0.0   ;;  %vm29_vm1 = vcmask 261120   ;;  %s143_s1 = inlined_call_operand.vmem [shape: f32[32,96], index: 1, kind: input, shape index: {}]   ;;  %s144_s2 = inlined_call_operand.vmem [shape: f32[1,96], index: 2, kind: input, shape index: {}]   ;;  %s145_s0 = inlined_call_operand.vmem [shape: f32[16,32], index: 0, kind: input, shape index: {}]   ;;  %s146_s3 = inlined_call_operand.vmem [shape: f32[16,96], index: 3, kind: output, shape index: {}]  }
   0x1   :  { %v28_v0 = vld [vmem:[%s143_s1 + $0x18] sm:$0xff]  ;;  %v27_v1 = vld [vmem:[%s143_s1 + $0x10] sm:$0xff]  ;;  %19 = vst.msk [vmem:[#allocation2] sm:$0xff] %vm18_vm0, %v89_v2  ;;  %v26_v3 = vld [vmem:[%s143_s1 + $0x8] sm:$0xff] }
   0x2   :  { %48 = vmatpush.msra.mxu0 %v28_v0  ;;  %83 = vmatpush.msra.mxu1 %v28_v0  ;;  %20 = vst.msk [vmem:[#allocation2 + $0x8] sm:$0xff] %vm18_vm0, %v89_v2  ;;  %v25_v4 = vld [vmem:[%s143_s1] sm:$0xff]  ;;  %v24_v6 = vld [vmem:[%s145_s0 + $0x8] sm:$0xff] }
   0x3   :  { %v23_v5 = vld [vmem:[%s145_s0] sm:$0xff] }
   0x4   :  { %49 = vmatpush.msra.mxu0 %v27_v1  ;;  %84 = vmatpush.msra.mxu1 %v27_v1  ;;  %v88_v13 = vld [vmem:[%s144_s2] ss:$0 sm:$0xff] }
   0x6   :  { %50 = vmatpush.msra.mxu0 %v26_v3  ;;  %85 = vmatpush.msra.mxu1 %v26_v3 }
   0x8   :  { %51 = vmatpush.msra.mxu0 %v25_v4  ;;  %86 = vmatpush.msra.mxu1 %v25_v4  ;;  %v21_v7 = vld [vmem:[#allocation2] sm:$0xff] }
   0x9   :  { %81 = vmatmul.msk.f32.vlgmr.msra.gmra.mxu0 %vm29_vm1, %v23_v5  ;;  %82 = vmatmul.msk.f32.vlgmr.msra.gmra.mxu1 %vm29_vm1, %v24_v6  ;;  %v22_v8 = vld [vmem:[#allocation2 + $0x8] sm:$0xff] }
  0x86   :  { %v53_v9 = vpop.f32.mrf.mxu0  ;;  %v56_v10 = vpop.f32.mrf.mxu1 }
  0x87   :  { %v59_v11 = vadd.f32 %v53_v9, %v21_v7  ;;  %v60_v12 = vadd.f32 %v56_v10, %v22_v8 }
  0x89   :  { %62 = vst.msk [vmem:[#allocation2] sm:$0xff] %vm18_vm0, %v59_v11 }
  0x8a   :  { %63 = vst.msk [vmem:[#allocation2 + $0x8] sm:$0xff] %vm18_vm0, %v60_v12 }
  0x90   :  { %v67_v14 = vld [vmem:[#allocation2] sm:$0xff] }
  0x91   :  { %v73_v15 = vadd.f32 %v88_v13, %v67_v14  ;;  %v68_v16 = vld [vmem:[#allocation2 + $0x8] sm:$0xff] }
  0x92   :  { %v74_v17 = vadd.f32 %v88_v13, %v68_v16 }
  0x93   :  { %75 = vst.msk [vmem:[%s146_s3] sm:$0xff] %vm18_vm0, %v73_v15 }
  0x94   :  { %76 = vst.msk [vmem:[%s146_s3 + $0x8] sm:$0xff] %vm18_vm0, %v74_v17 }

// kernel: transformer_forward.34
= control target key start
LH: loop header
LB: loop body
LE: loop exit
PB: predicated region body
PF: predicated region fallthrough
CT: control target
= control target key end

     0   :  { %vm27_vm0 = vcmask 261120   ;;  %v173_v2 = vmov 0.0   ;;  %v174_v24 = vmov 32.0   ;;  %s261_s1 = inlined_call_operand.vmem [shape: f32[32,32], index: 1, kind: input, shape index: {}]   ;;  %s262_s0 = inlined_call_operand.vmem [shape: f32[16,32], index: 0, kind: input, shape index: {}]   ;;  %s263_s2 = inlined_call_operand.vmem [shape: f32[1,32], index: 2, kind: input, shape index: {}]   ;;  %s264_s3 = inlined_call_operand.vmem [shape: f32[16,32], index: 3, kind: input, shape index: {}]   ;;  %s265_s4 = inlined_call_operand.vmem [shape: f32[1,32], index: 4, kind: input, shape index: {}]   ;;  %s266_s5 = inlined_call_operand.vmem [shape: f32[1,32], index: 5, kind: input, shape index: {}]   ;;  %s267_s6 = inlined_call_operand.vmem [shape: f32[16,32], index: 6, kind: output, shape index: {}]  }
   0x1   :  { %v37_v0 = vld [vmem:[%s261_s1 + $0x18] sm:$0xff]  ;;  %v36_v1 = vld [vmem:[%s261_s1 + $0x10] sm:$0xff]  ;;  %28 = vst.msk [vmem:[#allocation2] sm:$0xff] %vm27_vm0, %v173_v2  ;;  %v35_v3 = vld [vmem:[%s261_s1 + $0x8] sm:$0xff]  ;;  %167 = vrcp.f32 %v174_v24 }
   0x2   :  { %57 = vmatpush.msra.mxu0 %v37_v0  ;;  %158 = vmatpush.msra.mxu1 %v37_v0  ;;  %29 = vst.msk [vmem:[#allocation2 + $0x8] sm:$0xff] %vm27_vm0, %v173_v2  ;;  %v34_v4 = vld [vmem:[%s261_s1] sm:$0xff]  ;;  %v33_v6 = vld [vmem:[%s262_s0 + $0x8] sm:$0xff] }
   0x3   :  { %v32_v5 = vld [vmem:[%s262_s0] sm:$0xff]  ;;  %v84_v20 = vld [vmem:[%s264_s3 + $0x8] sm:$0xff] }
   0x4   :  { %58 = vmatpush.msra.mxu0 %v36_v1  ;;  %159 = vmatpush.msra.mxu1 %v36_v1  ;;  %v164_v13 = vld [vmem:[%s263_s2] ss:$0 sm:$0xff] }
   0x5   :  { %v83_v15 = vld [vmem:[%s264_s3] sm:$0xff] }
   0x6   :  { %59 = vmatpush.msra.mxu0 %v35_v3  ;;  %160 = vmatpush.msra.mxu1 %v35_v3  ;;  %v165_v55 = vld [vmem:[%s265_s4] ss:$0 sm:$0xff] }
   0x7   :  { %v168_v25 = vpop.eup %167  ;;  %v166_v58 = vld [vmem:[%s266_s5] ss:$0 sm:$0xff] }
   0x8   :  { %60 = vmatpush.msra.mxu0 %v34_v4  ;;  %161 = vmatpush.msra.mxu1 %v34_v4  ;;  %v30_v7 = vld [vmem:[#allocation2] sm:$0xff]  ;;  %v94_v26 = vmul.f32 32.0, %v168_v25  ;;  %vm98_vm1 = vweird.f32 %v168_v25 }
   0x9   :  { %156 = vmatmul.msk.f32.vlgmr.msra.gmra.mxu0 %vm27_vm0, %v32_v5  ;;  %157 = vmatmul.msk.f32.vlgmr.msra.gmra.mxu1 %vm27_vm0, %v33_v6  ;;  %v31_v8 = vld [vmem:[#allocation2 + $0x8] sm:$0xff] }
   0xa   :  { %v95_v27 = vsub.f32 1.0, %v94_v26 }
   0xc   :  { %v96_v28 = vmul.f32 %v168_v25, %v95_v27 }
   0xe   :  { %v97_v29 = vadd.f32 %v168_v25, %v96_v28 }
  0x10   :  { %v99_v30 = vsel %vm98_vm1, %v168_v25, %v97_v29 }
  0x86   :  { %v62_v9 = vpop.f32.mrf.mxu0  ;;  %v65_v10 = vpop.f32.mrf.mxu1 }
  0x87   :  { %v68_v11 = vadd.f32 %v62_v9, %v30_v7  ;;  %v69_v12 = vadd.f32 %v65_v10, %v31_v8 }
  0x89   :  { %70 = vst.msk [vmem:[#allocation2] sm:$0xff] %vm27_vm0, %v68_v11 }
  0x8a   :  { %71 = vst.msk [vmem:[#allocation2 + $0x8] sm:$0xff] %vm27_vm0, %v69_v12 }
  0x90   :  { %v75_v14 = vld [vmem:[#allocation2] sm:$0xff] }
  0x91   :  { %v81_v16 = vadd.f32 %v164_v13, %v75_v14  ;;  %v76_v17 = vld [vmem:[#allocation2 + $0x8] sm:$0xff] }
  0x92   :  { %v82_v19 = vadd.f32 %v164_v13, %v76_v17 }
  0x93   :  { %v85_v18 = vadd.f32 %v83_v15, %v81_v16 }
  0x94   :  { %v86_v22 = vadd.f32 %v84_v20, %v82_v19 }
  0x95   :  { %v87_v21 = vsel %vm27_vm0, %v85_v18, 0.0 }
  0x96   :  { %88 = vadd.xlane.f32.xlu0 %v87_v21  ;;  %v90_v23 = vsel %vm27_vm0, %v86_v22, 0.0 }
  0x9e   :  { %91 = vadd.xlane.f32.xlu0 %v90_v23 }
 0x109   :  { %v89_v31 = vpop.xlane.xlu0 %88 }
 0x10a   :  { %v100_v32 = vmul.f32 %v99_v30, %v89_v31 }
 0x10c   :  { %v102_v33 = vsub.f32 %v85_v18, %v100_v32 }
 0x10e   :  { %v104_v34 = vmul.f32 %v102_v33, %v102_v33 }
 0x110   :  { %v106_v35 = vsel %vm27_vm0, %v104_v34, 0.0 }
 0x111   :  { %107 = vadd.xlane.f32.xlu1 %v106_v35  ;;  %v92_v36 = vpop.xlane.xlu0 %91 }
 0x112   :  { %v101_v37 = vmul.f32 %v99_v30, %v92_v36 }
 0x114   :  { %v103_v38 = vsub.f32 %v86_v22, %v101_v37 }
 0x116   :  { %v105_v39 = vmul.f32 %v103_v38, %v103_v38 }
 0x118   :  { %v109_v40 = vsel %vm27_vm0, %v105_v39, 0.0 }
 0x119   :  { %110 = vadd.xlane.f32.xlu1 %v109_v40 }
 0x184   :  { %v108_v41 = vpop.xlane.xlu1 %107 }
 0x185   :  { %v112_v42 = vmul.f32 %v108_v41, %v99_v30 }
 0x187   :  { %v114_v43 = vadd.f32 1e-05, %v112_v42 }
 0x189   :  { %169 = vrsqrt.f32 %v114_v43  ;;  %vm122_vm3 = vweird.f32 %v114_v43 }
 0x18c   :  { %v111_v44 = vpop.xlane.xlu1 %110 }
 0x18d   :  { %v113_v45 = vmul.f32 %v111_v44, %v99_v30 }
 0x18f   :  { %v170_v46 = vpop.eup %169  ;;  %v115_v47 = vadd.f32 1e-05, %v113_v45 }
 0x190   :  { %v117_v48 = vmul.f32 %v170_v46, %v114_v43  ;;  %vm123_vm2 = vweird.f32 %v170_v46 }
 0x191   :  { %171 = vrsqrt.f32 %v115_v47  ;;  %vm124_vm4 = vmor %vm122_vm3, %vm123_vm2  ;;  %vm132_vm6 = vweird.f32 %v115_v47 }
 0x192   :  { %v118_v49 = vmul.f32 %v170_v46, %v117_v48 }
 0x194   :  { %v119_v50 = vmul.f32 0.5, %v118_v49 }
 0x196   :  { %v120_v51 = vsub.f32 1.5, %v119_v50 }
 0x197   :  { %v172_v52 = vpop.eup %171 }
 0x198   :  { %v121_v53 = vmul.f32 %v170_v46, %v120_v51  ;;  %v127_v54 = vmul.f32 %v172_v52, %v115_v47  ;;  %vm133_vm5 = vweird.f32 %v172_v52 }
 0x199   :  { %vm134_vm7 = vmor %vm132_vm6, %vm133_vm5 }
 0x19a   :  { %v125_v56 = vsel %vm124_vm4, %v170_v46, %v121_v53  ;;  %v128_v57 = vmul.f32 %v172_v52, %v127_v54 }
 0x19b   :  { %v136_v59 = vmul.f32 %v125_v56, %v102_v33 }
 0x19c   :  { %v129_v60 = vmul.f32 0.5, %v128_v57 }
 0x19d   :  { %v142_v61 = vmul.f32 %v165_v55, %v136_v59 }
 0x19e   :  { %v130_v62 = vsub.f32 1.5, %v129_v60 }
 0x19f   :  { %v148_v63 = vadd.f32 %v166_v58, %v142_v61 }
 0x1a0   :  { %v131_v0 = vmul.f32 %v172_v52, %v130_v62 }
 0x1a1   :  { %150 = vst.msk [vmem:[%s267_s6] sm:$0xff] %vm27_vm0, %v148_v63 }
 0x1a2   :  { %v135_v1 = vsel %vm134_vm7, %v172_v52, %v131_v0 }
 0x1a3   :  { %v137_v2 = vmul.f32 %v135_v1, %v103_v38 }
 0x1a5   :  { %v143_v3 = vmul.f32 %v165_v55, %v137_v2 }
 0x1a7   :  { %v149_v4 = vadd.f32 %v166_v58, %v143_v3 }
 0x1a9   :  { %151 = vst.msk [vmem:[%s267_s6 + $0x8] sm:$0xff] %vm27_vm0, %v149_v4 }

// kernel: transformer_forward.35
= control target key start
LH: loop header
LB: loop body
LE: loop exit
PB: predicated region body
PF: predicated region fallthrough
CT: control target
= control target key end

     0   :  { %8 = vsyncpa [#allocation4], 0  ;;  %s959_s0 = inlined_call_operand.vmem [shape: f32[16,32], index: 0, kind: input, shape index: {}]   ;;  %s960_s1 = inlined_call_operand.hbm [shape: f32[32,2048], index: 1, kind: input, shape index: {}]   ;;  %s961_s2 = inlined_call_operand.vmem [shape: f32[1,2048], index: 2, kind: input, shape index: {}]   ;;  %s962_s3 = inlined_call_operand.vmem [shape: f32[16,2048], index: 3, kind: output, shape index: {}]  }
   0x1   :  { %10 = vsyncpa [#allocation4 + $0x1], 0  ;;  %s807_s12 = smov 0   ;;  %s809_s13 = smov 0  }
   0x2   :  { %s811_s14 = smov 0   ;;  %s813_s15 = smov 0  }
   0x3   :  { %s815_s16 = smov 0   ;;  %s817_s17 = smov 0  }
   0x4 LB: > { %s617_s18 = sadd.s32 4294967295, %s782_s17   ;;  %s31_s19 = sadd.s32 1, %s778_s16  ;;  %s782_s17 = sphi %s817_s17, %s16_s17   ;;  %s778_s16 = sphi %s815_s16, %s970_s16   ;;  %s774_s15 = sphi %s813_s15, %s969_s15   ;;  %s770_s14 = sphi %s811_s14, %s968_s14   ;;  %s766_s13 = sphi %s809_s13, %s967_s13   ;;  %s762_s12 = sphi %s807_s12, %s966_s12  }
   0x5   : > { %p33_p0 = scmp.ge.s32.totalorder %s31_s19, 4  ;;  %s72_s20 = sadd.s32 1, %s770_s14 }
   0x6   : > { %p79_p1 = scmp.ne.s32.totalorder %s770_s14, %s766_s13  ;;  %p80_p2 = scmp.eq.s32.totalorder %s782_s17, 0 }
   0x7   : > { %s972_s19 = smov (%p33_p0, %s31_s19), 0  ;;  %p85_p4 = scmp.ne.s32.totalorder %s766_s13, %s762_s12 }
   0x8   : > { %p843_p3 = por %p80_p2, %p79_p1  ;;  %s68_s22 = ssub.s32 %s778_s16, %s972_s19 }
   0x9   : > { %p86_p5 = scmp.eq.s32.totalorder %s617_s18, 0  ;;  %p70_p6 = scmp.eq.s32.totalorder %s68_s22, 0 }
   0xa   : > { %p137_p7 = scmp.eq.s32.totalorder %s617_s18, 3  ;;  %p650_p10 = scmp.lt.s32.totalorder %s782_s17, 4 }
   0xb   : > { %p850_p8 = por %p86_p5, %p85_p4  ;;  %s175_s26 = sand.u32 1, %s770_s14  }
   0xc   : > { %s855_s24 = scalar_select %p70_p6, %s770_s14, %s72_s20  }
   0xd   : > { %p857_p9 = por %p137_p7, %p79_p1  ;;  %s642_s27 = sshll.u32 %s778_s16, 5 }
   0xe   : > { %s622_s28 = sshll.u32 %s175_s26, 7  ;;  %s187_s4 = scalar_lea.hbm %s960_s1, %s642_s27 }
   0xf   : > { %s188_s5 = sshll.u32 %s187_s4, 4  ;;  %s179_s6 = scalar_lea.vmem [#allocation3], %s622_s28  ;;  %s189_s5 = int_to_ptr.hbm [resolvable:$true] %s188_s5 }
  0x10   : > { %s190_s7 = sshll.u32 %s179_s6, 4  ;;  %p647_p11 = pnand %p650_p10, %p843_p3  ;;  %s191_s7 = int_to_ptr.vmem [resolvable:$true] %s190_s7 }
  0x11   : > { %p625_p12 = scmp.ge.s32.totalorder %s782_s17, 1  ;;  %s176_s8 = scalar_lea.sflag [#allocation4], %s175_s26 }
  0x12   : > { %s784_s9 = smov 2048   ;;  %s785_s10 = smov 512  }
  0x13   : > { %s786_s11 = smov 32   ;;  %p206_p13 = scmp.lt.s32.totalorder %s782_s17, 5 }
  0x14   : > { %649 = dma.hbm_to_vmem [thread:$0]  (!%p647_p11), %s189_s5, 2048, %s191_s7, %s176_s8, %s784_s9, %s785_s10, %s786_s11  }
  0x15   : > { %p207_p0 = pnand %p625_p12, %p206_p13 }
  0x16   : > { %s872_s12 = sand.u32 (!%p207_p0), 1, %s766_s13  }
  0x17   : > { %210 = sbr.rel (%p207_p0) target bundleno = 191 (0xbf), region = 32  ;;  %s626_s18 = sshll.u32 (!%p207_p0), %s872_s12, 7 }
  0x18   : > { %s213_s20 = scalar_lea.sflag (!%p207_p0), [#allocation4], %s872_s12  ;;  %s876_s22 = scalar_lea.vmem (!%p207_p0), [#allocation3], %s626_s18 }
  0x1c   : > { %757 = dma.done.wait (%p850_p8), %s213_s20, 2048  }
  0x1d   : > { %759 = vsyncadd (%p850_p8), %s213_s20, 4294965248  ;;  %v305_v0 = vld [vmem:[%s876_s22 + $0x70] sm:$0xff]  ;;  %v306_v1 = vld [vmem:[%s876_s22 + $0x78] sm:$0xff]  ;;  %vm307_vm0 = vcmask 261120   ;;  %s628_s28 = sshll.u32 %s774_s15, 2  ;;  %s627_s5 = sshll.u32 %s872_s12, 6 }
  0x1e   : > { %v301_v2 = vld [vmem:[%s876_s22 + $0x50] sm:$0xff]  ;;  %372 = vmatpush.msra.mxu2 %v305_v0  ;;  %395 = vmatpush.msra.mxu3 %v306_v1  ;;  %v302_v3 = vld [vmem:[%s876_s22 + $0x58] sm:$0xff]  ;;  %v303_v6 = vld [vmem:[%s876_s22 + $0x60] sm:$0xff]  ;;  %p263_p1 = scmp.lt.s32.totalorder %s628_s28, 15  ;;  %s917_s6 = scalar_lea.vmem [#allocation5], %s627_s5 }
  0x1f   : > { %v297_v4 = vld [vmem:[%s876_s22 + $0x30] sm:$0xff]  ;;  %v298_v5 = vld [vmem:[%s876_s22 + $0x38] sm:$0xff]  ;;  %v304_v7 = vld [vmem:[%s876_s22 + $0x68] sm:$0xff]  ;;  %326 = vmatpush.msra.mxu0 %v303_v6  ;;  %s643_s7 = sshll.u32 (%p857_p9), %s774_s15, 5 }
  0x20   : > { %373 = vmatpush.msra.mxu2 %v301_v2  ;;  %396 = vmatpush.msra.mxu3 %v302_v3  ;;  %v299_v8 = vld [vmem:[%s876_s22 + $0x40] sm:$0xff]  ;;  %v293_v9 = vld [vmem:[%s876_s22 + $0x10] sm:$0xff]  ;;  %v294_v10 = vld [vmem:[%s876_s22 + $0x18] sm:$0xff]  ;;  %s974_s28 = smov (!%p263_p1, %s628_s28), 15  ;;  %s479_s10 = scalar_lea.vmem (%p857_p9), %s962_s3, %s643_s7 }
  0x21   : > { %349 = vmatpush.msra.mxu1 %v304_v7  ;;  %v300_v11 = vld [vmem:[%s876_s22 + $0x48] sm:$0xff]  ;;  %v289_v12 = vld [vmem:[%s959_s0] sm:$0xff]  ;;  %327 = vmatpush.msra.mxu0 %v299_v8  ;;  %s265_s4 = scalar_lea.vmem %s961_s2, %s974_s28 }
  0x22   : > { %374 = vmatpush.msra.mxu2 %v297_v4  ;;  %397 = vmatpush.msra.mxu3 %v298_v5  ;;  %v295_v13 = vld [vmem:[%s876_s22 + $0x20] sm:$0xff]  ;;  %v296_v14 = vld [vmem:[%s876_s22 + $0x28] sm:$0xff] }
  0x23   : > { %350 = vmatpush.msra.mxu1 %v300_v11  ;;  %v291_v15 = vld [vmem:[%s876_s22] sm:$0xff]  ;;  %v292_v16 = vld [vmem:[%s876_s22 + $0x8] sm:$0xff]  ;;  %328 = vmatpush.msra.mxu0 %v295_v13 }
  0x24   : > { %375 = vmatpush.msra.mxu2 %v293_v9  ;;  %398 = vmatpush.msra.mxu3 %v294_v10  ;;  %v290_v17 = vld [vmem:[%s959_s0 + $0x8] sm:$0xff]  ;;  %v433_v18 = vld [vmem:[%s265_s4] sm:$0xf] }
  0x25   : > { %633 = vmatmul.msk.f32.vlgmr.msra.gmra.mxu2 %vm307_vm0, %v289_v12  ;;  %635 = vmatmul.msk.f32.vlgmr.msra.gmra.mxu3 %vm307_vm0, %v289_v12  ;;  %v435_v19 = vperm.slane %v433_v18, 0  ;;  %v436_v20 = vperm.slane %v433_v18, 1  ;;  %v437_v21 = vperm.slane %v433_v18, 2  ;;  %v438_v22 = vperm.slane %v433_v18, 3 }
  0x26   : > { %351 = vmatpush.msra.mxu1 %v296_v14  ;;  %329 = vmatpush.msra.mxu0 %v291_v15 }
  0x27   : > { %629 = vmatmul.msk.f32.vlgmr.msra.gmra.mxu0 %vm307_vm0, %v289_v12 }
  0x28   : > { %352 = vmatpush.msra.mxu1 %v292_v16 }
  0x29   : > { %631 = vmatmul.msk.f32.vlgmr.msra.gmra.mxu1 %vm307_vm0, %v289_v12 }
  0x2d   : > { %634 = vmatmul.msk.f32.gmra.mxu2 %vm307_vm0, %v290_v17  ;;  %636 = vmatmul.msk.f32.gmra.mxu3 %vm307_vm0, %v290_v17 }
  0x2f   : > { %630 = vmatmul.msk.f32.gmra.mxu0 %vm307_vm0, %v290_v17 }
  0x31   : > { %632 = vmatmul.msk.f32.gmra.mxu1 %vm307_vm0, %v290_v17 }
  0xa4   : > { %v331_v23 = vpop.f32.mrf.mxu0 }
  0xa5   : > { %v443_v25 = vadd.f32 %v435_v19, %v331_v23 }
  0xa6   : > { %v354_v24 = vpop.f32.mrf.mxu1 }
  0xa7   : > { %v444_v26 = vadd.f32 %v436_v20, %v354_v24  ;;  %v451_v29 = vmax.f32 %v443_v25, 0.0 }
  0xa8   : > { %v377_v27 = vpop.f32.mrf.mxu2  ;;  %v400_v28 = vpop.f32.mrf.mxu3 }
  0xa9   : > { %v452_v30 = vmax.f32 %v444_v26, 0.0  ;;  %v445_v31 = vadd.f32 %v437_v21, %v377_v27  ;;  %v446_v32 = vadd.f32 %v438_v22, %v400_v28  ;;  %459 = vst [vmem:[%s917_s6] sm:$0xff] %v451_v29 }
  0xab   : > { %v453_v33 = vmax.f32 %v445_v31, 0.0  ;;  %v454_v34 = vmax.f32 %v446_v32, 0.0  ;;  %460 = vst [vmem:[%s917_s6 + $0x8] sm:$0xff] %v452_v30 }
  0xac   : > { %v334_v35 = vpop.f32.mrf.mxu0 }
  0xad   : > { %461 = vst [vmem:[%s917_s6 + $0x10] sm:$0xff] %v453_v33  ;;  %v447_v37 = vadd.f32 %v435_v19, %v334_v35 }
  0xae   : > { %462 = vst [vmem:[%s917_s6 + $0x18] sm:$0xff] %v454_v34  ;;  %v357_v36 = vpop.f32.mrf.mxu1 }
  0xaf   : > { %v448_v38 = vadd.f32 %v436_v20, %v357_v36  ;;  %v455_v41 = vmax.f32 %v447_v37, 0.0 }
  0xb0   : > { %v380_v39 = vpop.f32.mrf.mxu2  ;;  %v403_v40 = vpop.f32.mrf.mxu3  ;;  %v492_v47 = vld [vmem:[%s917_s6] sm:$0xff] (%p857_p9) }
  0xb1   : > { %v456_v42 = vmax.f32 %v448_v38, 0.0  ;;  %v449_v43 = vadd.f32 %v437_v21, %v380_v39  ;;  %v450_v44 = vadd.f32 %v438_v22, %v403_v40  ;;  %463 = vst [vmem:[%s917_s6 + $0x20] sm:$0xff] %v455_v41 }
  0xb2   : > { %473 = sbr.rel (!%p857_p9) target bundleno = 191 (0xbf), region = 48  ;;  %v494_v48 = vld [vmem:[%s917_s6 + $0x8] sm:$0xff] (%p857_p9)  ;;  %493 = vst [vmem:[%s479_s10] sm:$0xff] (%p857_p9), %v492_v47 }
  0xb3   : > { %v457_v45 = vmax.f32 %v449_v43, 0.0  ;;  %v458_v46 = vmax.f32 %v450_v44, 0.0  ;;  %464 = vst [vmem:[%s917_s6 + $0x28] sm:$0xff] %v456_v42 }
  0xb4   : > { %v496_v49 = vld [vmem:[%s917_s6 + $0x10] sm:$0xff] (%p857_p9)  ;;  %495 = vst [vmem:[%s479_s10 + $0x8] sm:$0xff] (%p857_p9), %v494_v48 }
  0xb5   : > { %465 = vst [vmem:[%s917_s6 + $0x30] sm:$0xff] %v457_v45  ;;  %v498_v50 = vld [vmem:[%s917_s6 + $0x18] sm:$0xff] (%p857_p9) }
  0xb6   : > { %466 = vst [vmem:[%s917_s6 + $0x38] sm:$0xff] %v458_v46 }
  0xb7   : > { %497 = vst [vmem:[%s479_s10 + $0x10] sm:$0xff] %v496_v49 }
  0xb8   : > { %v500_v51 = vld [vmem:[%s917_s6 + $0x20] sm:$0xff]  ;;  %499 = vst [vmem:[%s479_s10 + $0x18] sm:$0xff] %v498_v50 }
  0xb9   : > { %501 = vst [vmem:[%s479_s10 + $0x80] sm:$0xff] %v500_v51 }
  0xba   : > { %v502_v52 = vld [vmem:[%s917_s6 + $0x28] sm:$0xff] }
  0xbb   : > { %503 = vst [vmem:[%s479_s10 + $0x88] sm:$0xff] %v502_v52 }
  0xbc   : > { %v504_v53 = vld [vmem:[%s917_s6 + $0x30] sm:$0xff] }
  0xbd   : > { %v506_v54 = vld [vmem:[%s917_s6 + $0x38] sm:$0xff]  ;;  %505 = vst [vmem:[%s479_s10 + $0x90] sm:$0xff] %v504_v53 }
  0xbe   : > { %507 = vst [vmem:[%s479_s10 + $0x98] sm:$0xff] %v506_v54 }
  0xbf PF: > { %s16_s17 = sadd.s32 1, %s782_s17   ;;  %s966_s12 = smov %s766_s13 }
  0xc0   : > { %p13_p2 = scmp.ge.s32.totalorder %s16_s17, 6   ;;  %s967_s13 = smov %s770_s14 }
  0xc1   : > { %s968_s14 = smov %s855_s24  ;;  %s969_s15 = smov %s778_s16 }
  0xc2   : > { %s970_s16 = smov %s972_s19  ;;  %15 = sbr.rel (!%p13_p2) target bundleno = 4 (0x4), region = 109 }
  0xc7   :  { %523 = vsyncpa [#allocation4], 1 }
  0xc8   :  { %525 = vsyncpa [#allocation4 + $0x1], 1 }

// kernel: transformer_forward.33
= control target key start
LH: loop header
LB: loop body
LE: loop exit
PB: predicated region body
PF: predicated region fallthrough
CT: control target
= control target key end

     0   :  { %s2011_s9 = smov 0   ;;  %s2013_s10 = smov 0   ;;  %s2401_s0 = inlined_call_operand.vmem [shape: f32[2,8,96], index: 0, kind: input, shape index: {}, may-alias: {0,1}]   ;;  %s2402_s1 = inlined_call_operand.vmem [shape: f32[2,8,96], index: 1, kind: input, shape index: {}, may-alias: {0,1}]   ;;  %s2403_s2 = inlined_call_operand.vmem [shape: f32[2,8,32], index: 2, kind: output, shape index: {}]  }
   0x1   :  { %s2015_s11 = smov 0  }
   0x2 LB: > { %s31_s12 = sadd.s32 1, %s1977_s10  ;;  %p1805_p0 = scmp.ge.s32.totalorder %s1981_s11, 1  ;;  %s1981_s11 = sphi %s2015_s11, %s12_s11   ;;  %s1977_s10 = sphi %s2013_s10, %s2405_s10   ;;  %s1973_s9 = sphi %s2011_s9, %s2404_s9  }
   0x3   : > { %p33_p1 = scmp.ge.s32.totalorder %s31_s12, 2  ;;  %p151_p2 = scmp.lt.s32.totalorder %s1981_s11, 3 }
   0x5   : > { %s2407_s12 = smov (%p33_p1, %s31_s12), 0  ;;  %p152_p3 = pnand %p1805_p0, %p151_p2 }
   0x6   : > { %p184_p4 = scmp.lt.s32.totalorder (!%p152_p3), %s1973_s9, 1  ;;  %s1983_s17 = smov (!%p152_p3), 120  }
   0x7   : > { %155 = sbr.rel (%p152_p3) target bundleno = 1410 (0x582), region = 28  ;;  %s1984_s18 = smov (!%p152_p3), 112  }
   0x8   : > { %s1985_s19 = smov (!%p152_p3), 104   ;;  %s1986_s23 = smov (!%p152_p3), 96  }
   0x9   : > { %s1989_s24 = smov (!%p152_p3), 64   ;;  %s1993_s25 = smov (!%p152_p3), 16  }
   0xa   : > { %s1994_s26 = smov (!%p152_p3), 24   ;;  %s1995_s27 = smov (!%p152_p3), 8  }
   0xc   : > { %s2409_s9 = smov (!%p184_p4, %s1973_s9), 1  ;;  %v1987_v10 = vmov 1983009808   ;;  %vm235_vm0 = vcmask 1047556   ;;  %v1988_v18 = vmov 1934713408  }
   0xd   : > { %s2029_s13 = sshll.u32 %s2409_s9, 3  ;;  %v240_v11 = vunpack.c.l.s4 %v1987_v10  ;;  %v264_v19 = vunpack.c.l.s4 %v1988_v18  ;;  %vm218_vm1 = vcmask 64512   ;;  %vm209_vm2 = vcmask 7168  }
   0xe   : > { %s197_s16 = scalar_lea.vmem %s2402_s1, %s2029_s13  ;;  %s190_s22 = scalar_lea.vmem %s2401_s0, %s2029_s13  ;;  %vm1703_vm3 = vcmask 130048   ;;  %vm1705_vm4 = vcmask 195584   ;;  %vm1707_vm5 = vcmask 261120  }
   0xf   : > { %v2035_v0 = vld [vmem:[%s197_s16] sm:$0xff]  ;;  %v2059_v14 = vunpack.c.0.s8 %v240_v11  ;;  %v2067_v28 = vunpack.c.0.s8 %v264_v19  ;;  %s204_s30 = scalar_lea.vmem %s2403_s2, %s2029_s13 }
  0x10   : > { %293 = vrot.lane.b32.xlu0 %v2035_v0, %s1983_s17  ;;  %295 = vrot.lane.b32.xlu1 %v2035_v0, %s1984_s18  ;;  %v2044_v1 = vld [vmem:[%s190_s22] sm:$0xff] }
  0x18   : > { %297 = vrot.lane.b32.xlu0 %v2035_v0, %s1985_s19 }
  0x20   : > { %228 = vrot.lane.b32.xlu0 %v2044_v1, %s1984_s18 }
  0x82   : > { %v2047_v2 = vpop.permute.xlu0 %293  ;;  %v2051_v4 = vpop.permute.xlu1 %295 }
  0x83   : > { %v1856_v3 = vpack.i.bf16 %v2035_v0, %v2047_v2  ;;  %v1922_v55 = vpack.i.bf16 %v2047_v2, %v2035_v0 }
  0x85   : > { %1857 = vrot.lane.b32.xlu1 %v1856_v3, %s1986_s23 }
  0x8a   : > { %v2053_v5 = vpop.permute.xlu0 %297 }
  0x8b   : > { %v1861_v6 = vpack.i.bf16 %v2051_v4, %v2053_v5 }
  0x8d   : > { %1862 = vrot.lane.b32.xlu2 %v1861_v6, %s1986_s23  ;;  %231 = vrot.lane.b32.xlu1 %v2044_v1, %s1985_s19 }
  0x92   : > { %v2090_v59 = vpop.permute.xlu0 %228 }
  0x95   : > { %225 = vrot.lane.b32.xlu2 %v2044_v1, %s1983_s17 }
  0xe7   : > { %v1863_v7 = vpop.permute.xlu2 %1862 }
  0xe8   : > { %v1865_v8 = vunpack.i.h.bf16 %v1863_v7  ;;  %v1864_v9 = vunpack.i.l.bf16 %v1863_v7 }
  0xea   : > { %v311_v12 = vrot.slane %v1865_v8, 4  ;;  %v323_v13 = vrot.slane %v1864_v9, 4 }
  0xef   : > { %v2086_v56 = vpop.permute.xlu2 %225 }
  0xf7   : > { %v1858_v15 = vpop.permute.xlu1 %1857 }
  0xf8   : > { %v1860_v16 = vunpack.i.h.bf16 %v1858_v15  ;;  %v1859_v17 = vunpack.i.l.bf16 %v1858_v15 }
  0xfa   : > { %v313_v20 = vrot.slane %v1860_v16, 4  ;;  %v312_v21 = vsel %vm235_vm0, %v311_v12, %v1860_v16  ;;  %v324_v22 = vsel %vm235_vm0, %v323_v13, %v1859_v17  ;;  %v325_v23 = vrot.slane %v1859_v17, 4 }
  0xfb   : > { %v318_v24 = vperm.slane %v312_v21, %v2059_v14  ;;  %v330_v25 = vperm.slane %v324_v22, %v2059_v14 }
  0xfc   : > { %v314_v26 = vsel %vm235_vm0, %v1865_v8, %v313_v20  ;;  %v326_v27 = vsel %vm235_vm0, %v1864_v9, %v325_v23 }
  0xfd   : > { %v334_v29 = vperm.slane %v326_v27, %v2059_v14  ;;  %v322_v30 = vperm.slane %v314_v26, %v2059_v14  ;;  %v335_v31 = vrot.slane %v330_v25, 4  ;;  %v337_v32 = vrot.slane %v318_v24, 4 }
  0xff   : > { %v336_v33 = vsel %vm235_vm0, %v335_v31, %v318_v24  ;;  %v347_v34 = vrot.slane %v334_v29, 4  ;;  %v349_v35 = vrot.slane %v322_v30, 4  ;;  %v338_v37 = vsel %vm235_vm0, %v330_v25, %v337_v32  ;;  %v2088_v58 = vpop.permute.xlu1 %231 }
 0x100   : > { %v342_v36 = vperm.slane %v336_v33, %v2067_v28  ;;  %v346_v43 = vperm.slane %v338_v37, %v2067_v28 }
 0x101   : > { %v348_v38 = vsel %vm235_vm0, %v347_v34, %v322_v30  ;;  %v350_v39 = vsel %vm235_vm0, %v334_v29, %v349_v35 }
 0x102   : > { %v354_v40 = vperm.slane %v348_v38, %v2067_v28  ;;  %v359_v41 = vrot.slane %v342_v36, 4  ;;  %v358_v42 = vperm.slane %v350_v39, %v2067_v28  ;;  %v361_v51 = vrot.slane %v346_v43, 4 }
 0x104   : > { %v1866_v44 = vpack.i.bf16 %v342_v36, %v354_v40  ;;  %v360_v45 = vsel %vm235_vm0, 0.0, %v359_v41  ;;  %v363_v46 = vrot.slane %v354_v40, 4  ;;  %v365_v48 = vrot.slane %v358_v42, 4 }
 0x105   : > { %v1880_v47 = vpack.i.bf16 %v346_v43, %v360_v45  ;;  %v362_v53 = vsel %vm235_vm0, 0.0, %v361_v51 }
 0x106   : > { %1867 = vxpose.xlu2.b32.start.end [1/1] (short) (narrow) %v1866_v44, 8  ;;  %v364_v49 = vsel %vm235_vm0, 0.0, %v363_v46  ;;  %v366_v52 = vsel %vm235_vm0, 0.0, %v365_v48 }
 0x107   : > { %1881 = vxpose.xlu1.b32.start.end [1/1] (short) (narrow) %v1880_v47, 8  ;;  %v1873_v50 = vpack.i.bf16 %v358_v42, %v364_v49  ;;  %v1887_v54 = vpack.i.bf16 %v362_v53, %v366_v52 }
 0x109   : > { %1874 = vxpose.xlu0.b32.start.end [1/1] (short) (narrow) %v1873_v50, 8 }
 0x10e   : > { %1888 = vxpose.xlu2.b32.start.end [1/1] (short) (narrow) %v1887_v54, 8 }
 0x161   : > { %1923 = vrot.lane.b32.xlu1 %v1922_v55, %s1989_s24 }
 0x19f   : > { %v1868_v57 = vpop.trf.xlu2 }
 0x1a0   : > { %v1872_v60 = vunpack.i.h.bf16 %v1868_v57  ;;  %v1869_v7 = vunpack.i.l.bf16 %v1868_v57 }
 0x1a2   : > { %v747_v6 = vrot.slane %v1872_v60, 4  ;;  %v771_v16 = vrot.slane %v1869_v7, 4 }
 0x1a7   : > { %v1889_v61 = vpop.trf.xlu2 }
 0x1a8   : > { %v1893_v62 = vunpack.i.h.bf16 %v1889_v61  ;;  %v1890_v63 = vunpack.i.l.bf16 %v1889_v61 }
 0x1aa   : > { %v757_v3 = vrot.slane %v1893_v62, 4  ;;  %v781_v2 = vrot.slane %v1890_v63, 4 }
 0x1ab   : > { %v1882_v8 = vpop.trf.xlu1 }
 0x1ac   : > { %v1886_v9 = vunpack.i.h.bf16 %v1882_v8  ;;  %v1883_v0 = vunpack.i.l.bf16 %v1882_v8 }
 0x1ad   : > { %v1875_v10 = vpop.trf.xlu0 }
 0x1ae   : > { %v745_v11 = vrot.slane %v1886_v9, 4  ;;  %v748_v12 = vsel %vm235_vm0, %v1886_v9, %v747_v6  ;;  %v758_v13 = vsel %vm235_vm0, %v757_v3, %v1883_v0  ;;  %v759_v15 = vrot.slane %v1883_v0, 4 }
 0x1af   : > { %v756_v17 = vperm.slane %v748_v12, %v2059_v14  ;;  %v1879_v18 = vunpack.i.h.bf16 %v1875_v10  ;;  %v1876_v21 = vunpack.i.l.bf16 %v1875_v10  ;;  %v764_v23 = vperm.slane %v758_v13, %v2059_v14 }
 0x1b0   : > { %v746_v19 = vsel %vm235_vm0, %v745_v11, %v1872_v60  ;;  %v760_v20 = vsel %vm235_vm0, %v1893_v62, %v759_v15 }
 0x1b1   : > { %v752_v22 = vperm.slane %v746_v19, %v2059_v14  ;;  %v768_v24 = vperm.slane %v760_v20, %v2059_v14  ;;  %v807_v25 = vrot.slane %v756_v17, 4  ;;  %v769_v26 = vrot.slane %v1879_v18, 4 }
 0x1b2   : > { %v772_v27 = vsel %vm235_vm0, %v1879_v18, %v771_v16  ;;  %v782_v29 = vsel %vm235_vm0, %v781_v2, %v1876_v21  ;;  %v783_v30 = vrot.slane %v1876_v21, 4  ;;  %v793_v42 = vrot.slane %v764_v23, 4 }
 0x1b3   : > { %v780_v31 = vperm.slane %v772_v27, %v2059_v14  ;;  %v788_v32 = vperm.slane %v782_v29, %v2059_v14  ;;  %v808_v33 = vsel %vm235_vm0, %v768_v24, %v807_v25  ;;  %v770_v34 = vsel %vm235_vm0, %v769_v26, %v1869_v7 }
 0x1b4   : > { %v784_v35 = vsel %vm235_vm0, %v1890_v63, %v783_v30  ;;  %v805_v36 = vrot.slane %v768_v24, 4  ;;  %v816_v37 = vperm.slane %v808_v33, %v2067_v28  ;;  %v776_v38 = vperm.slane %v770_v34, %v2059_v14 }
 0x1b5   : > { %v792_v39 = vperm.slane %v784_v35, %v2059_v14  ;;  %v831_v40 = vrot.slane %v780_v31, 4  ;;  %v795_v41 = vrot.slane %v752_v22, 4  ;;  %v817_v48 = vrot.slane %v788_v32, 4 }
 0x1b6   : > { %v819_v45 = vrot.slane %v776_v38, 4  ;;  %v806_v46 = vsel %vm235_vm0, %v805_v36, %v756_v17  ;;  %v855_v50 = vrot.slane %v816_v37, 4  ;;  %v794_v57 = vsel %vm235_vm0, %v793_v42, %v752_v22 }
 0x1b7   : > { %v829_v43 = vrot.slane %v792_v39, 4  ;;  %v832_v44 = vsel %vm235_vm0, %v792_v39, %v831_v40  ;;  %v796_v51 = vsel %vm235_vm0, %v764_v23, %v795_v41  ;;  %v812_v60 = vperm.slane %v806_v46, %v2067_v28 }
 0x1b8   : > { %v840_v47 = vperm.slane %v832_v44, %v2067_v28  ;;  %v820_v52 = vsel %vm235_vm0, %v788_v32, %v819_v45  ;;  %v818_v61 = vsel %vm235_vm0, %v817_v48, %v776_v38  ;;  %v804_v63 = vperm.slane %v796_v51, %v2067_v28 }
 0x1b9   : > { %v830_v49 = vsel %vm235_vm0, %v829_v43, %v780_v31  ;;  %v828_v54 = vperm.slane %v820_v52, %v2067_v28  ;;  %v824_v6 = vperm.slane %v818_v61, %v2067_v28  ;;  %v800_v7 = vperm.slane %v794_v57, %v2067_v28 }
 0x1ba   : > { %v836_v53 = vperm.slane %v830_v49, %v2067_v28  ;;  %v853_v55 = vrot.slane %v840_v47, 4  ;;  %v856_v9 = vsel %vm235_vm0, %v840_v47, %v855_v50  ;;  %v851_v12 = vrot.slane %v812_v60, 4 }
 0x1bb   : > { %v845_v3 = vrot.slane %v828_v54, 4  ;;  %v841_v13 = vrot.slane %v824_v6, 4  ;;  %v847_v15 = vrot.slane %v804_v63, 4  ;;  %v843_v16 = vrot.slane %v800_v7, 4 }
 0x1bc   : > { %v849_v62 = vrot.slane %v836_v53, 4  ;;  %v854_v2 = vsel %vm235_vm0, %v853_v55, %v816_v37  ;;  %v852_v17 = vsel %vm235_vm0, %v836_v53, %v851_v12  ;;  %v237_v23 = vrot.slane %v2044_v1, 4 }
 0x1bd   : > { %v846_v0 = vsel %vm235_vm0, %v845_v3, %v804_v63  ;;  %v842_v18 = vsel %vm235_vm0, %v841_v13, %v800_v7  ;;  %v848_v19 = vsel %vm235_vm0, %v828_v54, %v847_v15  ;;  %v844_v20 = vsel %vm235_vm0, %v824_v6, %v843_v16 }
 0x1be   : > { %v850_v8 = vsel %vm235_vm0, %v849_v62, %v812_v60  ;;  %v1894_v11 = vpack.i.bf16 %v846_v0, %v854_v2  ;;  %v1915_v21 = vpack.i.bf16 %v844_v20, %v852_v17  ;;  %v1901_v22 = vpack.i.bf16 %v848_v19, %v842_v18 }
 0x1bf   : > { %v1908_v10 = vpack.i.bf16 %v856_v9, %v850_v8  ;;  %v234_v24 = vrot.slane %v2090_v59, 4  ;;  %v238_v25 = vsel %vm235_vm0, %v2090_v59, %v237_v23  ;;  %v249_v26 = vrot.slane %v2086_v56, 4 }
 0x1c0   : > { %1895 = vxpose.xlu0.b32.start.end [1/1] (short) (narrow) %v1894_v11, 8  ;;  %v247_v29 = vrot.slane %v2088_v58, 4  ;;  %v246_v30 = vperm.slane %v238_v25, %v2059_v14 }
 0x1c1   : > { %1909 = vxpose.xlu2.b32.start.end [1/1] (short) (narrow) %v1908_v10, 8  ;;  %v236_v27 = vsel %vm235_vm0, %v234_v24, %v2044_v1  ;;  %v250_v32 = vsel %vm235_vm0, %v2088_v58, %v249_v26 }
 0x1c2   : > { %v242_v31 = vperm.slane %v236_v27, %v2059_v14  ;;  %v248_v33 = vsel %vm235_vm0, %v247_v29, %v2086_v56  ;;  %v273_v34 = vrot.slane %v246_v30, 4  ;;  %v258_v59 = vperm.slane %v250_v32, %v2059_v14 }
 0x1c3   : > { %v254_v36 = vperm.slane %v248_v33, %v2059_v14 }
 0x1c4   : > { %v261_v35 = vrot.slane %v242_v31, 4  ;;  %v271_v37 = vrot.slane %v258_v59, 4  ;;  %v274_v1 = vsel %vm235_vm0, %v258_v59, %v273_v34 }
 0x1c5   : > { %v259_v38 = vrot.slane %v254_v36, 4  ;;  %v282_v40 = vperm.slane %v274_v1, %v2067_v28 }
 0x1c6   : > { %v262_v39 = vsel %vm235_vm0, %v254_v36, %v261_v35  ;;  %v272_v58 = vsel %vm235_vm0, %v271_v37, %v246_v30 }
 0x1c7   : > { %v270_v41 = vperm.slane %v262_v39, %v2067_v28  ;;  %v260_v56 = vsel %vm235_vm0, %v259_v38, %v242_v31  ;;  %v278_v42 = vperm.slane %v272_v58, %v2067_v28  ;;  %v289_v43 = vrot.slane %v282_v40, 4 }
 0x1c8   : > { %1902 = vxpose.xlu0.b32.start.end [1/1] (short) (narrow) %v1901_v22, 8  ;;  %v266_v44 = vperm.slane %v260_v56, %v2067_v28 }
 0x1c9   : > { %1916 = vxpose.xlu2.b32.start.end [1/1] (short) (narrow) %v1915_v21, 8  ;;  %v285_v45 = vrot.slane %v270_v41, 4  ;;  %v287_v47 = vrot.slane %v278_v42, 4  ;;  %v290_v48 = vsel %vm235_vm0, 0.0, %v289_v43  ;;  %v446_v55 = vsel %vm235_vm0, %v289_v43, %v278_v42 }
 0x1ca   : > { %v283_v49 = vrot.slane %v266_v44, 4  ;;  %v451_v52 = vrot.slane %v290_v48, 4  ;;  %v450_v63 = vperm.slane %v446_v55, %v2059_v14 }
 0x1cb   : > { %v286_v50 = vsel %vm235_vm0, 0.0, %v285_v45  ;;  %v288_v53 = vsel %vm235_vm0, 0.0, %v287_v47  ;;  %v435_v8 = vsel %vm235_vm0, %v285_v45, %v266_v44 }
 0x1cc   : > { %v440_v54 = vrot.slane %v286_v50, 4  ;;  %v284_v61 = vsel %vm235_vm0, 0.0, %v283_v49  ;;  %v452_v3 = vsel %vm235_vm0, %v451_v52, %v288_v53  ;;  %v439_v12 = vperm.slane %v435_v8, %v2059_v14 }
 0x1cd   : > { %v456_v10 = vperm.slane %v452_v3, %v2059_v14  ;;  %v471_v15 = vrot.slane %v450_v63, 4 }
 0x1ce   : > { %v441_v9 = vsel %vm235_vm0, %v440_v54, %v284_v61  ;;  %v459_v20 = vrot.slane %v439_v12, 4 }
 0x1cf   : > { %v445_v13 = vperm.slane %v441_v9, %v2059_v14  ;;  %v472_v21 = vsel %vm235_vm0, %v456_v10, %v471_v15  ;;  %v469_v23 = vrot.slane %v456_v10, 4 }
 0x1d0   : > { %v480_v37 = vperm.slane %v472_v21, %v2067_v28 }
 0x1d1   : > { %v457_v22 = vrot.slane %v445_v13, 4  ;;  %v460_v59 = vsel %vm235_vm0, %v445_v13, %v459_v20  ;;  %v470_v35 = vsel %vm235_vm0, %v469_v23, %v450_v63  ;;  %v1992_v20 = vmov 0.0  }
 0x1d2   : > { %v468_v56 = vperm.slane %v460_v59, %v2067_v28  ;;  %v476_v42 = vperm.slane %v470_v35, %v2067_v28  ;;  %v485_v45 = vrot.slane %v480_v37, 4  ;;  %216 = vst.msk [vmem:[#allocation3 + $0x10] sm:$0xff] %vm209_vm2, %v1992_v20 }
 0x1d3   : > { %v458_v40 = vsel %vm235_vm0, %v457_v22, %v439_v12  ;;  %214 = vst.msk [vmem:[#allocation3] sm:$0xff] %vm209_vm2, %v1992_v20 }
 0x1d4   : > { %v464_v47 = vperm.slane %v458_v40, %v2067_v28  ;;  %v487_v52 = vrot.slane %v468_v56, 4  ;;  %215 = vst.msk [vmem:[#allocation3 + $0x8] sm:$0xff] %vm209_vm2, %v1992_v20 }
 0x1d5   : > { %217 = vst.msk [vmem:[#allocation3 + $0x18] sm:$0xff] %vm209_vm2, %v1992_v20 }
 0x1d6   : > { %v483_v61 = vrot.slane %v464_v47, 4  ;;  %219 = vst.msk [vmem:[#allocation4] sm:$0xff] %vm218_vm1, %v1992_v20 }
 0x1d7   : > { %220 = vst.msk [vmem:[#allocation4 + $0x8] sm:$0xff] %vm218_vm1, %v1992_v20 }
 0x1d8   : > { %v484_v9 = vsel %vm235_vm0, %v476_v42, %v483_v61  ;;  %221 = vst.msk [vmem:[#allocation4 + $0x10] sm:$0xff] %vm218_vm1, %v1992_v20 }
 0x1d9   : > { %222 = vst.msk [vmem:[#allocation4 + $0x18] sm:$0xff] %vm218_vm1, %v1992_v20 }
 0x25a   : > { %v1910_v46 = vpop.trf.xlu2 }
 0x25b   : > { %v1914_v51 = vunpack.i.h.bf16 %v1910_v46  ;;  %v1911_v6 = vunpack.i.l.bf16 %v1910_v46 }
 0x25d   : > { %v1131_v57 = vrot.slane %v1914_v51, 4  ;;  %v481_v51 = vrot.slane %v476_v42, 4 }
 0x262   : > { %v1917_v60 = vpop.trf.xlu2 }
 0x263   : > { %v1918_v62 = vunpack.i.l.bf16 %v1917_v60  ;;  %v1921_v25 = vunpack.i.h.bf16 %v1917_v60  ;;  %v486_v60 = vsel %vm235_vm0, %v485_v45, %v468_v56 }
 0x264   : > { %v1896_v7 = vpop.trf.xlu0 }
 0x265   : > { %v1897_v0 = vunpack.i.l.bf16 %v1896_v7  ;;  %v1132_v2 = vsel %vm235_vm0, %v1131_v57, %v1918_v62  ;;  %v1900_v16 = vunpack.i.h.bf16 %v1896_v7  ;;  %v488_v7 = vsel %vm235_vm0, %v480_v37, %v487_v52 }
 0x266   : > { %v1136_v17 = vperm.slane %v1132_v2, %v2059_v14 }
 0x267   : > { %v1125_v11 = vrot.slane %v1897_v0, 4  ;;  %v1113_v24 = vrot.slane %v1900_v16, 4  ;;  %v1990_v0 = vmov -inf  }
 0x268   : > { %v1149_v29 = vrot.slane %v1136_v17, 4  ;;  %210 = vst.msk [vmem:[#allocation2] sm:$0xff] %vm209_vm2, %v1990_v0 }
 0x269   : > { %v1126_v18 = vsel %vm235_vm0, %v1125_v11, %v1911_v6  ;;  %v482_v6 = vsel %vm235_vm0, %v481_v51, %v464_v47  ;;  %211 = vst.msk [vmem:[#allocation2 + $0x8] sm:$0xff] %vm209_vm2, %v1990_v0 }
 0x26a   : > { %v1130_v19 = vperm.slane %v1126_v18, %v2059_v14  ;;  %212 = vst.msk [vmem:[#allocation2 + $0x10] sm:$0xff] %vm209_vm2, %v1990_v0  ;;  %v1927_v18 = vpack.i.bf16 %v2053_v5, %v2051_v4  ;;  %v1924_v4 = vpop.permute.xlu1 %1923 }
 0x26b   : > { %213 = vst.msk [vmem:[#allocation2 + $0x18] sm:$0xff] %vm209_vm2, %v1990_v0  ;;  %v1925_v37 = vunpack.i.l.bf16 %v1924_v4 }
 0x26c   : > { %v1903_v26 = vpop.trf.xlu0  ;;  %v1151_v27 = vrot.slane %v1130_v19, 4  ;;  %v1150_v1 = vsel %vm235_vm0, %v1149_v29, %v1130_v19  ;;  %v1991_v19 = vmov 0  }
 0x26d   : > { %v1907_v30 = vunpack.i.h.bf16 %v1903_v26  ;;  %v1904_v31 = vunpack.i.l.bf16 %v1903_v26  ;;  %v1156_v43 = vperm.slane %v1150_v1, %v2067_v28  ;;  %1934 = vset.pattern.permute.xlu0 %v1991_v19  ;;  %1932 = vset.pattern.permute.xlu2 %v1991_v19 }
 0x26e   : > { %v1152_v32 = vsel %vm235_vm0, %v1136_v17, %v1151_v27  ;;  %1933 = vset.pattern.permute.xlu1 %v1991_v19 }
 0x26f   : > { %v1119_v33 = vrot.slane %v1907_v30, 4  ;;  %v1114_v34 = vsel %vm235_vm0, %v1113_v24, %v1904_v31  ;;  %v1160_v39 = vperm.slane %v1152_v32, %v2067_v28  ;;  %v1161_v55 = vrot.slane %v1156_v43, 4  ;;  %v2235_v5 = vld [vmem:[#allocation2] sm:$0xff] }
 0x270   : > { %v1118_v36 = vperm.slane %v1114_v34, %v2059_v14  ;;  %v2237_v22 = vld [vmem:[#allocation2 + $0x8] sm:$0xff] }
 0x271   : > { %v1120_v38 = vsel %vm235_vm0, %v1119_v33, %v1921_v25  ;;  %v1165_v49 = vrot.slane %v1160_v39, 4  ;;  %v2242_v25 = vld [vmem:[#allocation2 + $0x10] sm:$0xff] }
 0x272   : > { %v1124_v41 = vperm.slane %v1120_v38, %v2059_v14  ;;  %v1139_v58 = vrot.slane %v1118_v36, 4  ;;  %v2264_v33 = vld [vmem:[#allocation2 + $0x18] sm:$0xff] }
 0x274   : > { %v1140_v44 = vsel %vm235_vm0, %v1124_v41, %v1139_v58  ;;  %v1137_v46 = vrot.slane %v1124_v41, 4 }
 0x275   : > { %v1148_v48 = vperm.slane %v1140_v44, %v2067_v28 }
 0x276   : > { %v1138_v50 = vsel %vm235_vm0, %v1137_v46, %v1118_v36  ;;  %v1926_v36 = vunpack.i.h.bf16 %v1924_v4 }
 0x277   : > { %v1166_v53 = vsel %vm235_vm0, %v1165_v49, %v1148_v48  ;;  %v1144_v54 = vperm.slane %v1138_v50, %v2067_v28  ;;  %v1167_v57 = vrot.slane %v1148_v48, 4 }
 0x278   : > { %1234 = vmatpush.msra.mxu2 %v1166_v53  ;;  %v393_v38 = vrot.slane %v1926_v36, 4 }
 0x279   : > { %1811 = vmatmul.msk.f32.vlgmr.msra.gmra.mxu2 %vm218_vm1, %v486_v60  ;;  %v1162_v62 = vsel %vm235_vm0, %v1161_v55, %v1144_v54  ;;  %v1168_v63 = vsel %vm235_vm0, %v1160_v39, %v1167_v57  ;;  %v1163_v3 = vrot.slane %v1144_v54, 4  ;;  %v381_v39 = vrot.slane %v1925_v37, 4 }
 0x27a   : > { %1188 = vmatpush.msra.mxu0 %v1162_v62  ;;  %1257 = vmatpush.msra.mxu3 %v1168_v63 }
 0x27b   : > { %1809 = vmatmul.msk.f32.vlgmr.msra.gmra.mxu0 %vm218_vm1, %v482_v6  ;;  %1812 = vmatmul.msk.f32.vlgmr.msra.gmra.mxu3 %vm218_vm1, %v488_v7  ;;  %v1164_v8 = vsel %vm235_vm0, %v1156_v43, %v1163_v3 }
 0x27c   : > { %1211 = vmatpush.msra.mxu1 %v1164_v8 }
 0x27d   : > { %1810 = vmatmul.msk.f32.vlgmr.msra.gmra.mxu1 %vm218_vm1, %v484_v9 }
 0x2f8   : > { %v2208_v2 = vpop.f32.mrf.mxu0 }
 0x2f9   : > { %v1266_v10 = vsel %vm218_vm1, %v2208_v2, -inf }
 0x2fa   : > { %v2212_v11 = vpop.f32.mrf.mxu1  ;;  %1267 = vmax.xlane.f32.xlu2 %v1266_v10 }
 0x2fb   : > { %v1269_v12 = vsel %vm218_vm1, %v2212_v11, -inf }
 0x2fc   : > { %v2216_v13 = vpop.f32.mrf.mxu2  ;;  %1270 = vmax.xlane.f32.xlu1 %v1269_v12 }
 0x2fd   : > { %v1272_v15 = vsel %vm218_vm1, %v2216_v13, -inf }
 0x2fe   : > { %1273 = vmax.xlane.f32.xlu0 %v1272_v15  ;;  %v2220_v16 = vpop.f32.mrf.mxu3 }
 0x2ff   : > { %v1275_v17 = vsel %vm218_vm1, %v2220_v16, -inf }
 0x304   : > { %1276 = vmax.xlane.f32.xlu1 %v1275_v17 }
 0x312   : > { %1928 = vrot.lane.b32.xlu0 %v1927_v18, %s1989_s24 }
 0x36d   : > { %v1268_v21 = vpop.xlane.xlu2 %1267 }
 0x36e   : > { %v2240_v23 = vmax.f32 %v2235_v5, %v1268_v21 }
 0x36f   : > { %v1271_v24 = vpop.xlane.xlu1 %1270 }
 0x370   : > { %v1282_v26 = vsub.f32 %v2235_v5, %v2240_v23  ;;  %1537 = vst.msk [vmem:[#allocation2] sm:$0xff] %vm209_vm2, %v2240_v23  ;;  %v2249_v27 = vmax.f32 %v2237_v22, %v1271_v24  ;;  %1296 = vperm.xlu0 %1934, %v2240_v23  }
 0x371   : > { %v1274_v29 = vpop.xlane.xlu0 %1273 }
 0x372   : > { %v1283_v30 = vsub.f32 %v2237_v22, %v2249_v27  ;;  %1538 = vst.msk [vmem:[#allocation2 + $0x8] sm:$0xff] %vm209_vm2, %v2249_v27  ;;  %v2257_v31 = vmax.f32 %v2242_v25, %v1274_v29 }
 0x374   : > { %v1284_v32 = vsub.f32 %v2242_v25, %v2257_v31  ;;  %1539 = vst.msk [vmem:[#allocation2 + $0x10] sm:$0xff] %vm209_vm2, %v2257_v31  ;;  %1306 = vperm.xlu2 %1932, %v2257_v31   ;;  %v1286_v31 = vmul.f32 1.442695, %v1282_v26  ;;  %v1329_v26 = vld [vmem:[#allocation3 + $0x18] sm:$0xff] }
 0x377   : > { %v1277_v34 = vpop.xlane.xlu1 %1276 }
 0x378   : > { %v2267_v59 = vmax.f32 %v2264_v33, %v1277_v34 }
 0x37a   : > { %v1285_v35 = vsub.f32 %v2264_v33, %v2267_v59  ;;  %1540 = vst.msk [vmem:[#allocation2 + $0x18] sm:$0xff] %vm209_vm2, %v2267_v59  ;;  %1311 = vperm.xlu1 %1933, %v2267_v59   ;;  %v1328_v33 = vld [vmem:[#allocation3 + $0x10] sm:$0xff] }
 0x382   : > { %1301 = vperm.xlu1 %1933, %v2249_v27   ;;  %v1326_v27 = vld [vmem:[#allocation3] sm:$0xff] }
 0x384   : > { %v1929_v1 = vpop.permute.xlu0 %1928 }
 0x385   : > { %v1931_v40 = vunpack.i.h.bf16 %v1929_v1  ;;  %v1930_v41 = vunpack.i.l.bf16 %v1929_v1 }
 0x387   : > { %v391_v58 = vrot.slane %v1931_v40, 4  ;;  %v394_v56 = vsel %vm235_vm0, %v1931_v40, %v393_v38  ;;  %v379_v42 = vrot.slane %v1930_v41, 4  ;;  %v382_v43 = vsel %vm235_vm0, %v1930_v41, %v381_v39 }
 0x388   : > { %v402_v44 = vperm.slane %v394_v56, %v2059_v14  ;;  %v390_v45 = vperm.slane %v382_v43, %v2059_v14 }
 0x389   : > { %v392_v46 = vsel %vm235_vm0, %v391_v58, %v1926_v36  ;;  %v380_v47 = vsel %vm235_vm0, %v379_v42, %v1925_v37 }
 0x38a   : > { %v398_v48 = vperm.slane %v392_v46, %v2059_v14  ;;  %v415_v49 = vrot.slane %v402_v44, 4  ;;  %v386_v50 = vperm.slane %v380_v47, %v2059_v14  ;;  %v417_v51 = vrot.slane %v390_v45, 4 }
 0x38c   : > { %v403_v52 = vrot.slane %v398_v48, 4  ;;  %v405_v53 = vrot.slane %v386_v50, 4  ;;  %v416_v54 = vsel %vm235_vm0, %v415_v49, %v390_v45  ;;  %v418_v55 = vsel %vm235_vm0, %v402_v44, %v417_v51 }
 0x38d   : > { %v422_v57 = vperm.slane %v416_v54, %v2067_v28  ;;  %v426_v60 = vperm.slane %v418_v55, %v2067_v28 }
 0x38e   : > { %v404_v61 = vsel %vm235_vm0, %v403_v52, %v386_v50  ;;  %v406_v62 = vsel %vm235_vm0, %v398_v48, %v405_v53 }
 0x38f   : > { %v410_v63 = vperm.slane %v404_v61, %v2067_v28  ;;  %v414_v3 = vperm.slane %v406_v62, %v2067_v28  ;;  %v431_v6 = vrot.slane %v422_v57, 4  ;;  %v433_v7 = vrot.slane %v426_v60, 4 }
 0x391   : > { %v429_v8 = vrot.slane %v414_v3, 4  ;;  %v434_v9 = vsel %vm235_vm0, 0.0, %v433_v7  ;;  %v427_v0 = vrot.slane %v410_v63, 4  ;;  %v1394_v12 = vsel %vm235_vm0, %v433_v7, %v422_v57 }
 0x392   : > { %v1399_v10 = vrot.slane %v434_v9, 4  ;;  %v432_v17 = vsel %vm235_vm0, 0.0, %v431_v6  ;;  %v1398_v19 = vperm.slane %v1394_v12, %v2059_v14 }
 0x393   : > { %v430_v15 = vsel %vm235_vm0, 0.0, %v429_v8  ;;  %v1383_v18 = vsel %vm235_vm0, %v429_v8, %v410_v63  ;;  %v428_v24 = vsel %vm235_vm0, 0.0, %v427_v0 }
 0x394   : > { %v1387_v20 = vperm.slane %v1383_v18, %v2059_v14  ;;  %v1388_v4 = vrot.slane %v430_v15, 4  ;;  %v1400_v21 = vsel %vm235_vm0, %v1399_v10, %v432_v17  ;;  %v1419_v34 = vrot.slane %v1398_v19, 4 }
 0x395   : > { %v1404_v29 = vperm.slane %v1400_v21, %v2059_v14 }
 0x396   : > { %v1389_v36 = vsel %vm235_vm0, %v1388_v4, %v428_v24  ;;  %v1407_v37 = vrot.slane %v1387_v20, 4 }
 0x397   : > { %v1393_v1 = vperm.slane %v1389_v36, %v2059_v14  ;;  %v1420_v38 = vsel %vm235_vm0, %v1404_v29, %v1419_v34  ;;  %v1417_v39 = vrot.slane %v1404_v29, 4 }
 0x398   : > { %v1428_v40 = vperm.slane %v1420_v38, %v2067_v28 }
 0x399   : > { %v1408_v41 = vsel %vm235_vm0, %v1393_v1, %v1407_v37  ;;  %v1405_v58 = vrot.slane %v1393_v1, 4  ;;  %v1418_v56 = vsel %vm235_vm0, %v1417_v39, %v1398_v19  ;;  %v1327_v1 = vld [vmem:[#allocation3 + $0x8] sm:$0xff] }
 0x39a   : > { %v1416_v42 = vperm.slane %v1408_v41, %v2067_v28  ;;  %v1433_v43 = vrot.slane %v1428_v40, 4  ;;  %v1424_v44 = vperm.slane %v1418_v56, %v2067_v28  ;;  %v1357_v56 = vld [vmem:[#allocation4 + $0x10] sm:$0xff] }
 0x39b   : > { %v1406_v45 = vsel %vm235_vm0, %v1405_v58, %v1387_v20  ;;  %v1288_v20 = vmul.f32 1.442695, %v1283_v30 }
 0x39c   : > { %v1434_v46 = vsel %vm235_vm0, %v1433_v43, %v1416_v42  ;;  %v1412_v47 = vperm.slane %v1406_v45, %v2067_v28  ;;  %v1429_v48 = vrot.slane %v1424_v44, 4  ;;  %v1435_v49 = vrot.slane %v1416_v42, 4  ;;  %v1355_v43 = vld [vmem:[#allocation4] sm:$0xff] }
 0x39d   : > { %1501 = vmatpush.msrb.mxu2 %v1434_v46 }
 0x39e   : > { %v1430_v50 = vsel %vm235_vm0, %v1429_v48, %v1412_v47  ;;  %v1436_v51 = vsel %vm235_vm0, %v1428_v40, %v1435_v49  ;;  %v1431_v52 = vrot.slane %v1412_v47, 4 }
 0x39f   : > { %1455 = vmatpush.msrb.mxu0 %v1430_v50  ;;  %1524 = vmatpush.msrb.mxu3 %v1436_v51  ;;  %v1358_v50 = vld [vmem:[#allocation4 + $0x18] sm:$0xff] }
 0x3a0   : > { %v1432_v53 = vsel %vm235_vm0, %v1424_v44, %v1431_v52 }
 0x3a1   : > { %1478 = vmatpush.msrb.mxu1 %v1432_v53 }
 0x3ce   : > { %v1307_v54 = vpop.permute.xlu2 %1306 }
 0x3cf   : > { %v1316_v55 = vsub.f32 %v2216_v13, %v1307_v54 }
 0x3d1   : > { %v1322_v57 = vmul.f32 1.442695, %v1316_v55 }
 0x3d3   : > { %1935 = vpow2.f32 %v1322_v57 }
 0x3d9   : > { %v1936_v60 = vpop.eup %1935 }
 0x3da   : > { %1815 = vmatmul.msk.f32.vlgmr.msrb.gmra.mxu2 %vm218_vm1, %v1936_v60  ;;  %v1340_v61 = vsel %vm218_vm1, %v1936_v60, 0.0 }
 0x3db   : > { %1341 = vadd.xlane.f32.xlu2 %v1340_v61 }
 0x3e2   : > { %v1297_v62 = vpop.permute.xlu0 %1296 }
 0x3e3   : > { %v1314_v63 = vsub.f32 %v2208_v2, %v1297_v62  ;;  %v1356_v62 = vld [vmem:[#allocation4 + $0x8] sm:$0xff] }
 0x3e5   : > { %v1318_v3 = vmul.f32 1.442695, %v1314_v63 }
 0x3e7   : > { %1937 = vpow2.f32 %v1318_v3 }
 0x3ec   : > { %v1312_v6 = vpop.permute.xlu1 %1311 }
 0x3ed   : > { %v1938_v7 = vpop.eup %1937  ;;  %v1317_v8 = vsub.f32 %v2220_v16, %v1312_v6  ;;  %v1290_v16 = vmul.f32 1.442695, %v1284_v32 }
 0x3ee   : > { %1813 = vmatmul.msk.f32.vlgmr.msrb.gmra.mxu0 %vm218_vm1, %v1938_v7  ;;  %v1334_v13 = vsel %vm218_vm1, %v1938_v7, 0.0 }
 0x3ef   : > { %v1324_v9 = vmul.f32 1.442695, %v1317_v8  ;;  %1335 = vadd.xlane.f32.xlu1 %v1334_v13 }
 0x3f1   : > { %1939 = vpow2.f32 %v1324_v9 }
 0x3f4   : > { %v1302_v0 = vpop.permute.xlu1 %1301 }
 0x3f5   : > { %v1315_v10 = vsub.f32 %v2212_v11, %v1302_v0  ;;  %v1292_v11 = vmul.f32 1.442695, %v1285_v35 }
 0x3f7   : > { %v1940_v12 = vpop.eup %1939  ;;  %v1320_v15 = vmul.f32 1.442695, %v1315_v10 }
 0x3f8   : > { %1816 = vmatmul.msk.f32.vlgmr.msrb.gmra.mxu3 %vm218_vm1, %v1940_v12  ;;  %v1343_v2 = vsel %vm218_vm1, %v1940_v12, 0.0 }
 0x3f9   : > { %1941 = vpow2.f32 %v1320_v15  ;;  %1344 = vadd.xlane.f32.xlu0 %v1343_v2 }
 0x3fa   : > { %1943 = vpow2.f32 %v1290_v16 }
 0x3fb   : > { %1945 = vpow2.f32 %v1292_v11 }
 0x3fc   : > { %1947 = vpow2.f32 %v1288_v20 }
 0x3fd   : > { %1949 = vpow2.f32 %v1286_v31 }
 0x3ff   : > { %v1942_v17 = vpop.eup %1941 }
 0x400   : > { %1814 = vmatmul.msk.f32.vlgmr.msrb.gmra.mxu1 %vm218_vm1, %v1942_v17  ;;  %v1337_v18 = vsel %vm218_vm1, %v1942_v17, 0.0  ;;  %v1944_v19 = vpop.eup %1943 }
 0x401   : > { %1338 = vadd.xlane.f32.xlu2 %v1337_v18  ;;  %v1946_v25 = vpop.eup %1945  ;;  %v1332_v59 = vmul.f32 %v1944_v19, %v1328_v33 }
 0x402   : > { %v1948_v32 = vpop.eup %1947  ;;  %v1333_v29 = vmul.f32 %v1946_v25, %v1329_v26 }
 0x403   : > { %v1950_v4 = vpop.eup %1949  ;;  %v1331_v39 = vmul.f32 %v1948_v32, %v1327_v1 }
 0x404   : > { %v1330_v24 = vmul.f32 %v1950_v4, %v1326_v27 }
 0x408   : > { %1371 = vperm.xlu1 %1933, %v1944_v19  }
 0x40d   : > { %1376 = vperm.xlu0 %1934, %v1946_v25  }
 0x415   : > { %1366 = vperm.xlu0 %1934, %v1948_v32  }
 0x419   : > { %1361 = vperm.xlu2 %1932, %v1950_v4  }
 0x44e   : > { %v1342_v35 = vpop.xlane.xlu2 %1341 }
 0x44f   : > { %v1348_v21 = vadd.f32 %v1342_v35, %v1332_v59 }
 0x451   : > { %1353 = vst.msk [vmem:[#allocation3 + $0x10] sm:$0xff] %vm209_vm2, %v1348_v21 }
 0x458   : > { %v1550_v22 = vld [vmem:[#allocation3 + $0x10] sm:$0xff] }
 0x459   : > { %1951 = vrcp.f32 %v1550_v22 }
 0x45d   : > { %v1503_v45 = vpop.f32.mrf.mxu2 }
 0x45f   : > { %v1952_v30 = vpop.eup %1951 }
 0x460   : > { %1568 = vperm.xlu2 %1932, %v1952_v30  }
 0x462   : > { %v1336_v5 = vpop.xlane.xlu1 %1335 }
 0x463   : > { %v1346_v23 = vadd.f32 %v1336_v5, %v1330_v24 }
 0x465   : > { %1351 = vst.msk [vmem:[#allocation3] sm:$0xff] %vm209_vm2, %v1346_v23 }
 0x46b   : > { %v1457_v51 = vpop.f32.mrf.mxu0 }
 0x46c   : > { %v1345_v34 = vpop.xlane.xlu0 %1344  ;;  %v1548_v36 = vld [vmem:[#allocation3] sm:$0xff] }
 0x46d   : > { %v1349_v37 = vadd.f32 %v1345_v34, %v1333_v29  ;;  %1953 = vrcp.f32 %v1548_v36 }
 0x46f   : > { %1354 = vst.msk [vmem:[#allocation3 + $0x18] sm:$0xff] %vm209_vm2, %v1349_v37 }
 0x473   : > { %v1954_v38 = vpop.eup %1953 }
 0x474   : > { %1558 = vperm.xlu1 %1933, %v1954_v38   ;;  %v1339_v40 = vpop.xlane.xlu2 %1338 }
 0x475   : > { %v1347_v41 = vadd.f32 %v1339_v40, %v1331_v39 }
 0x476   : > { %v1551_v58 = vld [vmem:[#allocation3 + $0x18] sm:$0xff] }
 0x477   : > { %1352 = vst.msk [vmem:[#allocation3 + $0x8] sm:$0xff] %vm209_vm2, %v1347_v41  ;;  %1955 = vrcp.f32 %v1551_v58 }
 0x47a   : > { %v1372_v42 = vpop.permute.xlu1 %1371 }
 0x47b   : > { %v1381_v44 = vmul.f32 %v1372_v42, %v1357_v56  ;;  %v1526_v57 = vpop.f32.mrf.mxu3 }
 0x47c   : > { %v1362_v46 = vpop.permute.xlu2 %1361 }
 0x47d   : > { %v1956_v47 = vpop.eup %1955  ;;  %v1531_v48 = vadd.f32 %v1503_v45, %v1381_v44  ;;  %v1379_v49 = vmul.f32 %v1362_v46, %v1355_v43  ;;  %v1480_v6 = vpop.f32.mrf.mxu1 }
 0x47e   : > { %1573 = vperm.xlu0 %1934, %v1956_v47   ;;  %v1549_v52 = vld [vmem:[#allocation3 + $0x8] sm:$0xff] }
 0x47f   : > { %1535 = vst.msk [vmem:[#allocation4 + $0x10] sm:$0xff] %vm218_vm1, %v1531_v48  ;;  %v1529_v53 = vadd.f32 %v1457_v51, %v1379_v49  ;;  %v1377_v54 = vpop.permute.xlu0 %1376  ;;  %1957 = vrcp.f32 %v1549_v52 }
 0x480   : > { %v1382_v55 = vmul.f32 %v1377_v54, %v1358_v50 }
 0x481   : > { %1533 = vst.msk [vmem:[#allocation4] sm:$0xff] %vm218_vm1, %v1529_v53 }
 0x482   : > { %v1532_v60 = vadd.f32 %v1526_v57, %v1382_v55 }
 0x484   : > { %1536 = vst.msk [vmem:[#allocation4 + $0x18] sm:$0xff] %vm218_vm1, %v1532_v60 }
 0x485   : > { %v1958_v61 = vpop.eup %1957 }
 0x486   : > { %1563 = vperm.xlu2 %1932, %v1958_v61   ;;  %v1546_v10 = vld [vmem:[#allocation4 + $0x10] sm:$0xff] }
 0x487   : > { %v1367_v63 = vpop.permute.xlu0 %1366 }
 0x488   : > { %v1380_v3 = vmul.f32 %v1367_v63, %v1356_v62  ;;  %v1544_v9 = vld [vmem:[#allocation4] sm:$0xff] }
 0x48a   : > { %v1530_v7 = vadd.f32 %v1480_v6, %v1380_v3 }
 0x48b   : > { %v1547_v25 = vld [vmem:[#allocation4 + $0x18] sm:$0xff] }
 0x48c   : > { %1534 = vst.msk [vmem:[#allocation4 + $0x8] sm:$0xff] %vm218_vm1, %v1530_v7 }
 0x493   : > { %v1545_v16 = vld [vmem:[#allocation4 + $0x8] sm:$0xff] }
 0x4ba   : > { %v1569_v8 = vpop.permute.xlu2 %1568 }
 0x4bb   : > { %v1578_v12 = vmul.f32 %v1569_v8, %v1546_v10 }
 0x4bd   : > { %v1580_v17 = vrot.slane %v1578_v12, 4 }
 0x4e0   : > { %v1564_v2 = vpop.permute.xlu2 %1563 }
 0x4e1   : > { %v1577_v18 = vmul.f32 %v1564_v2, %v1545_v16 }
 0x4e3   : > { %v1594_v32 = vrot.slane %v1577_v18, 4 }
 0x4e6   : > { %v1559_v13 = vpop.permute.xlu1 %1558 }
 0x4e7   : > { %v1576_v0 = vmul.f32 %v1559_v13, %v1544_v9 }
 0x4e9   : > { %v1582_v15 = vrot.slane %v1576_v0, 4  ;;  %v1581_v19 = vsel %vm235_vm0, %v1580_v17, %v1576_v0 }
 0x4ea   : > { %v1587_v33 = vperm.slane %v1581_v19, %v2059_v14 }
 0x4eb   : > { %v1583_v11 = vsel %vm235_vm0, %v1578_v12, %v1582_v15 }
 0x4ec   : > { %v1591_v20 = vperm.slane %v1583_v11, %v2059_v14  ;;  %v1606_v30 = vrot.slane %v1587_v33, 4 }
 0x4ee   : > { %v1618_v21 = vrot.slane %v1591_v20, 4 }
 0x4f0   : > { %v1574_v31 = vpop.permute.xlu0 %1573 }
 0x4f1   : > { %v1579_v4 = vmul.f32 %v1574_v31, %v1547_v25 }
 0x4f3   : > { %v1592_v59 = vrot.slane %v1579_v4, 4  ;;  %v1595_v35 = vsel %vm235_vm0, %v1579_v4, %v1594_v32 }
 0x4f4   : > { %v1603_v22 = vperm.slane %v1595_v35, %v2059_v14 }
 0x4f5   : > { %v1593_v27 = vsel %vm235_vm0, %v1592_v59, %v1577_v18 }
 0x4f6   : > { %v1599_v24 = vperm.slane %v1593_v27, %v2059_v14  ;;  %v1616_v5 = vrot.slane %v1603_v22, 4  ;;  %v1619_v23 = vsel %vm235_vm0, %v1603_v22, %v1618_v21 }
 0x4f7   : > { %v1627_v26 = vperm.slane %v1619_v23, %v2067_v28 }
 0x4f8   : > { %v1604_v29 = vrot.slane %v1599_v24, 4  ;;  %v1607_v34 = vsel %vm235_vm0, %v1599_v24, %v1606_v30  ;;  %v1617_v36 = vsel %vm235_vm0, %v1616_v5, %v1591_v20 }
 0x4f9   : > { %v1615_v37 = vperm.slane %v1607_v34, %v2067_v28  ;;  %v1623_v1 = vperm.slane %v1617_v36, %v2067_v28  ;;  %v1634_v38 = vrot.slane %v1627_v26, 4 }
 0x4fa   : > { %v1605_v39 = vsel %vm235_vm0, %v1604_v29, %v1587_v33 }
 0x4fb   : > { %v1611_v40 = vperm.slane %v1605_v39, %v2067_v28  ;;  %v1630_v41 = vrot.slane %v1615_v37, 4  ;;  %v1632_v58 = vrot.slane %v1623_v1, 4  ;;  %v1635_v56 = vsel %vm235_vm0, 0.0, %v1634_v38 }
 0x4fc   : > { %v1647_v42 = vsel %vm235_vm0, %v1634_v38, %v1623_v1  ;;  %v1652_v43 = vrot.slane %v1635_v56, 4 }
 0x4fd   : > { %v1631_v44 = vsel %vm235_vm0, 0.0, %v1630_v41  ;;  %v1628_v45 = vrot.slane %v1611_v40, 4  ;;  %v1633_v46 = vsel %vm235_vm0, 0.0, %v1632_v58  ;;  %v1636_v47 = vsel %vm235_vm0, %v1630_v41, %v1611_v40 }
 0x4fe   : > { %v1641_v48 = vrot.slane %v1631_v44, 4  ;;  %v1640_v49 = vperm.slane %v1636_v47, %v2059_v14  ;;  %v1651_v50 = vperm.slane %v1647_v42, %v2059_v14  ;;  %v1653_v51 = vsel %vm235_vm0, %v1652_v43, %v1633_v46 }
 0x4ff   : > { %v1629_v52 = vsel %vm235_vm0, 0.0, %v1628_v45  ;;  %v1657_v53 = vperm.slane %v1653_v51, %v2059_v14 }
 0x500   : > { %v1642_v54 = vsel %vm235_vm0, %v1641_v48, %v1629_v52  ;;  %v1660_v55 = vrot.slane %v1640_v49, 4  ;;  %v1672_v57 = vrot.slane %v1651_v50, 4 }
 0x501   : > { %v1646_v60 = vperm.slane %v1642_v54, %v2059_v14  ;;  %v1670_v61 = vrot.slane %v1657_v53, 4 }
 0x502   : > { %v1673_v62 = vsel %vm235_vm0, %v1657_v53, %v1672_v57 }
 0x503   : > { %v1661_v63 = vsel %vm235_vm0, %v1646_v60, %v1660_v55  ;;  %v1681_v3 = vperm.slane %v1673_v62, %v2067_v28  ;;  %v1658_v6 = vrot.slane %v1646_v60, 4  ;;  %v1671_v7 = vsel %vm235_vm0, %v1670_v61, %v1651_v50 }
 0x504   : > { %v1669_v8 = vperm.slane %v1661_v63, %v2067_v28  ;;  %v1677_v13 = vperm.slane %v1671_v7, %v2067_v28 }
 0x505   : > { %v1686_v9 = vrot.slane %v1681_v3, 4  ;;  %v1659_v0 = vsel %vm235_vm0, %v1658_v6, %v1640_v49 }
 0x506   : > { %v1688_v10 = vrot.slane %v1669_v8, 4  ;;  %v1665_v14 = vperm.slane %v1659_v0, %v2067_v28  ;;  %v1682_v12 = vrot.slane %v1677_v13, 4 }
 0x507   : > { %v1687_v15 = vsel %vm235_vm0, %v1686_v9, %v1669_v8 }
 0x508   : > { %1695 = vrot.lane.b32.xlu0 %v1687_v15, %s1993_s25  ;;  %v1689_v2 = vsel %vm235_vm0, %v1681_v3, %v1688_v10  ;;  %v1684_v16 = vrot.slane %v1665_v14, 4  ;;  %v1683_v17 = vsel %vm235_vm0, %v1682_v12, %v1665_v14 }
 0x509   : > { %1699 = vrot.lane.b32.xlu2 %v1689_v2, %s1994_s26 }
 0x50a   : > { %v1685_v18 = vsel %vm235_vm0, %v1677_v13, %v1684_v16 }
 0x50b   : > { %1691 = vrot.lane.b32.xlu1 %v1685_v18, %s1995_s27 }
 0x563   : > { %v1700_v20 = vpop.permute.xlu2 %1699 }
 0x57a   : > { %v1696_v11 = vpop.permute.xlu0 %1695 }
 0x57d   : > { %v1692_v28 = vpop.permute.xlu1 %1691 }
 0x57e   : > { %v1702_v19 = vsel %vm218_vm1, %v1683_v17, %v1692_v28 }
 0x57f   : > { %v1704_v25 = vsel %vm1703_vm3, %v1702_v19, %v1696_v11 }
 0x580   : > { %v1706_v31 = vsel %vm1705_vm4, %v1704_v25, %v1700_v20 }
 0x581   : > { %1708 = vst.msk [vmem:[%s204_s30] sm:$0xff] %vm1707_vm5, %v1706_v31 }
 0x582 PF: > { %s12_s11 = sadd.s32 1, %s1981_s11   ;;  %s2404_s9 = smov %s1977_s10 }
 0x583   : > { %p9_p5 = scmp.ge.s32.totalorder %s12_s11, 4   ;;  %s2405_s10 = smov %s2407_s12 }
 0x585   :  { %11 = sbr.rel (!%p9_p5) target bundleno = 2 (0x2), region = 69 }

// kernel: transformer_forward.40
= control target key start
LH: loop header
LB: loop body
LE: loop exit
PB: predicated region body
PF: predicated region fallthrough
CT: control target
= control target key end

     0   :  { %s767_s12 = smov 0   ;;  %s769_s13 = smov 0   ;;  %s915_s0 = inlined_call_operand.vmem [shape: f32[16,32], index: 0, kind: input, shape index: {}]   ;;  %s916_s1 = inlined_call_operand.vmem [shape: f32[32,2048], index: 1, kind: input, shape index: {}]   ;;  %s917_s2 = inlined_call_operand.vmem [shape: f32[1,2048], index: 2, kind: input, shape index: {}]   ;;  %s918_s3 = inlined_call_operand.vmem [shape: f32[16,2048], index: 3, kind: output, shape index: {}]  }
   0x1   :  { %s771_s14 = smov 0   ;;  %s773_s15 = smov 0  }
   0x2   :  { %s775_s16 = smov 0  }
   0x3 LB: > { %s28_s17 = sadd.s32 1, %s741_s15  ;;  %s640_s18 = sadd.s32 4294967295, %s745_s16   ;;  %s745_s16 = sphi %s775_s16, %s13_s16   ;;  %s741_s15 = sphi %s773_s15, %s923_s15   ;;  %s737_s14 = sphi %s771_s14, %s922_s14   ;;  %s733_s13 = sphi %s769_s13, %s921_s13   ;;  %s729_s12 = sphi %s767_s12, %s920_s12  }
   0x4   : > { %p30_p0 = scmp.ge.s32.totalorder %s28_s17, 4  ;;  %p76_p1 = scmp.ne.s32.totalorder %s733_s13, %s729_s12 }
   0x5   : > { %p77_p2 = scmp.eq.s32.totalorder %s745_s16, 0  ;;  %p134_p4 = scmp.eq.s32.totalorder %s640_s18, 3 }
   0x6   : > { %s925_s17 = smov (%p30_p0, %s28_s17), 0  ;;  %s69_s20 = sadd.s32 1, %s733_s13 }
   0x7   : > { %p78_p3 = por %p77_p2, %p76_p1  ;;  %s65_s19 = ssub.s32 %s741_s15, %s925_s17 }
   0x8   : > { %p67_p5 = scmp.eq.s32.totalorder %s65_s19, 0  ;;  %p802_p6 = por %p134_p4, %p76_p1 }
   0x9   : > { %p644_p7 = scmp.ge.s32.totalorder %s745_s16, 4 }
   0xa   : > { %s807_s22 = scalar_select %p67_p5, %s733_s13, %s69_s20  }
   0xb   : > { %168 = sbr.rel (%p644_p7) target bundleno = 36 (0x24), region = 20 }
  0x10   : > { %171 = sbr.rel (!%p78_p3) target bundleno = 36 (0x24), region = 24  ;;  %s173_s23 = sand.u32 (%p78_p3), 1, %s733_s13  }
  0x11   : > { %s665_s24 = sshll.u32 (%p78_p3), %s741_s15, 5  ;;  %s645_s25 = sshll.u32 (%p78_p3), %s173_s23, 7 }
  0x12   : > { %s815_s28 = scalar_lea.vmem (%p78_p3), %s916_s1, %s665_s24  ;;  %s175_s29 = scalar_lea.vmem (%p78_p3), [#allocation3], %s645_s25 }
  0x13   : > { %v194_v0 = vld [vmem:[%s815_s28] sm:$0xff] (%p78_p3)  ;;  %v196_v1 = vld [vmem:[%s815_s28 + $0x8] sm:$0xff] (%p78_p3)  ;;  %v198_v2 = vld [vmem:[%s815_s28 + $0x10] sm:$0xff] (%p78_p3) }
  0x14   : > { %195 = vst [vmem:[%s175_s29] sm:$0xff] (%p78_p3), %v194_v0  ;;  %v200_v3 = vld [vmem:[%s815_s28 + $0x18] sm:$0xff] (%p78_p3)  ;;  %v202_v4 = vld [vmem:[%s815_s28 + $0x80] sm:$0xff] (%p78_p3)  ;;  %v204_v5 = vld [vmem:[%s815_s28 + $0x88] sm:$0xff] (%p78_p3) }
  0x15   : > { %197 = vst [vmem:[%s175_s29 + $0x8] sm:$0xff] %v196_v1  ;;  %v206_v6 = vld [vmem:[%s815_s28 + $0x90] sm:$0xff]  ;;  %v208_v7 = vld [vmem:[%s815_s28 + $0x98] sm:$0xff]  ;;  %v210_v8 = vld [vmem:[%s815_s28 + $0x100] sm:$0xff] }
  0x16   : > { %199 = vst [vmem:[%s175_s29 + $0x10] sm:$0xff] %v198_v2  ;;  %v212_v9 = vld [vmem:[%s815_s28 + $0x108] sm:$0xff]  ;;  %v214_v10 = vld [vmem:[%s815_s28 + $0x110] sm:$0xff]  ;;  %v216_v11 = vld [vmem:[%s815_s28 + $0x118] sm:$0xff] }
  0x17   : > { %201 = vst [vmem:[%s175_s29 + $0x18] sm:$0xff] %v200_v3  ;;  %v218_v12 = vld [vmem:[%s815_s28 + $0x180] sm:$0xff]  ;;  %v220_v13 = vld [vmem:[%s815_s28 + $0x188] sm:$0xff]  ;;  %v222_v14 = vld [vmem:[%s815_s28 + $0x190] sm:$0xff] }
  0x18   : > { %203 = vst [vmem:[%s175_s29 + $0x20] sm:$0xff] %v202_v4  ;;  %v224_v15 = vld [vmem:[%s815_s28 + $0x198] sm:$0xff] }
  0x19   : > { %205 = vst [vmem:[%s175_s29 + $0x28] sm:$0xff] %v204_v5 }
  0x1a   : > { %207 = vst [vmem:[%s175_s29 + $0x30] sm:$0xff] %v206_v6 }
  0x1b   : > { %209 = vst [vmem:[%s175_s29 + $0x38] sm:$0xff] %v208_v7 }
  0x1c   : > { %211 = vst [vmem:[%s175_s29 + $0x40] sm:$0xff] %v210_v8 }
  0x1d   : > { %213 = vst [vmem:[%s175_s29 + $0x48] sm:$0xff] %v212_v9 }
  0x1e   : > { %215 = vst [vmem:[%s175_s29 + $0x50] sm:$0xff] %v214_v10 }
  0x1f   : > { %217 = vst [vmem:[%s175_s29 + $0x58] sm:$0xff] %v216_v11 }
  0x20   : > { %219 = vst [vmem:[%s175_s29 + $0x60] sm:$0xff] %v218_v12 }
  0x21   : > { %221 = vst [vmem:[%s175_s29 + $0x68] sm:$0xff] %v220_v13 }
  0x22   : > { %223 = vst [vmem:[%s175_s29 + $0x70] sm:$0xff] %v222_v14 }
  0x23   : > { %225 = vst [vmem:[%s175_s29 + $0x78] sm:$0xff] %v224_v15 }
  0x24 PF: > { %p648_p8 = scmp.ge.s32.totalorder %s745_s16, 1  ;;  %p238_p9 = scmp.lt.s32.totalorder %s745_s16, 5 }
  0x26   : > { %p239_p10 = pnand %p648_p8, %p238_p9 }
  0x27   : > { %s245_s30 = sand.u32 (!%p239_p10), 1, %s729_s12   ;;  %s651_s10 = sshll.u32 (!%p239_p10), %s737_s14, 2 }
  0x28   : > { %242 = sbr.rel (%p239_p10) target bundleno = 207 (0xcf), region = 51  ;;  %s649_s4 = sshll.u32 (!%p239_p10), %s245_s30, 7 }
  0x29   : > { %s838_s5 = scalar_lea.vmem (!%p239_p10), [#allocation3], %s649_s4  ;;  %p291_p11 = scmp.lt.s32.totalorder (!%p239_p10), %s651_s10, 15 }
  0x2a   : > { %s650_s20 = sshll.u32 (!%p239_p10), %s245_s30, 6 }
  0x2b   : > { %s876_s23 = scalar_lea.vmem (!%p239_p10), [#allocation4], %s650_s20 }
  0x2d   : > { %v333_v16 = vld [vmem:[%s838_s5 + $0x70] sm:$0xff]  ;;  %v334_v17 = vld [vmem:[%s838_s5 + $0x78] sm:$0xff]  ;;  %v331_v22 = vld [vmem:[%s838_s5 + $0x60] sm:$0xff]  ;;  %vm335_vm0 = vcmask 261120   ;;  %s927_s10 = smov (!%p291_p11, %s651_s10), 15  ;;  %s666_s12 = sshll.u32 (%p802_p6), %s737_s14, 5 }
  0x2e   : > { %v329_v18 = vld [vmem:[%s838_s5 + $0x50] sm:$0xff]  ;;  %400 = vmatpush.msra.mxu2 %v333_v16  ;;  %423 = vmatpush.msra.mxu3 %v334_v17  ;;  %v330_v19 = vld [vmem:[%s838_s5 + $0x58] sm:$0xff]  ;;  %v332_v23 = vld [vmem:[%s838_s5 + $0x68] sm:$0xff]  ;;  %s293_s19 = scalar_lea.vmem %s917_s2, %s927_s10  ;;  %s507_s26 = scalar_lea.vmem (%p802_p6), %s918_s3, %s666_s12 }
  0x2f   : > { %v325_v20 = vld [vmem:[%s838_s5 + $0x30] sm:$0xff]  ;;  %v326_v21 = vld [vmem:[%s838_s5 + $0x38] sm:$0xff]  ;;  %v327_v24 = vld [vmem:[%s838_s5 + $0x40] sm:$0xff]  ;;  %354 = vmatpush.msra.mxu0 %v331_v22  ;;  %377 = vmatpush.msra.mxu1 %v332_v23 }
  0x30   : > { %401 = vmatpush.msra.mxu2 %v329_v18  ;;  %424 = vmatpush.msra.mxu3 %v330_v19  ;;  %v328_v25 = vld [vmem:[%s838_s5 + $0x48] sm:$0xff]  ;;  %v321_v26 = vld [vmem:[%s838_s5 + $0x10] sm:$0xff]  ;;  %v322_v27 = vld [vmem:[%s838_s5 + $0x18] sm:$0xff] }
  0x31   : > { %v317_v28 = vld [vmem:[%s915_s0] sm:$0xff]  ;;  %355 = vmatpush.msra.mxu0 %v327_v24  ;;  %378 = vmatpush.msra.mxu1 %v328_v25  ;;  %v324_v30 = vld [vmem:[%s838_s5 + $0x28] sm:$0xff] }
  0x32   : > { %402 = vmatpush.msra.mxu2 %v325_v20  ;;  %425 = vmatpush.msra.mxu3 %v326_v21  ;;  %v323_v29 = vld [vmem:[%s838_s5 + $0x20] sm:$0xff]  ;;  %v320_v32 = vld [vmem:[%s838_s5 + $0x8] sm:$0xff] }
  0x33   : > { %v319_v31 = vld [vmem:[%s838_s5] sm:$0xff]  ;;  %356 = vmatpush.msra.mxu0 %v323_v29  ;;  %379 = vmatpush.msra.mxu1 %v324_v30  ;;  %v318_v33 = vld [vmem:[%s915_s0 + $0x8] sm:$0xff] }
  0x34   : > { %403 = vmatpush.msra.mxu2 %v321_v26  ;;  %426 = vmatpush.msra.mxu3 %v322_v27  ;;  %v461_v34 = vld [vmem:[%s293_s19] sm:$0xf] }
  0x35   : > { %656 = vmatmul.msk.f32.vlgmr.msra.gmra.mxu2 %vm335_vm0, %v317_v28  ;;  %658 = vmatmul.msk.f32.vlgmr.msra.gmra.mxu3 %vm335_vm0, %v317_v28  ;;  %v463_v35 = vperm.slane %v461_v34, 0  ;;  %v464_v36 = vperm.slane %v461_v34, 1  ;;  %v465_v37 = vperm.slane %v461_v34, 2  ;;  %v466_v38 = vperm.slane %v461_v34, 3 }
  0x36   : > { %357 = vmatpush.msra.mxu0 %v319_v31  ;;  %380 = vmatpush.msra.mxu1 %v320_v32 }
  0x37   : > { %652 = vmatmul.msk.f32.vlgmr.msra.gmra.mxu0 %vm335_vm0, %v317_v28  ;;  %654 = vmatmul.msk.f32.vlgmr.msra.gmra.mxu1 %vm335_vm0, %v317_v28 }
  0x3d   : > { %657 = vmatmul.msk.f32.gmra.mxu2 %vm335_vm0, %v318_v33  ;;  %659 = vmatmul.msk.f32.gmra.mxu3 %vm335_vm0, %v318_v33 }
  0x3f   : > { %653 = vmatmul.msk.f32.gmra.mxu0 %vm335_vm0, %v318_v33  ;;  %655 = vmatmul.msk.f32.gmra.mxu1 %vm335_vm0, %v318_v33 }
  0xb4   : > { %v359_v39 = vpop.f32.mrf.mxu0  ;;  %v382_v40 = vpop.f32.mrf.mxu1 }
  0xb5   : > { %v471_v41 = vadd.f32 %v463_v35, %v359_v39  ;;  %v472_v42 = vadd.f32 %v464_v36, %v382_v40 }
  0xb7   : > { %v479_v45 = vmax.f32 %v471_v41, 0.0  ;;  %v480_v46 = vmax.f32 %v472_v42, 0.0 }
  0xb8   : > { %v405_v43 = vpop.f32.mrf.mxu2  ;;  %v428_v44 = vpop.f32.mrf.mxu3 }
  0xb9   : > { %v473_v47 = vadd.f32 %v465_v37, %v405_v43  ;;  %v474_v48 = vadd.f32 %v466_v38, %v428_v44  ;;  %487 = vst [vmem:[%s876_s23] sm:$0xff] %v479_v45 }
  0xba   : > { %488 = vst [vmem:[%s876_s23 + $0x8] sm:$0xff] %v480_v46 }
  0xbb   : > { %v481_v49 = vmax.f32 %v473_v47, 0.0  ;;  %v482_v50 = vmax.f32 %v474_v48, 0.0 }
  0xbc   : > { %v362_v51 = vpop.f32.mrf.mxu0  ;;  %v385_v52 = vpop.f32.mrf.mxu1 }
  0xbd   : > { %489 = vst [vmem:[%s876_s23 + $0x10] sm:$0xff] %v481_v49  ;;  %v475_v53 = vadd.f32 %v463_v35, %v362_v51  ;;  %v476_v54 = vadd.f32 %v464_v36, %v385_v52 }
  0xbe   : > { %490 = vst [vmem:[%s876_s23 + $0x18] sm:$0xff] %v482_v50 }
  0xbf   : > { %v483_v57 = vmax.f32 %v475_v53, 0.0  ;;  %v484_v58 = vmax.f32 %v476_v54, 0.0 }
  0xc0   : > { %v408_v55 = vpop.f32.mrf.mxu2  ;;  %v431_v56 = vpop.f32.mrf.mxu3  ;;  %v520_v63 = vld [vmem:[%s876_s23] sm:$0xff] (%p802_p6) }
  0xc1   : > { %v477_v59 = vadd.f32 %v465_v37, %v408_v55  ;;  %v478_v60 = vadd.f32 %v466_v38, %v431_v56  ;;  %491 = vst [vmem:[%s876_s23 + $0x20] sm:$0xff] %v483_v57  ;;  %v522_v0 = vld [vmem:[%s876_s23 + $0x8] sm:$0xff] (%p802_p6) }
  0xc2   : > { %492 = vst [vmem:[%s876_s23 + $0x28] sm:$0xff] %v484_v58  ;;  %501 = sbr.rel (!%p802_p6) target bundleno = 207 (0xcf), region = 67 }
  0xc3   : > { %v485_v61 = vmax.f32 %v477_v59, 0.0  ;;  %v486_v62 = vmax.f32 %v478_v60, 0.0  ;;  %521 = vst [vmem:[%s507_s26] sm:$0xff] (%p802_p6), %v520_v63 }
  0xc4   : > { %v524_v1 = vld [vmem:[%s876_s23 + $0x10] sm:$0xff] (%p802_p6)  ;;  %523 = vst [vmem:[%s507_s26 + $0x8] sm:$0xff] (%p802_p6), %v522_v0 }
  0xc5   : > { %493 = vst [vmem:[%s876_s23 + $0x30] sm:$0xff] %v485_v61  ;;  %v526_v2 = vld [vmem:[%s876_s23 + $0x18] sm:$0xff] (%p802_p6) }
  0xc6   : > { %494 = vst [vmem:[%s876_s23 + $0x38] sm:$0xff] %v486_v62 }
  0xc7   : > { %525 = vst [vmem:[%s507_s26 + $0x10] sm:$0xff] %v524_v1 }
  0xc8   : > { %v528_v3 = vld [vmem:[%s876_s23 + $0x20] sm:$0xff]  ;;  %527 = vst [vmem:[%s507_s26 + $0x18] sm:$0xff] %v526_v2 }
  0xc9   : > { %v530_v4 = vld [vmem:[%s876_s23 + $0x28] sm:$0xff]  ;;  %529 = vst [vmem:[%s507_s26 + $0x80] sm:$0xff] %v528_v3 }
  0xca   : > { %531 = vst [vmem:[%s507_s26 + $0x88] sm:$0xff] %v530_v4 }
  0xcc   : > { %v532_v5 = vld [vmem:[%s876_s23 + $0x30] sm:$0xff] }
  0xcd   : > { %v534_v6 = vld [vmem:[%s876_s23 + $0x38] sm:$0xff]  ;;  %533 = vst [vmem:[%s507_s26 + $0x90] sm:$0xff] %v532_v5 }
  0xce   : > { %535 = vst [vmem:[%s507_s26 + $0x98] sm:$0xff] %v534_v6 }
  0xcf PF: > { %s13_s16 = sadd.s32 1, %s745_s16   ;;  %s920_s12 = smov %s733_s13 }
  0xd0   : > { %p10_p12 = scmp.ge.s32.totalorder %s13_s16, 6   ;;  %s921_s13 = smov %s807_s22 }
  0xd1   : > { %s922_s14 = smov %s741_s15  ;;  %s923_s15 = smov %s925_s17 }
  0xd2   :  { %12 = sbr.rel (!%p10_p12) target bundleno = 3 (0x3), region = 127 }

// kernel: transformer_forward.36
= control target key start
LH: loop header
LB: loop body
LE: loop exit
PB: predicated region body
PF: predicated region fallthrough
CT: control target
= control target key end

     0   :  { %s990_s21 = smov 0   ;;  %s992_s22 = smov 0   ;;  %s1162_s0 = inlined_call_operand.vmem [shape: f32[16,2048], index: 0, kind: input, shape index: {}]   ;;  %s1163_s1 = inlined_call_operand.vmem [shape: f32[2048,32], index: 1, kind: input, shape index: {}]   ;;  %s1164_s2 = inlined_call_operand.vmem [shape: f32[1,32], index: 2, kind: input, shape index: {}]   ;;  %s1165_s3 = inlined_call_operand.vmem [shape: f32[16,32], index: 3, kind: input, shape index: {}]   ;;  %s1166_s4 = inlined_call_operand.vmem [shape: f32[1,32], index: 4, kind: input, shape index: {}]   ;;  %s1167_s5 = inlined_call_operand.vmem [shape: f32[1,32], index: 5, kind: input, shape index: {}]   ;;  %s1168_s6 = inlined_call_operand.vmem [shape: f32[16,32], index: 6, kind: output, shape index: {}]  }
   0x1   :  { %s994_s23 = smov 0   ;;  %s996_s24 = smov 0  }
   0x2   :  { %s998_s25 = smov 0  }
   0x3 LB: > { %s28_s26 = sadd.s32 1, %s947_s24  ;;  %p51_p1 = scmp.ne.s32.totalorder %s939_s22, %s935_s21  ;;  %s951_s25 = sphi %s998_s25, %s16_s25   ;;  %s947_s24 = sphi %s996_s24, %s1172_s24   ;;  %s943_s23 = sphi %s994_s23, %s1171_s23   ;;  %s939_s22 = sphi %s992_s22, %s1170_s22   ;;  %s935_s21 = sphi %s990_s21, %s1169_s21  }
   0x4   : > { %p29_p0 = scmp.ge.s32.totalorder %s28_s26, 4  ;;  %p52_p2 = scmp.eq.s32.totalorder %s951_s25, 0 }
   0x5   : > { %s44_s28 = sadd.s32 1, %s939_s22  ;;  %p847_p5 = scmp.ge.s32.totalorder %s951_s25, 4 }
   0x6   : > { %s1174_s26 = smov (%p29_p0, %s28_s26), 0  ;;  %p53_p3 = por %p52_p2, %p51_p1 }
   0x7   : > { %s40_s27 = ssub.s32 %s947_s24, %s1174_s26  ;;  %269 = sbr.rel (%p847_p5) target bundleno = 24 (0x18), region = 32 }
   0x8   : > { %p42_p4 = scmp.eq.s32.totalorder %s40_s27, 0 }
   0xa   : > { %s1025_s29 = scalar_select %p42_p4, %s939_s22, %s44_s28  }
   0xc   : > { %272 = sbr.rel (!%p53_p3) target bundleno = 24 (0x18), region = 36  ;;  %s274_s30 = sand.u32 (%p53_p3), 1, %s939_s22  }
   0xd   : > { %s861_s7 = sshll.u32 (%p53_p3), %s947_s24, 5  ;;  %s848_s8 = sshll.u32 (%p53_p3), %s274_s30, 6 }
   0xe   : > { %s282_s11 = scalar_lea.vmem (%p53_p3), %s1162_s0, %s861_s7  ;;  %s276_s12 = scalar_lea.vmem (%p53_p3), [#allocation3], %s848_s8 }
   0xf   : > { %v295_v0 = vld [vmem:[%s282_s11] sm:$0xff] (%p53_p3)  ;;  %v297_v1 = vld [vmem:[%s282_s11 + $0x8] sm:$0xff] (%p53_p3)  ;;  %v299_v2 = vld [vmem:[%s282_s11 + $0x10] sm:$0xff] (%p53_p3) }
  0x10   : > { %296 = vst [vmem:[%s276_s12] sm:$0xff] (%p53_p3), %v295_v0  ;;  %v301_v3 = vld [vmem:[%s282_s11 + $0x18] sm:$0xff] (%p53_p3)  ;;  %v303_v4 = vld [vmem:[%s282_s11 + $0x80] sm:$0xff] (%p53_p3)  ;;  %v305_v5 = vld [vmem:[%s282_s11 + $0x88] sm:$0xff] (%p53_p3) }
  0x11   : > { %298 = vst [vmem:[%s276_s12 + $0x8] sm:$0xff] %v297_v1  ;;  %v307_v6 = vld [vmem:[%s282_s11 + $0x90] sm:$0xff]  ;;  %v309_v7 = vld [vmem:[%s282_s11 + $0x98] sm:$0xff] }
  0x12   : > { %300 = vst [vmem:[%s276_s12 + $0x10] sm:$0xff] %v299_v2 }
  0x13   : > { %302 = vst [vmem:[%s276_s12 + $0x18] sm:$0xff] %v301_v3 }
  0x14   : > { %304 = vst [vmem:[%s276_s12 + $0x20] sm:$0xff] %v303_v4 }
  0x15   : > { %306 = vst [vmem:[%s276_s12 + $0x28] sm:$0xff] %v305_v5 }
  0x16   : > { %308 = vst [vmem:[%s276_s12 + $0x30] sm:$0xff] %v307_v6 }
  0x17   : > { %310 = vst [vmem:[%s276_s12 + $0x38] sm:$0xff] %v309_v7 }
  0x18 PF: > { %p851_p6 = scmp.ge.s32.totalorder %s951_s25, 1  ;;  %p327_p7 = scmp.lt.s32.totalorder %s951_s25, 5 }
  0x1a   : > { %p328_p8 = pnand %p851_p6, %p327_p7 }
  0x1b   : > { %s334_s13 = sand.u32 (!%p328_p8), 1, %s935_s21   ;;  %s853_s14 = sshll.u32 (!%p328_p8), %s943_s23, 6 }
  0x1c   : > { %331 = sbr.rel (%p328_p8) target bundleno = 504 (0x1f8), region = 63  ;;  %s852_s15 = sshll.u32 (!%p328_p8), %s334_s13, 6 }
  0x1d   : > { %p394_p9 = scmp.lt.s32.totalorder (!%p328_p8), %s853_s14, 255  ;;  %s1042_s20 = scalar_lea.vmem (!%p328_p8), [#allocation3], %s852_s15 }
  0x1e   : > { %p855_p10 = scmp.ne.s32.totalorder (!%p328_p8), %s943_s23, 0 }
  0x21   : > { %s1176_s14 = smov (!%p394_p9, %s853_s14), 255  ;;  %432 = sbr.rel (%p855_p10) target bundleno = 41 (0x29), region = 71 }
  0x22   : > { %s854_s16 = sshll.u32 %s1176_s14, 3 }
  0x23   : > { %s1040_s19 = scalar_lea.vmem %s1163_s1, %s854_s16 }
  0x26   : > { %vm433_vm0 = vcmask 261120   ;;  %v953_v8 = vmov 0.0  }
  0x27   : > { %434 = vst.msk [vmem:[#allocation2] sm:$0xff] %vm433_vm0, %v953_v8 }
  0x28   : > { %435 = vst.msk [vmem:[#allocation2 + $0x8] sm:$0xff] %vm433_vm0, %v953_v8 }
  0x29 PF: > { %v493_v9 = vld [vmem:[%s1040_s19 + $0x178] sm:$0xff]  ;;  %v492_v10 = vld [vmem:[%s1040_s19 + $0x170] sm:$0xff]  ;;  %v491_v14 = vld [vmem:[%s1040_s19 + $0x168] sm:$0xff]  ;;  %vm604_vm1 = vcmask 261120   ;;  %p856_p11 = scmp.ne.s32.totalorder %s943_s23, 3 }
  0x2a   : > { %v509_v11 = vld [vmem:[%s1040_s19 + $0x1f8] sm:$0xff]  ;;  %556 = vmatpush.msra.mxu2 %v493_v9  ;;  %v508_v15 = vld [vmem:[%s1040_s19 + $0x1f0] sm:$0xff]  ;;  %v507_v18 = vld [vmem:[%s1040_s19 + $0x1e8] sm:$0xff] }
  0x2b   : > { %579 = vmatpush.msra.mxu3 %v509_v11  ;;  %v461_v12 = vld [vmem:[%s1040_s19 + $0x78] sm:$0xff]  ;;  %v460_v16 = vld [vmem:[%s1040_s19 + $0x70] sm:$0xff]  ;;  %v459_v19 = vld [vmem:[%s1040_s19 + $0x68] sm:$0xff] }
  0x2c   : > { %v477_v13 = vld [vmem:[%s1040_s19 + $0xf8] sm:$0xff]  ;;  %510 = vmatpush.msra.mxu0 %v461_v12  ;;  %v476_v17 = vld [vmem:[%s1040_s19 + $0xf0] sm:$0xff]  ;;  %557 = vmatpush.msra.mxu2 %v492_v10  ;;  %v490_v20 = vld [vmem:[%s1040_s19 + $0x160] sm:$0xff] }
  0x2d   : > { %533 = vmatpush.msra.mxu1 %v477_v13  ;;  %580 = vmatpush.msra.mxu3 %v508_v15  ;;  %v475_v21 = vld [vmem:[%s1040_s19 + $0xe8] sm:$0xff]  ;;  %v506_v22 = vld [vmem:[%s1040_s19 + $0x1e0] sm:$0xff]  ;;  %v489_v25 = vld [vmem:[%s1040_s19 + $0x158] sm:$0xff] }
  0x2e   : > { %511 = vmatpush.msra.mxu0 %v460_v16  ;;  %558 = vmatpush.msra.mxu2 %v491_v14  ;;  %v458_v23 = vld [vmem:[%s1040_s19 + $0x60] sm:$0xff]  ;;  %v505_v26 = vld [vmem:[%s1040_s19 + $0x1d8] sm:$0xff]  ;;  %v488_v29 = vld [vmem:[%s1040_s19 + $0x150] sm:$0xff] }
  0x2f   : > { %534 = vmatpush.msra.mxu1 %v476_v17  ;;  %581 = vmatpush.msra.mxu3 %v507_v18  ;;  %v474_v24 = vld [vmem:[%s1040_s19 + $0xe0] sm:$0xff]  ;;  %v457_v27 = vld [vmem:[%s1040_s19 + $0x58] sm:$0xff]  ;;  %v504_v30 = vld [vmem:[%s1040_s19 + $0x1d0] sm:$0xff] }
  0x30   : > { %512 = vmatpush.msra.mxu0 %v459_v19  ;;  %559 = vmatpush.msra.mxu2 %v490_v20  ;;  %v473_v28 = vld [vmem:[%s1040_s19 + $0xd8] sm:$0xff]  ;;  %v456_v31 = vld [vmem:[%s1040_s19 + $0x50] sm:$0xff]  ;;  %v487_v33 = vld [vmem:[%s1040_s19 + $0x148] sm:$0xff] }
  0x31   : > { %535 = vmatpush.msra.mxu1 %v475_v21  ;;  %582 = vmatpush.msra.mxu3 %v506_v22  ;;  %v472_v32 = vld [vmem:[%s1040_s19 + $0xd0] sm:$0xff]  ;;  %v503_v34 = vld [vmem:[%s1040_s19 + $0x1c8] sm:$0xff]  ;;  %v486_v37 = vld [vmem:[%s1040_s19 + $0x140] sm:$0xff] }
  0x32   : > { %513 = vmatpush.msra.mxu0 %v458_v23  ;;  %560 = vmatpush.msra.mxu2 %v489_v25  ;;  %v455_v35 = vld [vmem:[%s1040_s19 + $0x48] sm:$0xff]  ;;  %v502_v38 = vld [vmem:[%s1040_s19 + $0x1c0] sm:$0xff]  ;;  %v485_v41 = vld [vmem:[%s1040_s19 + $0x138] sm:$0xff] }
  0x33   : > { %536 = vmatpush.msra.mxu1 %v474_v24  ;;  %583 = vmatpush.msra.mxu3 %v505_v26  ;;  %v471_v36 = vld [vmem:[%s1040_s19 + $0xc8] sm:$0xff]  ;;  %v454_v39 = vld [vmem:[%s1040_s19 + $0x40] sm:$0xff]  ;;  %v501_v42 = vld [vmem:[%s1040_s19 + $0x1b8] sm:$0xff] }
  0x34   : > { %514 = vmatpush.msra.mxu0 %v457_v27  ;;  %561 = vmatpush.msra.mxu2 %v488_v29  ;;  %v470_v40 = vld [vmem:[%s1040_s19 + $0xc0] sm:$0xff]  ;;  %v453_v43 = vld [vmem:[%s1040_s19 + $0x38] sm:$0xff]  ;;  %v484_v45 = vld [vmem:[%s1040_s19 + $0x130] sm:$0xff] }
  0x35   : > { %537 = vmatpush.msra.mxu1 %v473_v28  ;;  %584 = vmatpush.msra.mxu3 %v504_v30  ;;  %v469_v44 = vld [vmem:[%s1040_s19 + $0xb8] sm:$0xff]  ;;  %v500_v46 = vld [vmem:[%s1040_s19 + $0x1b0] sm:$0xff]  ;;  %v483_v49 = vld [vmem:[%s1040_s19 + $0x128] sm:$0xff] }
  0x36   : > { %515 = vmatpush.msra.mxu0 %v456_v31  ;;  %562 = vmatpush.msra.mxu2 %v487_v33  ;;  %v452_v47 = vld [vmem:[%s1040_s19 + $0x30] sm:$0xff]  ;;  %v499_v50 = vld [vmem:[%s1040_s19 + $0x1a8] sm:$0xff]  ;;  %v482_v53 = vld [vmem:[%s1040_s19 + $0x120] sm:$0xff] }
  0x37   : > { %538 = vmatpush.msra.mxu1 %v472_v32  ;;  %585 = vmatpush.msra.mxu3 %v503_v34  ;;  %v468_v48 = vld [vmem:[%s1040_s19 + $0xb0] sm:$0xff]  ;;  %v451_v51 = vld [vmem:[%s1040_s19 + $0x28] sm:$0xff]  ;;  %v498_v54 = vld [vmem:[%s1040_s19 + $0x1a0] sm:$0xff] }
  0x38   : > { %516 = vmatpush.msra.mxu0 %v455_v35  ;;  %563 = vmatpush.msra.mxu2 %v486_v37  ;;  %v467_v52 = vld [vmem:[%s1040_s19 + $0xa8] sm:$0xff]  ;;  %v450_v55 = vld [vmem:[%s1040_s19 + $0x20] sm:$0xff]  ;;  %v481_v57 = vld [vmem:[%s1040_s19 + $0x118] sm:$0xff] }
  0x39   : > { %539 = vmatpush.msra.mxu1 %v471_v36  ;;  %586 = vmatpush.msra.mxu3 %v502_v38  ;;  %v466_v56 = vld [vmem:[%s1040_s19 + $0xa0] sm:$0xff]  ;;  %v497_v58 = vld [vmem:[%s1040_s19 + $0x198] sm:$0xff]  ;;  %v480_v61 = vld [vmem:[%s1040_s19 + $0x110] sm:$0xff] }
  0x3a   : > { %517 = vmatpush.msra.mxu0 %v454_v39  ;;  %564 = vmatpush.msra.mxu2 %v485_v41  ;;  %v449_v59 = vld [vmem:[%s1040_s19 + $0x18] sm:$0xff]  ;;  %v496_v62 = vld [vmem:[%s1040_s19 + $0x190] sm:$0xff]  ;;  %v479_v1 = vld [vmem:[%s1040_s19 + $0x108] sm:$0xff] }
  0x3b   : > { %540 = vmatpush.msra.mxu1 %v470_v40  ;;  %587 = vmatpush.msra.mxu3 %v501_v42  ;;  %v465_v60 = vld [vmem:[%s1040_s19 + $0x98] sm:$0xff]  ;;  %v448_v63 = vld [vmem:[%s1040_s19 + $0x10] sm:$0xff]  ;;  %v495_v2 = vld [vmem:[%s1040_s19 + $0x188] sm:$0xff] }
  0x3c   : > { %518 = vmatpush.msra.mxu0 %v453_v43  ;;  %565 = vmatpush.msra.mxu2 %v484_v45  ;;  %v464_v0 = vld [vmem:[%s1040_s19 + $0x90] sm:$0xff]  ;;  %v447_v3 = vld [vmem:[%s1040_s19 + $0x8] sm:$0xff]  ;;  %v478_v5 = vld [vmem:[%s1040_s19 + $0x100] sm:$0xff] }
  0x3d   : > { %541 = vmatpush.msra.mxu1 %v469_v44  ;;  %588 = vmatpush.msra.mxu3 %v500_v46  ;;  %v463_v4 = vld [vmem:[%s1040_s19 + $0x88] sm:$0xff]  ;;  %v494_v6 = vld [vmem:[%s1040_s19 + $0x180] sm:$0xff]  ;;  %v438_v11 = vld [vmem:[%s1042_s20] sm:$0xff] }
  0x3e   : > { %519 = vmatpush.msra.mxu0 %v452_v47  ;;  %566 = vmatpush.msra.mxu2 %v483_v49  ;;  %v440_v7 = vld [vmem:[%s1042_s20 + $0x10] sm:$0xff]  ;;  %v441_v8 = vld [vmem:[%s1042_s20 + $0x18] sm:$0xff]  ;;  %v439_v12 = vld [vmem:[%s1042_s20 + $0x8] sm:$0xff] }
  0x3f   : > { %542 = vmatpush.msra.mxu1 %v468_v48  ;;  %589 = vmatpush.msra.mxu3 %v499_v50  ;;  %v446_v9 = vld [vmem:[%s1040_s19] sm:$0xff]  ;;  %v445_v14 = vld [vmem:[%s1042_s20 + $0x38] sm:$0xff]  ;;  %v442_v15 = vld [vmem:[%s1042_s20 + $0x20] sm:$0xff] }
  0x40   : > { %520 = vmatpush.msra.mxu0 %v451_v51  ;;  %567 = vmatpush.msra.mxu2 %v482_v53  ;;  %v462_v10 = vld [vmem:[%s1040_s19 + $0x80] sm:$0xff]  ;;  %v443_v16 = vld [vmem:[%s1042_s20 + $0x28] sm:$0xff]  ;;  %v437_v32 = vld [vmem:[#allocation2 + $0x8] sm:$0xff] }
  0x41   : > { %543 = vmatpush.msra.mxu1 %v467_v52  ;;  %590 = vmatpush.msra.mxu3 %v498_v54  ;;  %v444_v13 = vld [vmem:[%s1042_s20 + $0x30] sm:$0xff] }
  0x42   : > { %521 = vmatpush.msra.mxu0 %v450_v55  ;;  %568 = vmatpush.msra.mxu2 %v481_v57  ;;  %v436_v23 = vld [vmem:[#allocation2] sm:$0xff] }
  0x43   : > { %544 = vmatpush.msra.mxu1 %v466_v56  ;;  %591 = vmatpush.msra.mxu3 %v497_v58 }
  0x44   : > { %522 = vmatpush.msra.mxu0 %v449_v59  ;;  %569 = vmatpush.msra.mxu2 %v480_v61 }
  0x45   : > { %545 = vmatpush.msra.mxu1 %v465_v60  ;;  %592 = vmatpush.msra.mxu3 %v496_v62 }
  0x46   : > { %523 = vmatpush.msra.mxu0 %v448_v63  ;;  %570 = vmatpush.msra.mxu2 %v479_v1 }
  0x47   : > { %546 = vmatpush.msra.mxu1 %v464_v0  ;;  %593 = vmatpush.msra.mxu3 %v495_v2 }
  0x48   : > { %524 = vmatpush.msra.mxu0 %v447_v3  ;;  %571 = vmatpush.msra.mxu2 %v478_v5 }
  0x49   : > { %547 = vmatpush.msra.mxu1 %v463_v4  ;;  %594 = vmatpush.msra.mxu3 %v494_v6 }
  0x4a   : > { %572 = vmatmul.f32.vlgmr.msra.gmra.mxu2 %v440_v7  ;;  %595 = vmatmul.f32.vlgmr.msra.gmra.mxu3 %v441_v8 }
  0x4b   : > { %525 = vmatpush.msra.mxu0 %v446_v9  ;;  %548 = vmatpush.msra.mxu1 %v462_v10 }
  0x4c   : > { %526 = vmatmul.f32.vlgmr.msra.gmra.mxu0 %v438_v11  ;;  %549 = vmatmul.f32.vlgmr.msra.gmra.mxu1 %v439_v12 }
  0x52   : > { %575 = vmatmul.f32.gmra.mxu2 %v444_v13  ;;  %598 = vmatmul.f32.gmra.mxu3 %v445_v14 }
  0x54   : > { %529 = vmatmul.f32.gmra.mxu0 %v442_v15  ;;  %552 = vmatmul.f32.gmra.mxu1 %v443_v16 }
  0xc9   : > { %v527_v17 = vpop.f32.mrf.mxu0  ;;  %v550_v18 = vpop.f32.mrf.mxu1 }
  0xca   : > { %v551_v19 = vadd.f32 %v550_v18, %v527_v17 }
  0xcd   : > { %v573_v20 = vpop.f32.mrf.mxu2  ;;  %v596_v21 = vpop.f32.mrf.mxu3 }
  0xce   : > { %v574_v22 = vadd.f32 %v573_v20, %v551_v19 }
  0xd0   : > { %v597_v24 = vadd.f32 %v596_v21, %v574_v22 }
  0xd1   : > { %v530_v25 = vpop.f32.mrf.mxu0  ;;  %v553_v26 = vpop.f32.mrf.mxu1 }
  0xd2   : > { %v602_v27 = vadd.f32 %v597_v24, %v436_v23  ;;  %v554_v28 = vadd.f32 %v553_v26, %v530_v25 }
  0xd4   : > { %605 = vst.msk [vmem:[#allocation2] sm:$0xff] %vm604_vm1, %v602_v27 }
  0xd5   : > { %v576_v29 = vpop.f32.mrf.mxu2  ;;  %v599_v30 = vpop.f32.mrf.mxu3 }
  0xd6   : > { %v577_v31 = vadd.f32 %v576_v29, %v554_v28 }
  0xd8   : > { %v600_v33 = vadd.f32 %v599_v30, %v577_v31  ;;  %610 = sbr.rel (%p856_p11) target bundleno = 504 (0x1f8), region = 75 }
  0xda   : > { %v603_v34 = vadd.f32 %v600_v33, %v437_v32 }
  0xdc   : > { %606 = vst.msk [vmem:[#allocation2 + $0x8] sm:$0xff] %vm604_vm1, %v603_v34 }
  0xdd   : > { %v611_v35 = vld [vmem:[#allocation2] sm:$0xff]  ;;  %v620_v42 = vld [vmem:[%s1165_s3 + $0x8] sm:$0xff]  ;;  %v954_v46 = vmov 32.0  }
  0xde   : > { %v904_v36 = vld [vmem:[%s1164_s2] ss:$0 sm:$0xff]  ;;  %907 = vrcp.f32 %v954_v46 }
  0xdf   : > { %v619_v37 = vld [vmem:[%s1165_s3] sm:$0xff]  ;;  %v617_v39 = vadd.f32 %v904_v36, %v611_v35 }
  0xe0   : > { %v905_v13 = vld [vmem:[%s1166_s4] ss:$0 sm:$0xff] }
  0xe1   : > { %v621_v40 = vadd.f32 %v619_v37, %v617_v39  ;;  %v906_v16 = vld [vmem:[%s1167_s5] ss:$0 sm:$0xff] }
  0xe3   : > { %v612_v38 = vld [vmem:[#allocation2 + $0x8] sm:$0xff]  ;;  %v623_v43 = vsel %vm604_vm1, %v621_v40, 0.0 }
  0xe4   : > { %v618_v41 = vadd.f32 %v904_v36, %v612_v38  ;;  %624 = vadd.xlane.f32.xlu0 %v623_v43  ;;  %v908_v47 = vpop.eup %907 }
  0xe5   : > { %v630_v48 = vmul.f32 32.0, %v908_v47  ;;  %vm634_vm2 = vweird.f32 %v908_v47 }
  0xe6   : > { %v622_v44 = vadd.f32 %v620_v42, %v618_v41 }
  0xe7   : > { %v631_v49 = vsub.f32 1.0, %v630_v48 }
  0xe8   : > { %v626_v45 = vsel %vm604_vm1, %v622_v44, 0.0 }
  0xe9   : > { %v632_v50 = vmul.f32 %v908_v47, %v631_v49 }
  0xeb   : > { %v633_v51 = vadd.f32 %v908_v47, %v632_v50 }
  0xec   : > { %627 = vadd.xlane.f32.xlu0 %v626_v45 }
  0xed   : > { %v635_v52 = vsel %vm634_vm2, %v908_v47, %v633_v51 }
 0x157   : > { %v625_v53 = vpop.xlane.xlu0 %624 }
 0x158   : > { %v636_v54 = vmul.f32 %v635_v52, %v625_v53 }
 0x15a   : > { %v638_v55 = vsub.f32 %v621_v40, %v636_v54 }
 0x15c   : > { %v640_v56 = vmul.f32 %v638_v55, %v638_v55 }
 0x15e   : > { %v642_v57 = vsel %vm604_vm1, %v640_v56, 0.0 }
 0x15f   : > { %643 = vadd.xlane.f32.xlu1 %v642_v57  ;;  %v628_v58 = vpop.xlane.xlu0 %627 }
 0x160   : > { %v637_v59 = vmul.f32 %v635_v52, %v628_v58 }
 0x162   : > { %v639_v60 = vsub.f32 %v622_v44, %v637_v59 }
 0x164   : > { %v641_v61 = vmul.f32 %v639_v60, %v639_v60 }
 0x166   : > { %v645_v62 = vsel %vm604_vm1, %v641_v61, 0.0 }
 0x167   : > { %646 = vadd.xlane.f32.xlu1 %v645_v62 }
 0x1d2   : > { %v644_v63 = vpop.xlane.xlu1 %643 }
 0x1d3   : > { %v648_v0 = vmul.f32 %v644_v63, %v635_v52 }
 0x1d5   : > { %v650_v1 = vadd.f32 1e-05, %v648_v0 }
 0x1d7   : > { %909 = vrsqrt.f32 %v650_v1  ;;  %vm658_vm4 = vweird.f32 %v650_v1 }
 0x1da   : > { %v647_v2 = vpop.xlane.xlu1 %646 }
 0x1db   : > { %v649_v3 = vmul.f32 %v647_v2, %v635_v52 }
 0x1dd   : > { %v910_v4 = vpop.eup %909  ;;  %v651_v5 = vadd.f32 1e-05, %v649_v3 }
 0x1de   : > { %v653_v6 = vmul.f32 %v910_v4, %v650_v1  ;;  %vm659_vm3 = vweird.f32 %v910_v4 }
 0x1df   : > { %911 = vrsqrt.f32 %v651_v5  ;;  %vm660_vm5 = vmor %vm658_vm4, %vm659_vm3  ;;  %vm668_vm7 = vweird.f32 %v651_v5 }
 0x1e0   : > { %v654_v7 = vmul.f32 %v910_v4, %v653_v6 }
 0x1e2   : > { %v655_v8 = vmul.f32 0.5, %v654_v7 }
 0x1e4   : > { %v656_v9 = vsub.f32 1.5, %v655_v8 }
 0x1e5   : > { %v912_v10 = vpop.eup %911 }
 0x1e6   : > { %v657_v11 = vmul.f32 %v910_v4, %v656_v9  ;;  %v663_v12 = vmul.f32 %v912_v10, %v651_v5  ;;  %vm669_vm6 = vweird.f32 %v912_v10 }
 0x1e7   : > { %vm670_vm8 = vmor %vm668_vm7, %vm669_vm6 }
 0x1e8   : > { %v661_v14 = vsel %vm660_vm5, %v910_v4, %v657_v11  ;;  %v664_v15 = vmul.f32 %v912_v10, %v663_v12 }
 0x1e9   : > { %v672_v17 = vmul.f32 %v661_v14, %v638_v55 }
 0x1ea   : > { %v665_v18 = vmul.f32 0.5, %v664_v15 }
 0x1eb   : > { %v678_v19 = vmul.f32 %v905_v13, %v672_v17 }
 0x1ec   : > { %v666_v20 = vsub.f32 1.5, %v665_v18 }
 0x1ed   : > { %v684_v21 = vadd.f32 %v906_v16, %v678_v19 }
 0x1ee   : > { %v667_v22 = vmul.f32 %v912_v10, %v666_v20 }
 0x1ef   : > { %686 = vst.msk [vmem:[%s1168_s6] sm:$0xff] %vm604_vm1, %v684_v21 }
 0x1f0   : > { %v671_v23 = vsel %vm670_vm8, %v912_v10, %v667_v22 }
 0x1f1   : > { %v673_v24 = vmul.f32 %v671_v23, %v639_v60 }
 0x1f3   : > { %v679_v25 = vmul.f32 %v905_v13, %v673_v24 }
 0x1f5   : > { %v685_v26 = vadd.f32 %v906_v16, %v679_v25 }
 0x1f7   : > { %687 = vst.msk [vmem:[%s1168_s6 + $0x8] sm:$0xff] %vm604_vm1, %v685_v26 }
 0x1f8 PF: > { %s16_s25 = sadd.s32 1, %s951_s25   ;;  %s1169_s21 = smov %s939_s22 }
 0x1f9   : > { %p13_p12 = scmp.ge.s32.totalorder %s16_s25, 6   ;;  %s1170_s22 = smov %s1025_s29 }
 0x1fa   : > { %s1171_s23 = smov %s947_s24  ;;  %s1172_s24 = smov %s1174_s26 }
 0x1fb   :  { %15 = sbr.rel (!%p13_p12) target bundleno = 3 (0x3), region = 125 }

// kernel: transformer_forward.47
= control target key start
LH: loop header
LB: loop body
LE: loop exit
PB: predicated region body
PF: predicated region fallthrough
CT: control target
= control target key end

     0   :  { %vm18_vm0 = vcmask 523264   ;;  %v89_v2 = vmov 0.0   ;;  %vm29_vm1 = vcmask 261120   ;;  %s143_s1 = inlined_call_operand.vmem [shape: f32[32,64], index: 1, kind: input, shape index: {}]   ;;  %s144_s2 = inlined_call_operand.vmem [shape: f32[1,64], index: 2, kind: input, shape index: {}]   ;;  %s145_s0 = inlined_call_operand.vmem [shape: f32[16,32], index: 0, kind: input, shape index: {}]   ;;  %s146_s3 = inlined_call_operand.vmem [shape: f32[16,64], index: 3, kind: output, shape index: {}]  }
   0x1   :  { %v28_v0 = vld [vmem:[%s143_s1 + $0x18] sm:$0xff]  ;;  %v27_v1 = vld [vmem:[%s143_s1 + $0x10] sm:$0xff]  ;;  %19 = vst.msk [vmem:[#allocation2] sm:$0xff] %vm18_vm0, %v89_v2  ;;  %v26_v3 = vld [vmem:[%s143_s1 + $0x8] sm:$0xff] }
   0x2   :  { %48 = vmatpush.msra.mxu0 %v28_v0  ;;  %83 = vmatpush.msra.mxu1 %v28_v0  ;;  %20 = vst.msk [vmem:[#allocation2 + $0x8] sm:$0xff] %vm18_vm0, %v89_v2  ;;  %v25_v4 = vld [vmem:[%s143_s1] sm:$0xff]  ;;  %v24_v6 = vld [vmem:[%s145_s0 + $0x8] sm:$0xff] }
   0x3   :  { %v23_v5 = vld [vmem:[%s145_s0] sm:$0xff] }
   0x4   :  { %49 = vmatpush.msra.mxu0 %v27_v1  ;;  %84 = vmatpush.msra.mxu1 %v27_v1  ;;  %v88_v13 = vld [vmem:[%s144_s2] ss:$0 sm:$0xff] }
   0x6   :  { %50 = vmatpush.msra.mxu0 %v26_v3  ;;  %85 = vmatpush.msra.mxu1 %v26_v3 }
   0x8   :  { %51 = vmatpush.msra.mxu0 %v25_v4  ;;  %86 = vmatpush.msra.mxu1 %v25_v4  ;;  %v21_v7 = vld [vmem:[#allocation2] sm:$0xff] }
   0x9   :  { %81 = vmatmul.msk.f32.vlgmr.msra.gmra.mxu0 %vm29_vm1, %v23_v5  ;;  %82 = vmatmul.msk.f32.vlgmr.msra.gmra.mxu1 %vm29_vm1, %v24_v6  ;;  %v22_v8 = vld [vmem:[#allocation2 + $0x8] sm:$0xff] }
  0x86   :  { %v53_v9 = vpop.f32.mrf.mxu0  ;;  %v56_v10 = vpop.f32.mrf.mxu1 }
  0x87   :  { %v59_v11 = vadd.f32 %v53_v9, %v21_v7  ;;  %v60_v12 = vadd.f32 %v56_v10, %v22_v8 }
  0x89   :  { %62 = vst.msk [vmem:[#allocation2] sm:$0xff] %vm18_vm0, %v59_v11 }
  0x8a   :  { %63 = vst.msk [vmem:[#allocation2 + $0x8] sm:$0xff] %vm18_vm0, %v60_v12 }
  0x90   :  { %v67_v14 = vld [vmem:[#allocation2] sm:$0xff] }
  0x91   :  { %v73_v15 = vadd.f32 %v88_v13, %v67_v14  ;;  %v68_v16 = vld [vmem:[#allocation2 + $0x8] sm:$0xff] }
  0x92   :  { %v74_v17 = vadd.f32 %v88_v13, %v68_v16 }
  0x93   :  { %75 = vst.msk [vmem:[%s146_s3] sm:$0xff] %vm18_vm0, %v73_v15 }
  0x94   :  { %76 = vst.msk [vmem:[%s146_s3 + $0x8] sm:$0xff] %vm18_vm0, %v74_v17 }

// kernel: transformer_forward.46
= control target key start
LH: loop header
LB: loop body
LE: loop exit
PB: predicated region body
PF: predicated region fallthrough
CT: control target
= control target key end

     0   :  { %vm18_vm0 = vcmask 261120   ;;  %v88_v2 = vmov 0.0   ;;  %s144_s1 = inlined_call_operand.vmem [shape: f32[32,32], index: 1, kind: input, shape index: {}]   ;;  %s145_s2 = inlined_call_operand.vmem [shape: f32[1,32], index: 2, kind: input, shape index: {}]   ;;  %s146_s0 = inlined_call_operand.vmem [shape: f32[16,32], index: 0, kind: input, shape index: {}]   ;;  %s147_s3 = inlined_call_operand.vmem [shape: f32[16,32], index: 3, kind: output, shape index: {}]  }
   0x1   :  { %v28_v0 = vld [vmem:[%s144_s1 + $0x18] sm:$0xff]  ;;  %v27_v1 = vld [vmem:[%s144_s1 + $0x10] sm:$0xff]  ;;  %19 = vst.msk [vmem:[#allocation2] sm:$0xff] %vm18_vm0, %v88_v2  ;;  %v26_v3 = vld [vmem:[%s144_s1 + $0x8] sm:$0xff] }
   0x2   :  { %48 = vmatpush.msra.mxu0 %v28_v0  ;;  %82 = vmatpush.msra.mxu1 %v28_v0  ;;  %20 = vst.msk [vmem:[#allocation2 + $0x8] sm:$0xff] %vm18_vm0, %v88_v2  ;;  %v25_v4 = vld [vmem:[%s144_s1] sm:$0xff]  ;;  %v24_v6 = vld [vmem:[%s146_s0 + $0x8] sm:$0xff] }
   0x3   :  { %v23_v5 = vld [vmem:[%s146_s0] sm:$0xff] }
   0x4   :  { %49 = vmatpush.msra.mxu0 %v27_v1  ;;  %83 = vmatpush.msra.mxu1 %v27_v1  ;;  %v87_v13 = vld [vmem:[%s145_s2] ss:$0 sm:$0xff] }
   0x6   :  { %50 = vmatpush.msra.mxu0 %v26_v3  ;;  %84 = vmatpush.msra.mxu1 %v26_v3 }
   0x8   :  { %51 = vmatpush.msra.mxu0 %v25_v4  ;;  %85 = vmatpush.msra.mxu1 %v25_v4  ;;  %v21_v7 = vld [vmem:[#allocation2] sm:$0xff] }
   0x9   :  { %80 = vmatmul.msk.f32.vlgmr.msra.gmra.mxu0 %vm18_vm0, %v23_v5  ;;  %81 = vmatmul.msk.f32.vlgmr.msra.gmra.mxu1 %vm18_vm0, %v24_v6  ;;  %v22_v8 = vld [vmem:[#allocation2 + $0x8] sm:$0xff] }
  0x86   :  { %v53_v9 = vpop.f32.mrf.mxu0  ;;  %v56_v10 = vpop.f32.mrf.mxu1 }
  0x87   :  { %v59_v11 = vadd.f32 %v53_v9, %v21_v7  ;;  %v60_v12 = vadd.f32 %v56_v10, %v22_v8 }
  0x89   :  { %61 = vst.msk [vmem:[#allocation2] sm:$0xff] %vm18_vm0, %v59_v11 }
  0x8a   :  { %62 = vst.msk [vmem:[#allocation2 + $0x8] sm:$0xff] %vm18_vm0, %v60_v12 }
  0x90   :  { %v66_v14 = vld [vmem:[#allocation2] sm:$0xff] }
  0x91   :  { %v72_v15 = vadd.f32 %v87_v13, %v66_v14  ;;  %v67_v16 = vld [vmem:[#allocation2 + $0x8] sm:$0xff] }
  0x92   :  { %v73_v17 = vadd.f32 %v87_v13, %v67_v16 }
  0x93   :  { %74 = vst.msk [vmem:[%s147_s3] sm:$0xff] %vm18_vm0, %v72_v15 }
  0x94   :  { %75 = vst.msk [vmem:[%s147_s3 + $0x8] sm:$0xff] %vm18_vm0, %v73_v17 }

// kernel: transformer_forward.61
= control target key start
LH: loop header
LB: loop body
LE: loop exit
PB: predicated region body
PF: predicated region fallthrough
CT: control target
= control target key end

     0   :  { %vm18_vm0 = vcmask 48128   ;;  %v89_v2 = vmov 0.0   ;;  %vm29_vm1 = vcmask 261120   ;;  %s143_s1 = inlined_call_operand.vmem [shape: f32[32,6], index: 1, kind: input, shape index: {}]   ;;  %s144_s2 = inlined_call_operand.vmem [shape: f32[1,6], index: 2, kind: input, shape index: {}]   ;;  %s145_s0 = inlined_call_operand.vmem [shape: f32[16,32], index: 0, kind: input, shape index: {}]   ;;  %s146_s3 = inlined_call_operand.vmem [shape: f32[16,6], index: 3, kind: output, shape index: {}]  }
   0x1   :  { %v28_v0 = vld [vmem:[%s143_s1 + $0x18] sm:$0xff]  ;;  %v27_v1 = vld [vmem:[%s143_s1 + $0x10] sm:$0xff]  ;;  %19 = vst.msk [vmem:[#allocation2] sm:$0xff] %vm18_vm0, %v89_v2  ;;  %v26_v3 = vld [vmem:[%s143_s1 + $0x8] sm:$0xff] }
   0x2   :  { %48 = vmatpush.msra.mxu0 %v28_v0  ;;  %83 = vmatpush.msra.mxu1 %v28_v0  ;;  %20 = vst.msk [vmem:[#allocation2 + $0x8] sm:$0xff] %vm18_vm0, %v89_v2  ;;  %v25_v4 = vld [vmem:[%s143_s1] sm:$0xff]  ;;  %v24_v6 = vld [vmem:[%s145_s0 + $0x8] sm:$0xff] }
   0x3   :  { %v23_v5 = vld [vmem:[%s145_s0] sm:$0xff] }
   0x4   :  { %49 = vmatpush.msra.mxu0 %v27_v1  ;;  %84 = vmatpush.msra.mxu1 %v27_v1  ;;  %v88_v13 = vld [vmem:[%s144_s2] ss:$0 sm:$0xff] }
   0x6   :  { %50 = vmatpush.msra.mxu0 %v26_v3  ;;  %85 = vmatpush.msra.mxu1 %v26_v3 }
   0x8   :  { %51 = vmatpush.msra.mxu0 %v25_v4  ;;  %86 = vmatpush.msra.mxu1 %v25_v4  ;;  %v21_v7 = vld [vmem:[#allocation2] sm:$0xff] }
   0x9   :  { %81 = vmatmul.msk.f32.vlgmr.msra.gmra.mxu0 %vm29_vm1, %v23_v5  ;;  %82 = vmatmul.msk.f32.vlgmr.msra.gmra.mxu1 %vm29_vm1, %v24_v6  ;;  %v22_v8 = vld [vmem:[#allocation2 + $0x8] sm:$0xff] }
  0x86   :  { %v53_v9 = vpop.f32.mrf.mxu0  ;;  %v56_v10 = vpop.f32.mrf.mxu1 }
  0x87   :  { %v59_v11 = vadd.f32 %v53_v9, %v21_v7  ;;  %v60_v12 = vadd.f32 %v56_v10, %v22_v8 }
  0x89   :  { %62 = vst.msk [vmem:[#allocation2] sm:$0xff] %vm18_vm0, %v59_v11 }
  0x8a   :  { %63 = vst.msk [vmem:[#allocation2 + $0x8] sm:$0xff] %vm18_vm0, %v60_v12 }
  0x90   :  { %v67_v14 = vld [vmem:[#allocation2] sm:$0xff] }
  0x91   :  { %v73_v15 = vadd.f32 %v88_v13, %v67_v14  ;;  %v68_v16 = vld [vmem:[#allocation2 + $0x8] sm:$0xff] }
  0x92   :  { %v74_v17 = vadd.f32 %v88_v13, %v68_v16 }
  0x93   :  { %75 = vst.msk [vmem:[%s146_s3] sm:$0xff] %vm18_vm0, %v73_v15 }
  0x94   :  { %76 = vst.msk [vmem:[%s146_s3 + $0x8] sm:$0xff] %vm18_vm0, %v74_v17 }

// kernel: transformer_forward.48
= control target key start
LH: loop header
LB: loop body
LE: loop exit
PB: predicated region body
PF: predicated region fallthrough
CT: control target
= control target key end

     0   :  { %s1990_s9 = smov 0   ;;  %s1992_s10 = smov 0   ;;  %s2379_s0 = inlined_call_operand.vmem [shape: f32[2,8,32], index: 0, kind: input, shape index: {}]   ;;  %s2380_s1 = inlined_call_operand.vmem [shape: f32[2,8,64], index: 1, kind: input, shape index: {}]   ;;  %s2381_s2 = inlined_call_operand.vmem [shape: f32[2,8,32], index: 2, kind: output, shape index: {}]  }
   0x1   :  { %s1994_s11 = smov 0  }
   0x2 LB: > { %s31_s12 = sadd.s32 1, %s1957_s10  ;;  %p1796_p0 = scmp.ge.s32.totalorder %s1961_s11, 1  ;;  %s1961_s11 = sphi %s1994_s11, %s12_s11   ;;  %s1957_s10 = sphi %s1992_s10, %s2383_s10   ;;  %s1953_s9 = sphi %s1990_s9, %s2382_s9  }
   0x3   : > { %p33_p1 = scmp.ge.s32.totalorder %s31_s12, 2  ;;  %p151_p2 = scmp.lt.s32.totalorder %s1961_s11, 3 }
   0x5   : > { %s2385_s12 = smov (%p33_p1, %s31_s12), 0  ;;  %p152_p3 = pnand %p1796_p0, %p151_p2 }
   0x6   : > { %p184_p4 = scmp.lt.s32.totalorder (!%p152_p3), %s1953_s9, 1  ;;  %s1963_s20 = smov (!%p152_p3), 120  }
   0x7   : > { %155 = sbr.rel (%p152_p3) target bundleno = 1303 (0x517), region = 28  ;;  %s1964_s21 = smov (!%p152_p3), 112  }
   0x8   : > { %s1965_s22 = smov (!%p152_p3), 104   ;;  %s1968_s23 = smov (!%p152_p3), 96  }
   0x9   : > { %s1972_s24 = smov (!%p152_p3), 24   ;;  %s1973_s25 = smov (!%p152_p3), 16  }
   0xa   : > { %s1974_s26 = smov (!%p152_p3), 8  }
   0xc   : > { %s2387_s9 = smov (!%p184_p4, %s1953_s9), 1  ;;  %v1966_v2 = vmov 1983009808   ;;  %vm235_vm0 = vcmask 1047556   ;;  %v1967_v17 = vmov 1934713408  }
   0xd   : > { %s2008_s13 = sshll.u32 %s2387_s9, 3  ;;  %v240_v3 = vunpack.c.l.s4 %v1966_v2  ;;  %v264_v18 = vunpack.c.l.s4 %v1967_v17  ;;  %vm218_vm1 = vcmask 64512   ;;  %vm209_vm2 = vcmask 7168  }
   0xe   : > { %s197_s16 = scalar_lea.vmem %s2380_s1, %s2008_s13  ;;  %s190_s19 = scalar_lea.vmem %s2379_s0, %s2008_s13  ;;  %vm1694_vm3 = vcmask 130048   ;;  %vm1696_vm4 = vcmask 195584   ;;  %vm1698_vm5 = vcmask 261120  }
   0xf   : > { %v2018_v0 = vld [vmem:[%s197_s16] sm:$0xff]  ;;  %v2032_v8 = vunpack.c.0.s8 %v240_v3  ;;  %v2048_v25 = vunpack.c.0.s8 %v264_v18  ;;  %s204_s29 = scalar_lea.vmem %s2381_s2, %s2008_s13 }
  0x10   : > { %293 = vrot.lane.b32.xlu0 %v2018_v0, %s1963_s20  ;;  %296 = vrot.lane.b32.xlu1 %v2018_v0, %s1964_s21  ;;  %v2022_v1 = vld [vmem:[%s190_s19] sm:$0xff]  ;;  %v304_v6 = vrot.slane %v2018_v0, 4 }
  0x11   : > { %228 = vrot.lane.b32.xlu2 %v2022_v1, %s1964_s21 }
  0x18   : > { %299 = vrot.lane.b32.xlu0 %v2018_v0, %s1965_s22  ;;  %225 = vrot.lane.b32.xlu1 %v2022_v1, %s1963_s20 }
  0x19   : > { %231 = vrot.lane.b32.xlu2 %v2022_v1, %s1965_s22 }
  0x6b   : > { %v2064_v48 = vpop.permute.xlu2 %228 }
  0x73   : > { %v2066_v49 = vpop.permute.xlu2 %231 }
  0x82   : > { %v294_v4 = vpop.permute.xlu0 %293  ;;  %v2028_v5 = vpop.permute.xlu1 %296 }
  0x83   : > { %v302_v7 = vrot.slane %v2028_v5, 4  ;;  %v305_v10 = vsel %vm235_vm0, %v2028_v5, %v304_v6  ;;  %v316_v12 = vrot.slane %v294_v4, 4  ;;  %v1902_v47 = vpack.i.bf16 %v294_v4, %v2018_v0 }
  0x84   : > { %v313_v13 = vperm.slane %v305_v10, %v2032_v8 }
  0x85   : > { %v303_v9 = vsel %vm235_vm0, %v302_v7, %v2018_v0 }
  0x86   : > { %v309_v11 = vperm.slane %v303_v9, %v2032_v8  ;;  %v340_v21 = vrot.slane %v313_v13, 4 }
  0x88   : > { %v328_v20 = vrot.slane %v309_v11, 4 }
  0x8a   : > { %v2040_v14 = vpop.permute.xlu0 %299  ;;  %v2068_v51 = vpop.permute.xlu1 %225 }
  0x8b   : > { %v314_v15 = vrot.slane %v2040_v14, 4  ;;  %v317_v16 = vsel %vm235_vm0, %v2040_v14, %v316_v12 }
  0x8c   : > { %v325_v19 = vperm.slane %v317_v16, %v2032_v8 }
  0x8d   : > { %v315_v22 = vsel %vm235_vm0, %v314_v15, %v294_v4 }
  0x8e   : > { %v321_v23 = vperm.slane %v315_v22, %v2032_v8  ;;  %v338_v24 = vrot.slane %v325_v19, 4  ;;  %v341_v30 = vsel %vm235_vm0, %v325_v19, %v340_v21 }
  0x8f   : > { %v349_v35 = vperm.slane %v341_v30, %v2048_v25 }
  0x90   : > { %v326_v26 = vrot.slane %v321_v23, 4  ;;  %v339_v27 = vsel %vm235_vm0, %v338_v24, %v313_v13  ;;  %v329_v28 = vsel %vm235_vm0, %v321_v23, %v328_v20 }
  0x91   : > { %v345_v29 = vperm.slane %v339_v27, %v2048_v25  ;;  %v337_v32 = vperm.slane %v329_v28, %v2048_v25  ;;  %v356_v43 = vrot.slane %v349_v35, 4 }
  0x92   : > { %v327_v31 = vsel %vm235_vm0, %v326_v26, %v309_v11 }
  0x93   : > { %v333_v33 = vperm.slane %v327_v31, %v2048_v25  ;;  %v354_v34 = vrot.slane %v345_v29, 4  ;;  %v352_v40 = vrot.slane %v337_v32, 4  ;;  %v357_v45 = vsel %vm235_vm0, 0.0, %v356_v43 }
  0x95   : > { %v1846_v36 = vpack.i.bf16 %v333_v33, %v345_v29  ;;  %v355_v37 = vsel %vm235_vm0, 0.0, %v354_v34  ;;  %v350_v38 = vrot.slane %v333_v33, 4  ;;  %v353_v44 = vsel %vm235_vm0, 0.0, %v352_v40 }
  0x96   : > { %v1853_v39 = vpack.i.bf16 %v349_v35, %v355_v37  ;;  %v1867_v46 = vpack.i.bf16 %v353_v44, %v357_v45 }
  0x97   : > { %1847 = vxpose.xlu0.b32.start.end [1/1] (short) (narrow) %v1846_v36, 8  ;;  %v351_v41 = vsel %vm235_vm0, 0.0, %v350_v38 }
  0x98   : > { %1854 = vxpose.xlu1.b32.start.end [1/1] (short) (narrow) %v1853_v39, 8  ;;  %v1860_v42 = vpack.i.bf16 %v337_v32, %v351_v41 }
  0x9a   : > { %1861 = vxpose.xlu2.b32.start.end [1/1] (short) (narrow) %v1860_v42, 8 }
  0x9f   : > { %1868 = vxpose.xlu0.b32.start.end [1/1] (short) (narrow) %v1867_v46, 8 }
  0xf2   : > { %1903 = vrot.lane.b32.xlu1 %v1902_v47, %s1968_s23 }
 0x133   : > { %v1862_v50 = vpop.trf.xlu2 }
 0x134   : > { %v1866_v52 = vunpack.i.h.bf16 %v1862_v50  ;;  %v1863_v57 = vunpack.i.l.bf16 %v1862_v50 }
 0x136   : > { %v736_v59 = vrot.slane %v1866_v52, 4  ;;  %v750_v4 = vrot.slane %v1863_v57, 4 }
 0x13b   : > { %v1848_v53 = vpop.trf.xlu0 }
 0x13c   : > { %v1852_v54 = vunpack.i.h.bf16 %v1848_v53  ;;  %v1849_v55 = vunpack.i.l.bf16 %v1848_v53  ;;  %v1855_v56 = vpop.trf.xlu1 }
 0x13d   : > { %v1859_v58 = vunpack.i.h.bf16 %v1855_v56  ;;  %v1856_v62 = vunpack.i.l.bf16 %v1855_v56 }
 0x13e   : > { %v738_v60 = vrot.slane %v1852_v54, 4  ;;  %v762_v61 = vrot.slane %v1849_v55, 4  ;;  %v737_v6 = vsel %vm235_vm0, %v736_v59, %v1852_v54 }
 0x13f   : > { %v760_v63 = vrot.slane %v1859_v58, 4  ;;  %v774_v7 = vrot.slane %v1856_v62, 4  ;;  %v743_v16 = vperm.slane %v737_v6, %v2032_v8 }
 0x140   : > { %v739_v0 = vsel %vm235_vm0, %v1866_v52, %v738_v60  ;;  %v763_v2 = vsel %vm235_vm0, %v1859_v58, %v762_v61 }
 0x141   : > { %v761_v3 = vsel %vm235_vm0, %v760_v63, %v1849_v55  ;;  %v771_v10 = vperm.slane %v763_v2, %v2032_v8  ;;  %v747_v12 = vperm.slane %v739_v0, %v2032_v8  ;;  %v786_v36 = vrot.slane %v743_v16, 4 }
 0x142   : > { %v767_v9 = vperm.slane %v761_v3, %v2032_v8 }
 0x143   : > { %v1869_v11 = vpop.trf.xlu0  ;;  %v798_v23 = vrot.slane %v747_v12, 4  ;;  %v822_v27 = vrot.slane %v771_v10, 4 }
 0x144   : > { %v1873_v13 = vunpack.i.h.bf16 %v1869_v11  ;;  %v1870_v15 = vunpack.i.l.bf16 %v1869_v11  ;;  %v810_v28 = vrot.slane %v767_v9, 4 }
 0x146   : > { %v748_v17 = vrot.slane %v1873_v13, 4  ;;  %v751_v18 = vsel %vm235_vm0, %v1873_v13, %v750_v4  ;;  %v772_v19 = vrot.slane %v1870_v15, 4  ;;  %v775_v20 = vsel %vm235_vm0, %v1870_v15, %v774_v7 }
 0x147   : > { %v759_v21 = vperm.slane %v751_v18, %v2032_v8  ;;  %v783_v22 = vperm.slane %v775_v20, %v2032_v8  ;;  %v234_v15 = vrot.slane %v2064_v48, 4  ;;  %v247_v18 = vrot.slane %v2066_v49, 4 }
 0x148   : > { %v749_v24 = vsel %vm235_vm0, %v748_v17, %v1863_v57  ;;  %v773_v26 = vsel %vm235_vm0, %v772_v19, %v1856_v62  ;;  %v249_v20 = vrot.slane %v2068_v51, 4 }
 0x149   : > { %v779_v29 = vperm.slane %v773_v26, %v2032_v8  ;;  %v820_v30 = vrot.slane %v783_v22, 4  ;;  %v796_v31 = vrot.slane %v759_v21, 4  ;;  %v799_v32 = vsel %vm235_vm0, %v759_v21, %v798_v23 }
 0x14a   : > { %v807_v33 = vperm.slane %v799_v32, %v2048_v25  ;;  %v823_v34 = vsel %vm235_vm0, %v783_v22, %v822_v27  ;;  %v755_v35 = vperm.slane %v749_v24, %v2032_v8  ;;  %v236_v17 = vsel %vm235_vm0, %v234_v15, %v2022_v1 }
 0x14b   : > { %v797_v37 = vsel %vm235_vm0, %v796_v31, %v747_v12  ;;  %v821_v38 = vsel %vm235_vm0, %v820_v30, %v771_v10  ;;  %v831_v39 = vperm.slane %v823_v34, %v2048_v25  ;;  %v811_v40 = vsel %vm235_vm0, %v779_v29, %v810_v28 }
 0x14c   : > { %v827_v41 = vperm.slane %v821_v38, %v2048_v25  ;;  %v846_v42 = vrot.slane %v807_v33, 4  ;;  %v787_v43 = vsel %vm235_vm0, %v755_v35, %v786_v36  ;;  %v819_v44 = vperm.slane %v811_v40, %v2048_v25 }
 0x14d   : > { %v844_v45 = vrot.slane %v831_v39, 4  ;;  %v784_v46 = vrot.slane %v755_v35, 4  ;;  %v803_v47 = vperm.slane %v797_v37, %v2048_v25  ;;  %v808_v52 = vrot.slane %v779_v29, 4 }
 0x14e   : > { %v840_v50 = vrot.slane %v827_v41, 4  ;;  %v795_v53 = vperm.slane %v787_v43, %v2048_v25  ;;  %v836_v54 = vrot.slane %v819_v44, 4  ;;  %v847_v57 = vsel %vm235_vm0, %v831_v39, %v846_v42 }
 0x14f   : > { %v785_v55 = vsel %vm235_vm0, %v784_v46, %v743_v16  ;;  %v809_v59 = vsel %vm235_vm0, %v808_v52, %v767_v9  ;;  %v845_v62 = vsel %vm235_vm0, %v844_v45, %v807_v33  ;;  %v842_v4 = vrot.slane %v803_v47, 4 }
 0x150   : > { %v841_v56 = vsel %vm235_vm0, %v840_v50, %v803_v47  ;;  %v791_v58 = vperm.slane %v785_v55, %v2048_v25  ;;  %v837_v61 = vsel %vm235_vm0, %v836_v54, %v795_v53  ;;  %v815_v63 = vperm.slane %v809_v59, %v2048_v25 }
 0x151   : > { %v1888_v60 = vpack.i.bf16 %v847_v57, %v841_v56  ;;  %v1874_v0 = vpack.i.bf16 %v837_v61, %v845_v62  ;;  %v838_v6 = vrot.slane %v795_v53, 4  ;;  %v843_v9 = vsel %vm235_vm0, %v827_v41, %v842_v4 }
 0x152   : > { %v834_v2 = vrot.slane %v791_v58, 4  ;;  %v832_v3 = vrot.slane %v815_v63, 4  ;;  %v237_v16 = vrot.slane %v2022_v1, 4  ;;  %v242_v21 = vperm.slane %v236_v17, %v2032_v8 }
 0x153   : > { %1889 = vxpose.xlu0.b32.start.end [1/1] (short) (narrow) %v1888_v60, 8  ;;  %1875 = vxpose.xlu2.b32.start.end [1/1] (short) (narrow) %v1874_v0, 8  ;;  %v839_v12 = vsel %vm235_vm0, %v819_v44, %v838_v6  ;;  %v248_v23 = vsel %vm235_vm0, %v247_v18, %v2068_v51  ;;  %v250_v24 = vsel %vm235_vm0, %v2066_v49, %v249_v20 }
 0x154   : > { %v835_v7 = vsel %vm235_vm0, %v815_v63, %v834_v2  ;;  %v833_v10 = vsel %vm235_vm0, %v832_v3, %v791_v58  ;;  %v238_v19 = vsel %vm235_vm0, %v2064_v48, %v237_v16  ;;  %v261_v26 = vrot.slane %v242_v21, 4 }
 0x155   : > { %v1895_v11 = vpack.i.bf16 %v835_v7, %v843_v9  ;;  %v1881_v13 = vpack.i.bf16 %v839_v12, %v833_v10  ;;  %v246_v22 = vperm.slane %v238_v19, %v2032_v8  ;;  %v254_v1 = vperm.slane %v248_v23, %v2032_v8 }
 0x156   : > { %v258_v28 = vperm.slane %v250_v24, %v2032_v8 }
 0x157   : > { %v273_v27 = vrot.slane %v246_v22, 4  ;;  %v259_v29 = vrot.slane %v254_v1, 4  ;;  %v262_v48 = vsel %vm235_vm0, %v254_v1, %v261_v26 }
 0x158   : > { %v271_v30 = vrot.slane %v258_v28, 4  ;;  %v270_v32 = vperm.slane %v262_v48, %v2048_v25 }
 0x159   : > { %v274_v31 = vsel %vm235_vm0, %v258_v28, %v273_v27  ;;  %v260_v33 = vsel %vm235_vm0, %v259_v29, %v242_v21 }
 0x15a   : > { %v282_v51 = vperm.slane %v274_v31, %v2048_v25  ;;  %v272_v49 = vsel %vm235_vm0, %v271_v30, %v246_v22  ;;  %v266_v34 = vperm.slane %v260_v33, %v2048_v25  ;;  %v285_v35 = vrot.slane %v270_v32, 4 }
 0x15b   : > { %1896 = vxpose.xlu0.b32.start.end [1/1] (short) (narrow) %v1895_v11, 8  ;;  %1882 = vxpose.xlu2.b32.start.end [1/1] (short) (narrow) %v1881_v13, 8  ;;  %v278_v36 = vperm.slane %v272_v49, %v2048_v25 }
 0x15c   : > { %v289_v37 = vrot.slane %v282_v51, 4  ;;  %v283_v39 = vrot.slane %v266_v34, 4  ;;  %v286_v40 = vsel %vm235_vm0, 0.0, %v285_v35  ;;  %v426_v46 = vsel %vm235_vm0, %v285_v35, %v266_v34 }
 0x15d   : > { %v287_v41 = vrot.slane %v278_v36, 4  ;;  %v431_v43 = vrot.slane %v286_v40, 4  ;;  %v430_v56 = vperm.slane %v426_v46, %v2032_v8 }
 0x15e   : > { %v290_v42 = vsel %vm235_vm0, 0.0, %v289_v37  ;;  %v284_v44 = vsel %vm235_vm0, 0.0, %v283_v39  ;;  %v437_v53 = vsel %vm235_vm0, %v289_v37, %v278_v36 }
 0x15f   : > { %v442_v45 = vrot.slane %v290_v42, 4  ;;  %v288_v52 = vsel %vm235_vm0, 0.0, %v287_v41  ;;  %v432_v55 = vsel %vm235_vm0, %v431_v43, %v284_v44  ;;  %v441_v61 = vperm.slane %v437_v53, %v2032_v8 }
 0x160   : > { %v436_v0 = vperm.slane %v432_v55, %v2032_v8  ;;  %v450_v4 = vrot.slane %v430_v56, 4 }
 0x161   : > { %v443_v57 = vsel %vm235_vm0, %v442_v45, %v288_v52  ;;  %v462_v7 = vrot.slane %v441_v61, 4 }
 0x162   : > { %v447_v2 = vperm.slane %v443_v57, %v2032_v8  ;;  %v448_v11 = vrot.slane %v436_v0, 4  ;;  %v451_v15 = vsel %vm235_vm0, %v436_v0, %v450_v4 }
 0x163   : > { %v459_v27 = vperm.slane %v451_v15, %v2048_v25 }
 0x164   : > { %v460_v12 = vrot.slane %v447_v2, 4  ;;  %v463_v20 = vsel %vm235_vm0, %v447_v2, %v462_v7  ;;  %v449_v23 = vsel %vm235_vm0, %v448_v11, %v430_v56  ;;  %v1971_v11 = vmov 0.0  }
 0x165   : > { %v471_v28 = vperm.slane %v463_v20, %v2048_v25  ;;  %v455_v32 = vperm.slane %v449_v23, %v2048_v25  ;;  %v478_v39 = vrot.slane %v459_v27, 4  ;;  %217 = vst.msk [vmem:[#allocation3 + $0x18] sm:$0xff] %vm209_vm2, %v1971_v11 }
 0x166   : > { %v461_v24 = vsel %vm235_vm0, %v460_v12, %v441_v61  ;;  %v1969_v61 = vmov -inf   ;;  %214 = vst.msk [vmem:[#allocation3] sm:$0xff] %vm209_vm2, %v1971_v11 }
 0x167   : > { %v467_v33 = vperm.slane %v461_v24, %v2048_v25  ;;  %v479_v56 = vsel %vm235_vm0, %v471_v28, %v478_v39  ;;  %211 = vst.msk [vmem:[#allocation2 + $0x8] sm:$0xff] %vm209_vm2, %v1969_v61 }
 0x168   : > { %210 = vst.msk [vmem:[#allocation2] sm:$0xff] %vm209_vm2, %v1969_v61 }
 0x169   : > { %v472_v46 = vrot.slane %v467_v33, 4  ;;  %212 = vst.msk [vmem:[#allocation2 + $0x10] sm:$0xff] %vm209_vm2, %v1969_v61 }
 0x16a   : > { %213 = vst.msk [vmem:[#allocation2 + $0x18] sm:$0xff] %vm209_vm2, %v1969_v61 }
 0x16b   : > { %215 = vst.msk [vmem:[#allocation3 + $0x8] sm:$0xff] %vm209_vm2, %v1971_v11 }
 0x16c   : > { %216 = vst.msk [vmem:[#allocation3 + $0x10] sm:$0xff] %vm209_vm2, %v1971_v11 }
 0x16d   : > { %219 = vst.msk [vmem:[#allocation4] sm:$0xff] %vm218_vm1, %v1971_v11 }
 0x16e   : > { %220 = vst.msk [vmem:[#allocation4 + $0x8] sm:$0xff] %vm218_vm1, %v1971_v11 }
 0x16f   : > { %221 = vst.msk [vmem:[#allocation4 + $0x10] sm:$0xff] %vm218_vm1, %v1971_v11  ;;  %v2215_v12 = vld [vmem:[#allocation2] sm:$0xff] }
 0x170   : > { %222 = vst.msk [vmem:[#allocation4 + $0x18] sm:$0xff] %vm218_vm1, %v1971_v11  ;;  %v2237_v23 = vld [vmem:[#allocation2 + $0x10] sm:$0xff] }
 0x1ec   : > { %v1876_v38 = vpop.trf.xlu2 }
 0x1ed   : > { %v1880_v47 = vunpack.i.h.bf16 %v1876_v38  ;;  %v1877_v50 = vunpack.i.l.bf16 %v1876_v38  ;;  %v476_v38 = vrot.slane %v471_v28, 4 }
 0x1ef   : > { %v1104_v58 = vrot.slane %v1880_v47, 4  ;;  %v1116_v59 = vrot.slane %v1877_v50, 4  ;;  %v474_v47 = vrot.slane %v455_v32, 4  ;;  %v477_v55 = vsel %vm235_vm0, %v476_v38, %v459_v27 }
 0x1f4   : > { %v1883_v54 = vpop.trf.xlu2 }
 0x1f5   : > { %v1884_v63 = vunpack.i.l.bf16 %v1883_v54  ;;  %v1887_v3 = vunpack.i.h.bf16 %v1883_v54 }
 0x1f7   : > { %v1890_v60 = vpop.trf.xlu0  ;;  %v1105_v9 = vsel %vm235_vm0, %v1104_v58, %v1884_v63  ;;  %v1110_v13 = vrot.slane %v1887_v3, 4 }
 0x1f8   : > { %v1891_v62 = vunpack.i.l.bf16 %v1890_v60  ;;  %v1894_v6 = vunpack.i.h.bf16 %v1890_v60  ;;  %v1109_v18 = vperm.slane %v1105_v9, %v2032_v8  ;;  %v475_v60 = vsel %vm235_vm0, %v467_v33, %v474_v47 }
 0x1f9   : > { %v1970_v9 = vmov 0  }
 0x1fa   : > { %v1117_v10 = vsel %vm235_vm0, %v1116_v59, %v1891_v62  ;;  %v1122_v16 = vrot.slane %v1894_v6, 4  ;;  %v1130_v30 = vrot.slane %v1109_v18, 4  ;;  %v473_v59 = vsel %vm235_vm0, %v472_v46, %v455_v32  ;;  %1914 = vset.pattern.permute.xlu2 %v1970_v9  ;;  %1913 = vset.pattern.permute.xlu1 %v1970_v9 }
 0x1fb   : > { %v1121_v17 = vperm.slane %v1117_v10, %v2032_v8  ;;  %v1907_v10 = vpack.i.bf16 %v2040_v14, %v2028_v5  ;;  %1912 = vset.pattern.permute.xlu0 %v1970_v9  ;;  %v1904_v5 = vpop.permute.xlu1 %1903  ;;  %v2213_v14 = vld [vmem:[#allocation2 + $0x8] sm:$0xff] }
 0x1fc   : > { %v1905_v28 = vunpack.i.l.bf16 %v1904_v5 }
 0x1fd   : > { %v1142_v31 = vrot.slane %v1121_v17, 4 }
 0x1fe   : > { %v372_v33 = vrot.slane %v1905_v28, 4 }
 0x1ff   : > { %v1897_v19 = vpop.trf.xlu0 }
 0x200   : > { %v1901_v21 = vunpack.i.h.bf16 %v1897_v19  ;;  %v1898_v22 = vunpack.i.l.bf16 %v1897_v19 }
 0x202   : > { %v1111_v26 = vsel %vm235_vm0, %v1110_v13, %v1901_v21  ;;  %v1123_v1 = vsel %vm235_vm0, %v1122_v16, %v1898_v22 }
 0x203   : > { %v1127_v29 = vperm.slane %v1123_v1, %v2032_v8  ;;  %v1115_v48 = vperm.slane %v1111_v26, %v2032_v8  ;;  %v1906_v1 = vunpack.i.h.bf16 %v1904_v5 }
 0x205   : > { %v1131_v51 = vsel %vm235_vm0, %v1115_v48, %v1130_v30  ;;  %v1143_v49 = vsel %vm235_vm0, %v1127_v29, %v1142_v31  ;;  %v1128_v34 = vrot.slane %v1115_v48, 4  ;;  %v1140_v35 = vrot.slane %v1127_v29, 4 }
 0x206   : > { %v1139_v36 = vperm.slane %v1131_v51, %v2048_v25  ;;  %v1151_v37 = vperm.slane %v1143_v49, %v2048_v25  ;;  %v384_v30 = vrot.slane %v1906_v1, 4 }
 0x207   : > { %v1129_v40 = vsel %vm235_vm0, %v1128_v34, %v1109_v18  ;;  %v1141_v41 = vsel %vm235_vm0, %v1140_v35, %v1121_v17  ;;  %v2223_v18 = vld [vmem:[#allocation2 + $0x18] sm:$0xff] }
 0x208   : > { %v1156_v42 = vrot.slane %v1151_v37, 4  ;;  %v1158_v43 = vrot.slane %v1139_v36, 4  ;;  %v1135_v44 = vperm.slane %v1129_v40, %v2048_v25  ;;  %v1147_v45 = vperm.slane %v1141_v41, %v2048_v25 }
 0x20a   : > { %v1157_v50 = vsel %vm235_vm0, %v1156_v42, %v1139_v36  ;;  %v1159_v52 = vsel %vm235_vm0, %v1151_v37, %v1158_v43  ;;  %v1152_v53 = vrot.slane %v1147_v45, 4  ;;  %v1154_v54 = vrot.slane %v1135_v44, 4 }
 0x20b   : > { %1225 = vmatpush.msra.mxu2 %v1157_v50  ;;  %1248 = vmatpush.msra.mxu3 %v1159_v52 }
 0x20c   : > { %1802 = vmatmul.msk.f32.vlgmr.msra.gmra.mxu2 %vm218_vm1, %v477_v55  ;;  %1803 = vmatmul.msk.f32.vlgmr.msra.gmra.mxu3 %vm218_vm1, %v479_v56  ;;  %v1153_v57 = vsel %vm235_vm0, %v1152_v53, %v1135_v44  ;;  %v1155_v58 = vsel %vm235_vm0, %v1147_v45, %v1154_v54 }
 0x20d   : > { %1179 = vmatpush.msra.mxu0 %v1153_v57  ;;  %1202 = vmatpush.msra.mxu1 %v1155_v58 }
 0x20e   : > { %1800 = vmatmul.msk.f32.vlgmr.msra.gmra.mxu0 %vm218_vm1, %v473_v59  ;;  %1801 = vmatmul.msk.f32.vlgmr.msra.gmra.mxu1 %vm218_vm1, %v475_v60 }
 0x28b   : > { %v2183_v62 = vpop.f32.mrf.mxu0  ;;  %v2185_v63 = vpop.f32.mrf.mxu1 }
 0x28c   : > { %v1260_v0 = vsel %vm218_vm1, %v2185_v63, -inf  ;;  %v1257_v2 = vsel %vm218_vm1, %v2183_v62, -inf }
 0x28d   : > { %1261 = vmax.xlane.f32.xlu1 %v1260_v0  ;;  %1258 = vmax.xlane.f32.xlu0 %v1257_v2 }
 0x28f   : > { %v2194_v3 = vpop.f32.mrf.mxu3  ;;  %v2198_v6 = vpop.f32.mrf.mxu2 }
 0x290   : > { %v1266_v4 = vsel %vm218_vm1, %v2194_v3, -inf  ;;  %v1263_v7 = vsel %vm218_vm1, %v2198_v6, -inf }
 0x291   : > { %1267 = vmax.xlane.f32.xlu2 %v1266_v4 }
 0x295   : > { %1264 = vmax.xlane.f32.xlu1 %v1263_v7 }
 0x2a9   : > { %1908 = vrot.lane.b32.xlu2 %v1907_v10, %s1968_s23 }
 0x300   : > { %v1262_v13 = vpop.xlane.xlu1 %1261  ;;  %v1259_v15 = vpop.xlane.xlu0 %1258 }
 0x301   : > { %v2218_v16 = vmax.f32 %v2213_v14, %v1262_v13  ;;  %v2221_v17 = vmax.f32 %v2215_v12, %v1259_v15 }
 0x303   : > { %v1274_v19 = vsub.f32 %v2213_v14, %v2218_v16  ;;  %1529 = vst.msk [vmem:[#allocation2 + $0x8] sm:$0xff] %vm209_vm2, %v2218_v16  ;;  %v1273_v20 = vsub.f32 %v2215_v12, %v2221_v17  ;;  %1292 = vperm.xlu2 %1914, %v2218_v16  }
 0x304   : > { %1528 = vst.msk [vmem:[#allocation2] sm:$0xff] %vm209_vm2, %v2221_v17  ;;  %v1268_v21 = vpop.xlane.xlu2 %1267 }
 0x305   : > { %v2235_v22 = vmax.f32 %v2223_v18, %v1268_v21 }
 0x307   : > { %v1276_v24 = vsub.f32 %v2223_v18, %v2235_v22  ;;  %1531 = vst.msk [vmem:[#allocation2 + $0x18] sm:$0xff] %vm209_vm2, %v2235_v22  ;;  %1302 = vperm.xlu1 %1913, %v2235_v22   ;;  %v1279_v18 = vmul.f32 1.442695, %v1274_v19 }
 0x308   : > { %v1265_v26 = vpop.xlane.xlu1 %1264 }
 0x309   : > { %v2245_v27 = vmax.f32 %v2237_v23, %v1265_v26 }
 0x30b   : > { %v1275_v29 = vsub.f32 %v2237_v23, %v2245_v27  ;;  %1530 = vst.msk [vmem:[#allocation2 + $0x10] sm:$0xff] %vm209_vm2, %v2245_v27  ;;  %1297 = vperm.xlu0 %1912, %v2245_v27  }
 0x30c   : > { %v1909_v48 = vpop.permute.xlu2 %1908 }
 0x30d   : > { %v1911_v31 = vunpack.i.h.bf16 %v1909_v48  ;;  %v1910_v32 = vunpack.i.l.bf16 %v1909_v48 }
 0x30f   : > { %v382_v51 = vrot.slane %v1911_v31, 4  ;;  %v385_v49 = vsel %vm235_vm0, %v1911_v31, %v384_v30  ;;  %v370_v34 = vrot.slane %v1910_v32, 4  ;;  %1287 = vperm.xlu1 %1913, %v2221_v17   ;;  %v373_v36 = vsel %vm235_vm0, %v1910_v32, %v372_v33 }
 0x310   : > { %v393_v35 = vperm.slane %v385_v49, %v2032_v8  ;;  %v381_v39 = vperm.slane %v373_v36, %v2032_v8 }
 0x311   : > { %v383_v37 = vsel %vm235_vm0, %v382_v51, %v1906_v1  ;;  %v371_v38 = vsel %vm235_vm0, %v370_v34, %v1905_v28 }
 0x312   : > { %v389_v40 = vperm.slane %v383_v37, %v2032_v8  ;;  %v406_v41 = vrot.slane %v393_v35, 4  ;;  %v377_v42 = vperm.slane %v371_v38, %v2032_v8  ;;  %v408_v43 = vrot.slane %v381_v39, 4 }
 0x314   : > { %v394_v44 = vrot.slane %v389_v40, 4  ;;  %v396_v45 = vrot.slane %v377_v42, 4  ;;  %v407_v46 = vsel %vm235_vm0, %v406_v41, %v381_v39  ;;  %v409_v47 = vsel %vm235_vm0, %v393_v35, %v408_v43 }
 0x315   : > { %v413_v50 = vperm.slane %v407_v46, %v2048_v25  ;;  %v417_v54 = vperm.slane %v409_v47, %v2048_v25 }
 0x316   : > { %v395_v52 = vsel %vm235_vm0, %v394_v44, %v377_v42  ;;  %v397_v53 = vsel %vm235_vm0, %v389_v40, %v396_v45 }
 0x317   : > { %v401_v55 = vperm.slane %v395_v52, %v2048_v25  ;;  %v405_v56 = vperm.slane %v397_v53, %v2048_v25  ;;  %v422_v57 = vrot.slane %v413_v50, 4  ;;  %v424_v58 = vrot.slane %v417_v54, 4 }
 0x319   : > { %v420_v59 = vrot.slane %v405_v56, 4  ;;  %v418_v60 = vrot.slane %v401_v55, 4  ;;  %v425_v61 = vsel %vm235_vm0, 0.0, %v424_v58  ;;  %v1385_v0 = vsel %vm235_vm0, %v424_v58, %v413_v50 }
 0x31a   : > { %v1390_v2 = vrot.slane %v425_v61, 4  ;;  %v423_v10 = vsel %vm235_vm0, 0.0, %v422_v57  ;;  %v1389_v5 = vperm.slane %v1385_v0, %v2032_v8 }
 0x31b   : > { %v421_v4 = vsel %vm235_vm0, 0.0, %v420_v59  ;;  %v1374_v7 = vsel %vm235_vm0, %v420_v59, %v401_v55  ;;  %v419_v13 = vsel %vm235_vm0, 0.0, %v418_v60 }
 0x31c   : > { %v1378_v9 = vperm.slane %v1374_v7, %v2032_v8  ;;  %v1379_v11 = vrot.slane %v421_v4, 4  ;;  %v1391_v15 = vsel %vm235_vm0, %v1390_v2, %v423_v10  ;;  %v1410_v28 = vrot.slane %v1389_v5, 4 }
 0x31d   : > { %v1395_v26 = vperm.slane %v1391_v15, %v2032_v8 }
 0x31e   : > { %v1380_v21 = vsel %vm235_vm0, %v1379_v11, %v419_v13  ;;  %v1398_v1 = vrot.slane %v1378_v9, 4  ;;  %v1277_v11 = vmul.f32 1.442695, %v1273_v20  ;;  %v1320_v13 = vld [vmem:[#allocation3 + $0x18] sm:$0xff]  ;;  %v1317_v20 = vld [vmem:[#allocation3] sm:$0xff] }
 0x31f   : > { %v1384_v48 = vperm.slane %v1380_v21, %v2032_v8  ;;  %v1411_v30 = vsel %vm235_vm0, %v1395_v26, %v1410_v28  ;;  %v1408_v31 = vrot.slane %v1395_v26, 4  ;;  %v1318_v21 = vld [vmem:[#allocation3 + $0x8] sm:$0xff] }
 0x320   : > { %v1419_v33 = vperm.slane %v1411_v30, %v2048_v25 }
 0x321   : > { %v1399_v32 = vsel %vm235_vm0, %v1384_v48, %v1398_v1  ;;  %v1396_v51 = vrot.slane %v1384_v48, 4  ;;  %v1409_v34 = vsel %vm235_vm0, %v1408_v31, %v1389_v5  ;;  %v1348_v31 = vld [vmem:[#allocation4 + $0x10] sm:$0xff] }
 0x322   : > { %v1407_v49 = vperm.slane %v1399_v32, %v2048_v25  ;;  %v1424_v35 = vrot.slane %v1419_v33, 4  ;;  %v1415_v37 = vperm.slane %v1409_v34, %v2048_v25  ;;  %v1349_v34 = vld [vmem:[#allocation4 + $0x18] sm:$0xff] }
 0x323   : > { %v1397_v36 = vsel %vm235_vm0, %v1396_v51, %v1378_v9  ;;  %v1281_v9 = vmul.f32 1.442695, %v1275_v29  ;;  %v1319_v29 = vld [vmem:[#allocation3 + $0x10] sm:$0xff] }
 0x324   : > { %v1403_v38 = vperm.slane %v1397_v36, %v2048_v25  ;;  %v1426_v39 = vrot.slane %v1407_v49, 4  ;;  %v1425_v40 = vsel %vm235_vm0, %v1424_v35, %v1407_v49  ;;  %v1420_v41 = vrot.slane %v1415_v37, 4 }
 0x325   : > { %1492 = vmatpush.msrb.mxu2 %v1425_v40 }
 0x326   : > { %v1427_v42 = vsel %vm235_vm0, %v1419_v33, %v1426_v39  ;;  %v1422_v43 = vrot.slane %v1403_v38, 4  ;;  %v1421_v44 = vsel %vm235_vm0, %v1420_v41, %v1403_v38 }
 0x327   : > { %1515 = vmatpush.msrb.mxu3 %v1427_v42  ;;  %1446 = vmatpush.msrb.mxu0 %v1421_v44 }
 0x328   : > { %v1423_v45 = vsel %vm235_vm0, %v1415_v37, %v1422_v43  ;;  %v1347_v43 = vld [vmem:[#allocation4 + $0x8] sm:$0xff] }
 0x329   : > { %1469 = vmatpush.msrb.mxu1 %v1423_v45 }
 0x35d   : > { %v1293_v46 = vpop.permute.xlu2 %1292 }
 0x35e   : > { %v1306_v47 = vsub.f32 %v2185_v63, %v1293_v46 }
 0x360   : > { %v1311_v50 = vmul.f32 1.442695, %v1306_v47 }
 0x362   : > { %1915 = vpow2.f32 %v1311_v50 }
 0x368   : > { %v1916_v52 = vpop.eup %1915 }
 0x369   : > { %1805 = vmatmul.msk.f32.vlgmr.msrb.gmra.mxu1 %vm218_vm1, %v1916_v52  ;;  %v1328_v7 = vsel %vm218_vm1, %v1916_v52, 0.0 }
 0x379   : > { %v1303_v53 = vpop.permute.xlu1 %1302 }
 0x37a   : > { %v1308_v54 = vsub.f32 %v2194_v3, %v1303_v53 }
 0x37c   : > { %v1315_v55 = vmul.f32 1.442695, %v1308_v54  ;;  %v1346_v54 = vld [vmem:[#allocation4] sm:$0xff] }
 0x37d   : > { %v1298_v56 = vpop.permute.xlu0 %1297 }
 0x37e   : > { %1917 = vpow2.f32 %v1315_v55  ;;  %v1307_v57 = vsub.f32 %v2198_v6, %v1298_v56 }
 0x380   : > { %v1313_v58 = vmul.f32 1.442695, %v1307_v57 }
 0x381   : > { %v1288_v59 = vpop.permute.xlu1 %1287 }
 0x382   : > { %1919 = vpow2.f32 %v1313_v58  ;;  %v1305_v60 = vsub.f32 %v2183_v62, %v1288_v59  ;;  %v1283_v62 = vmul.f32 1.442695, %v1276_v24 }
 0x384   : > { %v1918_v61 = vpop.eup %1917  ;;  %v1309_v63 = vmul.f32 1.442695, %v1305_v60 }
 0x385   : > { %1807 = vmatmul.msk.f32.vlgmr.msrb.gmra.mxu3 %vm218_vm1, %v1918_v61  ;;  %v1334_v0 = vsel %vm218_vm1, %v1918_v61, 0.0 }
 0x386   : > { %1921 = vpow2.f32 %v1309_v63  ;;  %1335 = vadd.xlane.f32.xlu0 %v1334_v0 }
 0x387   : > { %1923 = vpow2.f32 %v1283_v62 }
 0x388   : > { %v1920_v2 = vpop.eup %1919  ;;  %1925 = vpow2.f32 %v1281_v9 }
 0x389   : > { %1806 = vmatmul.msk.f32.vlgmr.msrb.gmra.mxu2 %vm218_vm1, %v1920_v2  ;;  %v1331_v3 = vsel %vm218_vm1, %v1920_v2, 0.0  ;;  %1927 = vpow2.f32 %v1277_v11 }
 0x38a   : > { %1332 = vadd.xlane.f32.xlu1 %v1331_v3  ;;  %1929 = vpow2.f32 %v1279_v18 }
 0x38c   : > { %v1922_v6 = vpop.eup %1921 }
 0x38d   : > { %1804 = vmatmul.msk.f32.vlgmr.msrb.gmra.mxu0 %vm218_vm1, %v1922_v6  ;;  %v1325_v4 = vsel %vm218_vm1, %v1922_v6, 0.0  ;;  %v1924_v10 = vpop.eup %1923 }
 0x38e   : > { %1326 = vadd.xlane.f32.xlu2 %v1325_v4  ;;  %v1926_v22 = vpop.eup %1925  ;;  %v1324_v23 = vmul.f32 %v1924_v10, %v1320_v13 }
 0x38f   : > { %v1928_v24 = vpop.eup %1927  ;;  %v1323_v12 = vmul.f32 %v1926_v22, %v1319_v29 }
 0x390   : > { %v1930_v5 = vpop.eup %1929  ;;  %v1321_v16 = vmul.f32 %v1928_v24, %v1317_v20 }
 0x391   : > { %v1322_v28 = vmul.f32 %v1930_v5, %v1318_v21 }
 0x392   : > { %1329 = vadd.xlane.f32.xlu1 %v1328_v7 }
 0x39a   : > { %1367 = vperm.xlu0 %1912, %v1924_v10  }
 0x3a6   : > { %1362 = vperm.xlu2 %1914, %v1926_v22  }
 0x3ab   : > { %1352 = vperm.xlu1 %1913, %v1928_v24  }
 0x3ae   : > { %1357 = vperm.xlu2 %1914, %v1930_v5  }
 0x3e6   : > { %v1471_v50 = vpop.f32.mrf.mxu1 }
 0x3f9   : > { %v1336_v27 = vpop.xlane.xlu0 %1335 }
 0x3fa   : > { %v1340_v15 = vadd.f32 %v1336_v27, %v1324_v23 }
 0x3fc   : > { %1345 = vst.msk [vmem:[#allocation3 + $0x18] sm:$0xff] %vm209_vm2, %v1340_v15 }
 0x3fd   : > { %v1333_v17 = vpop.xlane.xlu1 %1332 }
 0x3fe   : > { %v1339_v14 = vadd.f32 %v1333_v17, %v1323_v12 }
 0x400   : > { %1344 = vst.msk [vmem:[#allocation3 + $0x10] sm:$0xff] %vm209_vm2, %v1339_v14 }
 0x401   : > { %v1327_v19 = vpop.xlane.xlu2 %1326 }
 0x402   : > { %v1337_v26 = vadd.f32 %v1327_v19, %v1321_v16 }
 0x403   : > { %v1542_v1 = vld [vmem:[#allocation3 + $0x18] sm:$0xff] }
 0x404   : > { %1342 = vst.msk [vmem:[#allocation3] sm:$0xff] %vm209_vm2, %v1337_v26  ;;  %1931 = vrcp.f32 %v1542_v1 }
 0x405   : > { %v1330_v48 = vpop.xlane.xlu1 %1329 }
 0x406   : > { %v1338_v30 = vadd.f32 %v1330_v48, %v1322_v28 }
 0x407   : > { %v1541_v32 = vld [vmem:[#allocation3 + $0x10] sm:$0xff] }
 0x408   : > { %1343 = vst.msk [vmem:[#allocation3 + $0x8] sm:$0xff] %vm209_vm2, %v1338_v30  ;;  %1933 = vrcp.f32 %v1541_v32  ;;  %v1517_v41 = vpop.f32.mrf.mxu3 }
 0x409   : > { %v1363_v33 = vpop.permute.xlu2 %1362 }
 0x40a   : > { %v1932_v51 = vpop.eup %1931  ;;  %v1372_v49 = vmul.f32 %v1363_v33, %v1348_v31  ;;  %v1448_v57 = vpop.f32.mrf.mxu0 }
 0x40b   : > { %1564 = vperm.xlu1 %1913, %v1932_v51   ;;  %v1539_v35 = vld [vmem:[#allocation3] sm:$0xff] }
 0x40c   : > { %v1494_v36 = vpop.f32.mrf.mxu2  ;;  %v1368_v37 = vpop.permute.xlu0 %1367  ;;  %1935 = vrcp.f32 %v1539_v35 }
 0x40d   : > { %v1522_v38 = vadd.f32 %v1494_v36, %v1372_v49  ;;  %v1373_v39 = vmul.f32 %v1368_v37, %v1349_v34 }
 0x40e   : > { %v1934_v40 = vpop.eup %1933 }
 0x40f   : > { %1526 = vst.msk [vmem:[#allocation4 + $0x10] sm:$0xff] %vm218_vm1, %v1522_v38  ;;  %v1523_v42 = vadd.f32 %v1517_v41, %v1373_v39  ;;  %1559 = vperm.xlu2 %1914, %v1934_v40   ;;  %v1540_v44 = vld [vmem:[#allocation3 + $0x8] sm:$0xff] }
 0x410   : > { %1937 = vrcp.f32 %v1540_v44 }
 0x411   : > { %1527 = vst.msk [vmem:[#allocation4 + $0x18] sm:$0xff] %vm218_vm1, %v1523_v42  ;;  %v1358_v45 = vpop.permute.xlu2 %1357 }
 0x412   : > { %v1936_v46 = vpop.eup %1935  ;;  %v1371_v47 = vmul.f32 %v1358_v45, %v1347_v43 }
 0x413   : > { %1549 = vperm.xlu0 %1912, %v1936_v46  }
 0x414   : > { %v1521_v52 = vadd.f32 %v1471_v50, %v1371_v47 }
 0x416   : > { %v1938_v53 = vpop.eup %1937  ;;  %1525 = vst.msk [vmem:[#allocation4 + $0x8] sm:$0xff] %vm218_vm1, %v1521_v52  ;;  %v1537_v4 = vld [vmem:[#allocation4 + $0x10] sm:$0xff] }
 0x417   : > { %1554 = vperm.xlu2 %1914, %v1938_v53  }
 0x418   : > { %v1538_v0 = vld [vmem:[#allocation4 + $0x18] sm:$0xff] }
 0x41d   : > { %v1353_v55 = vpop.permute.xlu1 %1352  ;;  %v1536_v61 = vld [vmem:[#allocation4 + $0x8] sm:$0xff] }
 0x41e   : > { %v1370_v56 = vmul.f32 %v1353_v55, %v1346_v54 }
 0x420   : > { %v1520_v58 = vadd.f32 %v1448_v57, %v1370_v56 }
 0x422   : > { %1524 = vst.msk [vmem:[#allocation4] sm:$0xff] %vm218_vm1, %v1520_v58 }
 0x429   : > { %v1535_v18 = vld [vmem:[#allocation4] sm:$0xff] }
 0x469   : > { %v1560_v59 = vpop.permute.xlu2 %1559 }
 0x46a   : > { %v1569_v62 = vmul.f32 %v1560_v59, %v1537_v4 }
 0x46c   : > { %v1571_v24 = vrot.slane %v1569_v62, 4 }
 0x471   : > { %v1555_v60 = vpop.permute.xlu2 %1554 }
 0x472   : > { %v1568_v2 = vmul.f32 %v1555_v60, %v1536_v61 }
 0x474   : > { %v1585_v7 = vrot.slane %v1568_v2, 4 }
 0x47d   : > { %v1565_v63 = vpop.permute.xlu1 %1564 }
 0x47e   : > { %v1570_v3 = vmul.f32 %v1565_v63, %v1538_v0 }
 0x480   : > { %v1583_v6 = vrot.slane %v1570_v3, 4  ;;  %v1586_v9 = vsel %vm235_vm0, %v1570_v3, %v1585_v7 }
 0x481   : > { %v1594_v13 = vperm.slane %v1586_v9, %v2032_v8 }
 0x482   : > { %v1584_v10 = vsel %vm235_vm0, %v1583_v6, %v1568_v2 }
 0x483   : > { %v1590_v11 = vperm.slane %v1584_v10, %v2032_v8  ;;  %v1607_v17 = vrot.slane %v1594_v13, 4 }
 0x485   : > { %v1550_v22 = vpop.permute.xlu0 %1549  ;;  %v1595_v29 = vrot.slane %v1590_v11, 4 }
 0x486   : > { %v1567_v5 = vmul.f32 %v1550_v22, %v1535_v18 }
 0x488   : > { %v1572_v23 = vsel %vm235_vm0, %v1571_v24, %v1567_v5  ;;  %v1573_v27 = vrot.slane %v1567_v5, 4 }
 0x489   : > { %v1578_v15 = vperm.slane %v1572_v23, %v2032_v8 }
 0x48a   : > { %v1574_v12 = vsel %vm235_vm0, %v1569_v62, %v1573_v27 }
 0x48b   : > { %v1582_v20 = vperm.slane %v1574_v12, %v2032_v8  ;;  %v1596_v14 = vsel %vm235_vm0, %v1595_v29, %v1578_v15  ;;  %v1597_v16 = vrot.slane %v1578_v15, 4 }
 0x48c   : > { %v1602_v19 = vperm.slane %v1596_v14, %v2048_v25 }
 0x48d   : > { %v1598_v21 = vsel %vm235_vm0, %v1590_v11, %v1597_v16  ;;  %v1608_v26 = vsel %vm235_vm0, %v1607_v17, %v1582_v20  ;;  %v1609_v1 = vrot.slane %v1582_v20, 4 }
 0x48e   : > { %v1606_v28 = vperm.slane %v1598_v21, %v2048_v25  ;;  %v1614_v48 = vperm.slane %v1608_v26, %v2048_v25  ;;  %v1619_v32 = vrot.slane %v1602_v19, 4 }
 0x48f   : > { %v1610_v30 = vsel %vm235_vm0, %v1594_v13, %v1609_v1 }
 0x490   : > { %v1618_v31 = vperm.slane %v1610_v30, %v2048_v25  ;;  %v1621_v33 = vrot.slane %v1606_v28, 4  ;;  %v1623_v49 = vrot.slane %v1614_v48, 4  ;;  %v1620_v38 = vsel %vm235_vm0, 0.0, %v1619_v32 }
 0x492   : > { %v1622_v51 = vsel %vm235_vm0, 0.0, %v1621_v33  ;;  %v1625_v34 = vrot.slane %v1618_v31, 4  ;;  %v1627_v35 = vsel %vm235_vm0, %v1621_v33, %v1602_v19  ;;  %v1624_v45 = vsel %vm235_vm0, 0.0, %v1623_v49 }
 0x493   : > { %v1632_v36 = vrot.slane %v1622_v51, 4  ;;  %v1631_v37 = vperm.slane %v1627_v35, %v2032_v8 }
 0x494   : > { %v1626_v39 = vsel %vm235_vm0, 0.0, %v1625_v34  ;;  %v1638_v40 = vsel %vm235_vm0, %v1625_v34, %v1614_v48 }
 0x495   : > { %v1633_v41 = vsel %vm235_vm0, %v1632_v36, %v1620_v38  ;;  %v1642_v42 = vperm.slane %v1638_v40, %v2032_v8  ;;  %v1643_v43 = vrot.slane %v1626_v39, 4  ;;  %v1651_v44 = vrot.slane %v1631_v37, 4 }
 0x496   : > { %v1637_v46 = vperm.slane %v1633_v41, %v2032_v8 }
 0x497   : > { %v1644_v47 = vsel %vm235_vm0, %v1643_v43, %v1624_v45  ;;  %v1663_v50 = vrot.slane %v1642_v42, 4 }
 0x498   : > { %v1648_v52 = vperm.slane %v1644_v47, %v2032_v8  ;;  %v1652_v53 = vsel %vm235_vm0, %v1637_v46, %v1651_v44  ;;  %v1649_v54 = vrot.slane %v1637_v46, 4 }
 0x499   : > { %v1660_v55 = vperm.slane %v1652_v53, %v2048_v25 }
 0x49a   : > { %v1664_v56 = vsel %vm235_vm0, %v1648_v52, %v1663_v50  ;;  %v1650_v57 = vsel %vm235_vm0, %v1649_v54, %v1631_v37  ;;  %v1661_v58 = vrot.slane %v1648_v52, 4 }
 0x49b   : > { %v1672_v59 = vperm.slane %v1664_v56, %v2048_v25  ;;  %v1679_v60 = vrot.slane %v1660_v55, 4  ;;  %v1656_v61 = vperm.slane %v1650_v57, %v2048_v25 }
 0x49c   : > { %v1662_v63 = vsel %vm235_vm0, %v1661_v58, %v1642_v42 }
 0x49d   : > { %v1680_v0 = vsel %vm235_vm0, %v1672_v59, %v1679_v60  ;;  %v1677_v8 = vrot.slane %v1672_v59, 4  ;;  %v1668_v2 = vperm.slane %v1662_v63, %v2048_v25  ;;  %v1675_v3 = vrot.slane %v1656_v61, 4 }
 0x49e   : > { %1690 = vrot.lane.b32.xlu2 %v1680_v0, %s1972_s24 }
 0x49f   : > { %v1678_v6 = vsel %vm235_vm0, %v1677_v8, %v1660_v55  ;;  %v1673_v4 = vrot.slane %v1668_v2, 4  ;;  %v1676_v62 = vsel %vm235_vm0, %v1668_v2, %v1675_v3 }
 0x4a0   : > { %1686 = vrot.lane.b32.xlu1 %v1678_v6, %s1973_s25  ;;  %1682 = vrot.lane.b32.xlu0 %v1676_v62, %s1974_s26 }
 0x4a1   : > { %v1674_v7 = vsel %vm235_vm0, %v1673_v4, %v1656_v61 }
 0x4f8   : > { %v1691_v11 = vpop.permute.xlu2 %1690 }
 0x512   : > { %v1687_v10 = vpop.permute.xlu1 %1686  ;;  %v1683_v9 = vpop.permute.xlu0 %1682 }
 0x513   : > { %v1693_v25 = vsel %vm218_vm1, %v1674_v7, %v1683_v9 }
 0x514   : > { %v1695_v18 = vsel %vm1694_vm3, %v1693_v25, %v1687_v10 }
 0x515   : > { %v1697_v22 = vsel %vm1696_vm4, %v1695_v18, %v1691_v11 }
 0x516   : > { %1699 = vst.msk [vmem:[%s204_s29] sm:$0xff] %vm1698_vm5, %v1697_v22 }
 0x517 PF: > { %s12_s11 = sadd.s32 1, %s1961_s11   ;;  %s2382_s9 = smov %s1957_s10 }
 0x518   : > { %p9_p5 = scmp.ge.s32.totalorder %s12_s11, 4   ;;  %s2383_s10 = smov %s2385_s12 }
 0x51a   :  { %11 = sbr.rel (!%p9_p5) target bundleno = 2 (0x2), region = 69 }

</bundles_post_ra>
